<compile_context>
chip_gen: v5e
topology: v5e:2x2
jax: 0.10.0
libtpu: 0.0.40
codegen_flags: <defaults>
</compile_context>

<pallas_src>
import functools
import math

import jax
import jax.numpy as jnp
import numpy as np
from jax.experimental import pallas as pl
from jax.experimental.pallas import tpu as pltpu


def _round_up(x, n):
    return ((x + n - 1) // n) * n


def _layernorm(t, eps=1e-6):
    mu = jnp.mean(t, axis=-1, keepdims=True)
    var = jnp.mean((t - mu) ** 2, axis=-1, keepdims=True)
    return (t - mu) * jax.lax.rsqrt(var + eps)


def _dit_block_kernel(
    x_ref, mod_ref,
    wqkv_ref, bqkv_ref,
    wout_ref, bout_ref,
    w1_ref, bf1_ref,
    w2_ref, bf2_ref,
    out_ref,
    xr_ref, h2_ref, acc_ref,
    *, hidden_size: int, num_heads: int, head_pad: int, kv_tile: int, compute_dtype,
):
    H = hidden_size
    nh = num_heads
    dhp = head_pad           # lane-aligned (padded) per-head dim
    NHD = nh * dhp
    cd = compute_dtype

    m = pl.program_id(1)
    nm = pl.num_programs(1)

    # ---- step m == 0: adaLN apply, LN1, attention, residual 1, LN2 ----
    @pl.when(m == 0)
    def _attention():
        x = x_ref[...].astype(jnp.float32)          # (S, H)
        g1 = mod_ref[0:1, :]                        # (1, H) pre-split modulation rows
        b1 = mod_ref[1:2, :]
        g2 = mod_ref[2:3, :]
        b2 = mod_ref[3:4, :]
        a1 = mod_ref[4:5, :]

        h1 = g1 * _layernorm(x) + b1                # (S, H), f32

        # packed, head-major, lane-padded QKV projection
        # (1/sqrt(dh) already folded into the Q slice of the weights/bias)
        qkv = jnp.dot(h1.astype(cd), wqkv_ref[...],
                      preferred_element_type=jnp.float32) + bqkv_ref[...]   # (S, 3*NHD) f32
        qkv_c = qkv.astype(cd)

        # head-major (nh, S, dhp) tensors from 128-aligned static lane slices
        q = jnp.stack([qkv_c[:, 0 * NHD + i * dhp:0 * NHD + (i + 1) * dhp]
                       for i in range(nh)], axis=0)
        k = jnp.stack([qkv_c[:, 1 * NHD + i * dhp:1 * NHD + (i + 1) * dhp]
                       for i in range(nh)], axis=0)
        v = jnp.stack([qkv_c[:, 2 * NHD + i * dhp:2 * NHD + (i + 1) * dhp]
                       for i in range(nh)], axis=0)

        S = x.shape[0]
        nkv = S // kv_tile

        # flash-style KV chunking with online softmax; normalization deferred to the end
        m_i = None
        l_i = None
        acc = None
        for c in range(nkv):
            k_c = k[:, c * kv_tile:(c + 1) * kv_tile, :]
            v_c = v[:, c * kv_tile:(c + 1) * kv_tile, :]
            s = jnp.einsum('hqd,hkd->hqk', q, k_c,
                           preferred_element_type=jnp.float32)              # (nh, S, kv_tile)
            m_c = jnp.max(s, axis=-1, keepdims=True)
            if c == 0:
                m_i = m_c
                p = jnp.exp(s - m_i)
                l_i = jnp.sum(p, axis=-1, keepdims=True)
                acc = jnp.einsum('hqk,hkd->hqd', p.astype(cd), v_c,
                                 preferred_element_type=jnp.float32)        # (nh, S, dhp)
            else:
                m_new = jnp.maximum(m_i, m_c)
                alpha = jnp.exp(m_i - m_new)
                p = jnp.exp(s - m_new)
                l_i = alpha * l_i + jnp.sum(p, axis=-1, keepdims=True)
                acc = alpha * acc + jnp.einsum('hqk,hkd->hqd', p.astype(cd), v_c,
                                               preferred_element_type=jnp.float32)
                m_i = m_new

        # exact deferred normalization on the small (nh, S, dhp) tensor
        o = acc * (1.0 / l_i)

        # single out-projection: lane-aligned per-head concat -> one K = nh*dhp matmul
        o_flat = jnp.concatenate([o[i] for i in range(nh)], axis=-1)        # (S, NHD) f32
        proj = jnp.dot(o_flat.astype(cd), wout_ref[...],
                       preferred_element_type=jnp.float32) + bout_ref[...]  # (S, H) f32

        x1 = x + a1 * proj                          # residual 1
        xr_ref[...] = x1
        h2_ref[...] = (g2 * _layernorm(x1) + b2).astype(cd)
        acc_ref[...] = jnp.zeros_like(acc_ref)

    # ---- every step: one M-chunk of the FFN ----
    f = jnp.dot(h2_ref[...], w1_ref[...],
                preferred_element_type=jnp.float32) + bf1_ref[...]          # (S, ffn_tile) f32
    # exact GELU (nn.GELU default, approximate='none')
    f = 0.5 * f * (1.0 + jax.lax.erf(f * (1.0 / math.sqrt(2.0))))
    acc_ref[...] += jnp.dot(f.astype(cd), w2_ref[...],
                            preferred_element_type=jnp.float32)             # (S, H) f32

    # ---- last chunk: second bias, residual 2, writeback ----
    @pl.when(m == nm - 1)
    def _finalize():
        a2 = mod_ref[5:6, :]
        out_ref[...] = (xr_ref[...] + a2 * (acc_ref[...] + bf2_ref[...])).astype(out_ref.dtype)


def dit_block_forward(x, cond, params, *, num_heads: int,
                      compute_dtype=jnp.bfloat16,
                      ffn_tile=None, kv_tile=None, vmem_limit_bytes=None):
    B, S, H = x.shape
    M = params["w1"].shape[-1]
    nh = num_heads
    assert H % nh == 0
    dh = H // nh
    # lane-aligned per-head dim: pad dh up to a multiple of 128 so per-head Q/K/V
    # slices and the out-projection K are lane-aligned (zero-FLOP padding).
    dhp = dh if dh % 128 == 0 else _round_up(dh, 128)
    cd_bytes = jnp.dtype(compute_dtype).itemsize

    # --- adaLN path hoisted to plain XLA; pre-split as (B, 6, H) rows ---
    c = cond.astype(jnp.float32)
    c = c * jax.nn.sigmoid(c)                                          # SiLU
    mod = c @ params["w_mod"].astype(jnp.float32) + params["b_mod"].astype(jnp.float32)
    mod = mod.reshape(B, 6, H)

    # --- head-major, lane-padded QKV in-projection; 1/sqrt(dh) folded into Q ---
    scale = 1.0 / math.sqrt(dh)
    w = params["w_qkv"].astype(jnp.float32)
    bqkv = params["b_qkv"].astype(jnp.float32).reshape(3 * H)

    def _pad_heads(wm, bm, s):
        wm = (wm * s).reshape(H, nh, dh)
        bm = (bm * s).reshape(nh, dh)
        wm = jnp.pad(wm, ((0, 0), (0, 0), (0, dhp - dh))).reshape(H, nh * dhp)
        bm = jnp.pad(bm, ((0, 0), (0, dhp - dh))).reshape(nh * dhp)
        return wm, bm

    wq, bq = _pad_heads(w[:, 0 * H:1 * H], bqkv[0 * H:1 * H], scale)
    wk, bk = _pad_heads(w[:, 1 * H:2 * H], bqkv[1 * H:2 * H], 1.0)
    wv, bv = _pad_heads(w[:, 2 * H:3 * H], bqkv[2 * H:3 * H], 1.0)
    w_qkv_hm = jnp.concatenate([wq, wk, wv], axis=1)                   # (H, 3*nh*dhp)
    b_qkv_hm = jnp.concatenate([bq, bk, bv], axis=0)[None, :]          # (1, 3*nh*dhp)

    # --- out-projection as one (nh*dhp, H) weight (zero pad rows contribute nothing) ---
    w_out = params["w_out"].astype(jnp.float32).reshape(nh, dh, H)
    w_out = jnp.pad(w_out, ((0, 0), (0, dhp - dh), (0, 0))).reshape(nh * dhp, H)

    w_qkv_c = w_qkv_hm.astype(compute_dtype)
    w_out_c = w_out.astype(compute_dtype)
    w1_c = params["w1"].astype(compute_dtype)
    w2_c = params["w2"].astype(compute_dtype)
    b_out = params["b_out"].astype(jnp.float32).reshape(1, H)
    b1f = params["b1"].astype(jnp.float32).reshape(1, M)
    b2f = params["b2"].astype(jnp.float32).reshape(1, H)

    # --- generation-aware VMEM budget (≈48 MiB on v7x, ≈96 MiB on v5e/v6e) ---
    if vmem_limit_bytes is None:
        cap = None
        try:
            cap = getattr(pltpu.get_tpu_info(), "vmem_capacity_bytes", None)
        except Exception:
            cap = None
        if not cap:
            cap = 64 * 1024 * 1024          # conservative fallback (v7x per-TC VMEM)
        vmem_limit_bytes = min(int(cap) * 3 // 4, 112 * 1024 * 1024)
    vmem_limit_bytes = int(vmem_limit_bytes)

    # --- KV tile: flash-style chunking bounds the live (nh, S, kv_tile) score block ---
    if kv_tile is None:
        kv_tile = S
        if nh * S * S * 4 > vmem_limit_bytes // 4:
            for t in (512, 256, 128):
                if S % t == 0:
                    kv_tile = t
                    break
    assert S % kv_tile == 0

    # --- FFN tile over M: fully resident (fetched once) when it fits, streamed otherwise ---
    qkv_cols = 3 * nh * dhp
    if ffn_tile is None:
        fixed = (
            4 * S * H * 4                                   # x + out blocks
            + 2 * 6 * H * 4                                 # mod
            + H * qkv_cols * cd_bytes + qkv_cols * 4        # w_qkv + b_qkv
            + nh * dhp * H * cd_bytes + 2 * H * 4           # w_out + b_out + b2
            + S * H * (8 + cd_bytes)                        # scratch xr/acc (f32) + h2 (cd)
            + S * qkv_cols * (4 + cd_bytes)                 # qkv activation + stacked q/k/v
            + nh * S * kv_tile * (4 + cd_bytes)             # scores f32 + probs cd
            + 2 * nh * S * dhp * 4                          # attention accumulator/output f32
        )
        budget = int(vmem_limit_bytes * 0.9) - fixed
        cands = [M] + [t for t in (2048, 1024, 512, 256, 128) if t < M and M % t == 0]
        ffn_tile = None
        for t in cands:
            nbuf = 1 if t == M else 2                       # resident vs double-buffered stream
            need = nbuf * (2 * H * t * cd_bytes + t * 4) + S * t * 4
            if need <= budget:
                ffn_tile = t
                break
        if ffn_tile is None:
            ffn_tile = next((t for t in (128, 256, 512) if M % t == 0), M)
    assert M % ffn_tile == 0
    nm = M // ffn_tile

    def resident(shape):
        # grid-invariant block: single-buffered, fetched once (constant index map)
        n = len(shape)
        return pl.BlockSpec(shape, lambda *_: (0,) * n, pipeline_mode=pl.Buffered(1))

    if nm == 1:
        w1_spec = resident((H, M))
        bf1_spec = resident((1, M))
        w2_spec = resident((M, H))
    else:
        w1_spec = pl.BlockSpec((H, ffn_tile), lambda b_, m_: (0, m_))
        bf1_spec = pl.BlockSpec((1, ffn_tile), lambda b_, m_: (0, m_))
        w2_spec = pl.BlockSpec((ffn_tile, H), lambda b_, m_: (m_, 0))

    kernel = functools.partial(
        _dit_block_kernel, hidden_size=H, num_heads=nh, head_pad=dhp,
        kv_tile=kv_tile, compute_dtype=compute_dtype)

    return pl.pallas_call(
        kernel,
        out_shape=jax.ShapeDtypeStruct((B, S, H), x.dtype),
        grid_spec=pltpu.PrefetchScalarGridSpec(
            num_scalar_prefetch=0,
            grid=(B, nm),
            in_specs=[
                pl.BlockSpec((None, S, H), lambda b_, m_: (b_, 0, 0)),     # x (per batch)
                pl.BlockSpec((None, 6, H), lambda b_, m_: (b_, 0, 0)),     # pre-split modulation
                resident((H, qkv_cols)),                                   # w_qkv head-major padded
                resident((1, qkv_cols)),                                   # b_qkv
                resident((nh * dhp, H)),                                   # w_out (single matmul)
                resident((1, H)),                                          # b_out
                w1_spec, bf1_spec, w2_spec,                                # FFN (resident or streamed)
                resident((1, H)),                                          # b2 (ffn)
            ],
            out_specs=pl.BlockSpec((None, S, H), lambda b_, m_: (b_, 0, 0)),
            scratch_shapes=[
                pltpu.VMEM((S, H), jnp.float32),     # x + a1*attn residual
                pltpu.VMEM((S, H), compute_dtype),   # modulated LN2 output (FFN input)
                pltpu.VMEM((S, H), jnp.float32),     # FFN accumulator over M chunks
            ],
        ),
        compiler_params=pltpu.CompilerParams(
            dimension_semantics=("parallel", "arbitrary"),
            vmem_limit_bytes=vmem_limit_bytes,
        ),
    )(x, mod, w_qkv_c, b_qkv_hm, w_out_c, b_out, w1_c, b1f, w2_c, b2f)


def dit_block_reference(x, cond, params, *, num_heads: int, compute_dtype=jnp.float32):
    """Pure-JAX reference mirroring the PyTorch semantics.

    compute_dtype emulates the kernel's matmul-operand casting (f32 accumulation),
    so the bf16 fast path can be checked against a like-for-like baseline.
    """
    B, S, H = x.shape
    nh = num_heads
    dh = H // nh
    cd = compute_dtype

    def mm(a, b):
        return jnp.einsum('...ij,jk->...ik', a.astype(cd), b.astype(cd),
                          preferred_element_type=jnp.float32)

    c = cond * jax.nn.sigmoid(cond)
    mod = c @ params["w_mod"] + params["b_mod"]                      # (B, 6H)
    g1, b1, g2, b2, a1, a2 = jnp.split(mod, 6, axis=1)
    g1, b1, g2, b2, a1, a2 = (t[:, None, :] for t in (g1, b1, g2, b2, a1, a2))

    h = g1 * _layernorm(x) + b1
    qkv = mm(h, params["w_qkv"]) + params["b_qkv"][0]
    q, k, v = jnp.split(qkv, 3, axis=-1)
    q = q.reshape(B, S, nh, dh).transpose(0, 2, 1, 3) / math.sqrt(dh)
    k = k.reshape(B, S, nh, dh).transpose(0, 2, 1, 3)
    v = v.reshape(B, S, nh, dh).transpose(0, 2, 1, 3)
    s = jnp.einsum('bhqd,bhkd->bhqk', q.astype(cd), k.astype(cd),
                   preferred_element_type=jnp.float32)
    p = jax.nn.softmax(s, axis=-1)
    attn = jnp.einsum('bhqk,bhkd->bhqd', p.astype(cd), v.astype(cd),
                      preferred_element_type=jnp.float32)
    attn = attn.transpose(0, 2, 1, 3).reshape(B, S, H)
    attn = mm(attn, params["w_out"]) + params["b_out"][0]

    x = x + a1 * attn
    h2 = g2 * _layernorm(x) + b2
    f = mm(h2, params["w1"]) + params["b1"][0]
    f = 0.5 * f * (1.0 + jax.lax.erf(f / jnp.sqrt(2.0)))
    f = mm(f, params["w2"]) + params["b2"][0]
    return x + a2 * f


if __name__ == "__main__":
    B, S, H = 2, 16, 128
    num_heads = 4            # dh = 32 -> padded to 128 lanes (exercises the padded path)
    cond_dim = 16
    mlp_ratio = 4.0
    M = int(H * mlp_ratio)   # 512

    key = jax.random.PRNGKey(0)
    ks = jax.random.split(key, 12)
    init = 0.05

    # NOTE: the real DiTBlock uses adaLN-zero init (w_mod = 0, a1 = a2 = 0), which makes
    # the block an identity map and the check trivial. Random modulation params are used
    # here so the attention/FFN branches actually contribute and the check is meaningful.
    params = {
        "w_mod": (jax.random.normal(ks[0], (cond_dim, 6 * H)) * 0.2).astype(jnp.float32),
        "b_mod": (jax.random.normal(ks[1], (1, 6 * H)) * 0.5).astype(jnp.float32),
        "w_qkv": (jax.random.normal(ks[2], (H, 3 * H)) * init).astype(jnp.float32),
        "b_qkv": (jax.random.normal(ks[3], (1, 3 * H)) * init).astype(jnp.float32),
        "w_out": (jax.random.normal(ks[4], (H, H)) * init).astype(jnp.float32),
        "b_out": (jax.random.normal(ks[5], (1, H)) * init).astype(jnp.float32),
        "w1":    (jax.random.normal(ks[6], (H, M)) * init).astype(jnp.float32),
        "b1":    (jax.random.normal(ks[7], (1, M)) * init).astype(jnp.float32),
        "w2":    (jax.random.normal(ks[8], (M, H)) * init).astype(jnp.float32),
        "b2":    (jax.random.normal(ks[9], (1, H)) * init).astype(jnp.float32),
    }

    x = jax.random.normal(ks[10], (B, S, H), jnp.float32)
    cond = jax.random.normal(ks[11], (B, cond_dim), jnp.float32)

    # f32 matmul path: tight correctness check; forces 2 KV chunks (online softmax)
    # and 2 streamed FFN chunks so the multi-step accumulation paths are exercised.
    out_f32 = dit_block_forward(x, cond, params, num_heads=num_heads,
                                compute_dtype=jnp.float32, ffn_tile=256, kv_tile=8)
    out_f32 = jax.block_until_ready(out_f32)
    ref_f32 = dit_block_reference(x, cond, params, num_heads=num_heads,
                                  compute_dtype=jnp.float32)
    np.testing.assert_allclose(np.asarray(out_f32), np.asarray(ref_f32),
                               rtol=2e-3, atol=2e-3)

    # bf16 matmul-operand path (performance default, auto tiling / resident FFN weights)
    # vs a bf16-aware reference.
    out_bf16 = dit_block_forward(x, cond, params, num_heads=num_heads,
                                 compute_dtype=jnp.bfloat16)
    out_bf16 = jax.block_until_ready(out_bf16)
    ref_bf16 = dit_block_reference(x, cond, params, num_heads=num_heads,
                                   compute_dtype=jnp.bfloat16)
    np.testing.assert_allclose(np.asarray(out_bf16), np.asarray(ref_bf16),
                               rtol=5e-2, atol=5e-2)

    print("KERNEL_OK")
</pallas_src>

<mosaic_0001>
module attributes {stable_mosaic.version = 11 : i64} {
  func.func @_dit_block_kernel(%arg0: i32, %arg1: i32, %arg2: memref<1x16x128xf32, #tpu.memory_space<vmem>>, %arg3: memref<1x6x128xf32, #tpu.memory_space<vmem>>, %arg4: memref<128x1536xf32, #tpu.memory_space<vmem>>, %arg5: memref<1x1536xf32, #tpu.memory_space<vmem>>, %arg6: memref<512x128xf32, #tpu.memory_space<vmem>>, %arg7: memref<1x128xf32, #tpu.memory_space<vmem>>, %arg8: memref<128x256xf32, #tpu.memory_space<vmem>>, %arg9: memref<1x256xf32, #tpu.memory_space<vmem>>, %arg10: memref<256x128xf32, #tpu.memory_space<vmem>>, %arg11: memref<1x128xf32, #tpu.memory_space<vmem>>, %arg12: memref<1x16x128xf32, #tpu.memory_space<vmem>>, %arg13: memref<16x128xf32, #tpu.memory_space<vmem>>, %arg14: memref<16x128xf32, #tpu.memory_space<vmem>>, %arg15: memref<16x128xf32, #tpu.memory_space<vmem>>) attributes {dimension_semantics = [#tpu.dimension_semantics<parallel>, #tpu.dimension_semantics<arbitrary>], iteration_bounds = array<i64: 2, 2>, scalar_prefetch = 0 : i64, scratch_operands = 3 : i64, tpu.core_type = #tpu.core_type<tc>, window_params = [{transform_indices = @transform_0, window_bounds = array<i64: 1, 16, 128>}, {transform_indices = @transform_1, window_bounds = array<i64: 1, 6, 128>}, {pipeline_mode = #tpu.pipeline_mode<synchronous>, transform_indices = @transform_2, window_bounds = array<i64: 128, 1536>}, {pipeline_mode = #tpu.pipeline_mode<synchronous>, transform_indices = @transform_3, window_bounds = array<i64: 1, 1536>}, {pipeline_mode = #tpu.pipeline_mode<synchronous>, transform_indices = @transform_4, window_bounds = array<i64: 512, 128>}, {pipeline_mode = #tpu.pipeline_mode<synchronous>, transform_indices = @transform_5, window_bounds = array<i64: 1, 128>}, {transform_indices = @transform_6, window_bounds = array<i64: 128, 256>}, {transform_indices = @transform_7, window_bounds = array<i64: 1, 256>}, {transform_indices = @transform_8, window_bounds = array<i64: 256, 128>}, {pipeline_mode = #tpu.pipeline_mode<synchronous>, transform_indices = @transform_9, window_bounds = array<i64: 1, 128>}, {transform_indices = @transform_10, window_bounds = array<i64: 1, 16, 128>}]} {
    %c0_i32 = arith.constant 0 : i32
    %0 = arith.cmpi eq, %arg1, %c0_i32 : i32
    %1 = arith.extui %0 : i1 to i32
    %c0_i32_0 = arith.constant 0 : i32
    %2 = arith.cmpi ne, %1, %c0_i32_0 : i32
    scf.if %2 {
      %c0_17 = arith.constant 0 : index
      %c0_18 = arith.constant 0 : index
      %c0_19 = arith.constant 0 : index
      %25 = vector.load %arg2[%c0_17, %c0_18, %c0_19] : memref<1x16x128xf32, #tpu.memory_space<vmem>>, vector<1x16x128xf32>
      %26 = vector.shape_cast %25 : vector<1x16x128xf32> to vector<16x128xf32>
      %c0_20 = arith.constant 0 : index
      %c0_21 = arith.constant 0 : index
      %c0_22 = arith.constant 0 : index
      %27 = vector.load %arg3[%c0_20, %c0_21, %c0_22] : memref<1x6x128xf32, #tpu.memory_space<vmem>>, vector<1x1x128xf32>
      %28 = vector.shape_cast %27 : vector<1x1x128xf32> to vector<1x128xf32>
      %c0_23 = arith.constant 0 : index
      %c1 = arith.constant 1 : index
      %c0_24 = arith.constant 0 : index
      %29 = vector.load %arg3[%c0_23, %c1, %c0_24] : memref<1x6x128xf32, #tpu.memory_space<vmem>>, vector<1x1x128xf32>
      %30 = vector.shape_cast %29 : vector<1x1x128xf32> to vector<1x128xf32>
      %c0_25 = arith.constant 0 : index
      %c2 = arith.constant 2 : index
      %c0_26 = arith.constant 0 : index
      %31 = vector.load %arg3[%c0_25, %c2, %c0_26] : memref<1x6x128xf32, #tpu.memory_space<vmem>>, vector<1x1x128xf32>
      %32 = vector.shape_cast %31 : vector<1x1x128xf32> to vector<1x128xf32>
      %c0_27 = arith.constant 0 : index
      %c3 = arith.constant 3 : index
      %c0_28 = arith.constant 0 : index
      %33 = vector.load %arg3[%c0_27, %c3, %c0_28] : memref<1x6x128xf32, #tpu.memory_space<vmem>>, vector<1x1x128xf32>
      %34 = vector.shape_cast %33 : vector<1x1x128xf32> to vector<1x128xf32>
      %c0_29 = arith.constant 0 : index
      %c4 = arith.constant 4 : index
      %c0_30 = arith.constant 0 : index
      %35 = vector.load %arg3[%c0_29, %c4, %c0_30] : memref<1x6x128xf32, #tpu.memory_space<vmem>>, vector<1x1x128xf32>
      %36 = vector.shape_cast %35 : vector<1x1x128xf32> to vector<1x128xf32>
      %cst_31 = arith.constant dense<0.000000e+00> : vector<16xf32>
      %37 = vector.multi_reduction <add>, %26, %cst_31 [1] : vector<16x128xf32> to vector<16xf32>
      %38 = vector.shape_cast %37 : vector<16xf32> to vector<16x1xf32>
      %cst_32 = arith.constant 1.280000e+02 : f32
      %39 = vector.broadcast %cst_32 : f32 to vector<16x1xf32>
      %40 = arith.divf %38, %39 : vector<16x1xf32>
      %41 = vector.broadcast %40 : vector<16x1xf32> to vector<16x128xf32>
      %42 = arith.subf %26, %41 : vector<16x128xf32>
      %43 = arith.mulf %42, %42 : vector<16x128xf32>
      %cst_33 = arith.constant dense<0.000000e+00> : vector<16xf32>
      %44 = vector.multi_reduction <add>, %43, %cst_33 [1] : vector<16x128xf32> to vector<16xf32>
      %45 = vector.shape_cast %44 : vector<16xf32> to vector<16x1xf32>
      %cst_34 = arith.constant 1.280000e+02 : f32
      %46 = vector.broadcast %cst_34 : f32 to vector<16x1xf32>
      %47 = arith.divf %45, %46 : vector<16x1xf32>
      %48 = vector.broadcast %40 : vector<16x1xf32> to vector<16x128xf32>
      %49 = arith.subf %26, %48 : vector<16x128xf32>
      %cst_35 = arith.constant 9.99999997E-7 : f32
      %50 = vector.broadcast %cst_35 : f32 to vector<16x1xf32>
      %51 = arith.addf %47, %50 : vector<16x1xf32>
      %52 = math.rsqrt %51 : vector<16x1xf32>
      %53 = vector.broadcast %52 : vector<16x1xf32> to vector<16x128xf32>
      %54 = arith.mulf %49, %53 : vector<16x128xf32>
      %55 = vector.broadcast %28 : vector<1x128xf32> to vector<16x128xf32>
      %56 = arith.mulf %55, %54 : vector<16x128xf32>
      %57 = vector.broadcast %30 : vector<1x128xf32> to vector<16x128xf32>
      %58 = arith.addf %56, %57 : vector<16x128xf32>
      %c0_36 = arith.constant 0 : index
      %c0_37 = arith.constant 0 : index
      %59 = vector.load %arg4[%c0_36, %c0_37] : memref<128x1536xf32, #tpu.memory_space<vmem>>, vector<128x1536xf32>
      %cst_38 = arith.constant dense<0.000000e+00> : vector<16x1536xf32>
      %60 = tpu.matmul %58, %59, %cst_38 {dimension_numbers = #tpu.dot_dimension_numbers<[1], [0], [0], [1], [0, 0, 1, 1], [], []>} : vector<16x128xf32>, vector<128x1536xf32>, vector<16x1536xf32> -> vector<16x1536xf32>
      %c0_39 = arith.constant 0 : index
      %c0_40 = arith.constant 0 : index
      %61 = vector.load %arg5[%c0_39, %c0_40] : memref<1x1536xf32, #tpu.memory_space<vmem>>, vector<1x1536xf32>
      %62 = vector.broadcast %61 : vector<1x1536xf32> to vector<16x1536xf32>
      %63 = arith.addf %60, %62 : vector<16x1536xf32>
      %64 = vector.extract_strided_slice %63 {offsets = [0, 0], sizes = [16, 128], strides = [1, 1]} : vector<16x1536xf32> to vector<16x128xf32>
      %65 = vector.extract_strided_slice %63 {offsets = [0, 128], sizes = [16, 128], strides = [1, 1]} : vector<16x1536xf32> to vector<16x128xf32>
      %66 = vector.extract_strided_slice %63 {offsets = [0, 256], sizes = [16, 128], strides = [1, 1]} : vector<16x1536xf32> to vector<16x128xf32>
      %67 = vector.extract_strided_slice %63 {offsets = [0, 384], sizes = [16, 128], strides = [1, 1]} : vector<16x1536xf32> to vector<16x128xf32>
      %68 = vector.shape_cast %64 : vector<16x128xf32> to vector<1x16x128xf32>
      %69 = vector.shape_cast %65 : vector<16x128xf32> to vector<1x16x128xf32>
      %70 = vector.shape_cast %66 : vector<16x128xf32> to vector<1x16x128xf32>
      %71 = vector.shape_cast %67 : vector<16x128xf32> to vector<1x16x128xf32>
      %72 = tpu.concatenate %68, %69, %70, %71 in 0 : vector<1x16x128xf32>, vector<1x16x128xf32>, vector<1x16x128xf32>, vector<1x16x128xf32> -> vector<4x16x128xf32>
      %73 = vector.extract_strided_slice %63 {offsets = [0, 512], sizes = [16, 128], strides = [1, 1]} : vector<16x1536xf32> to vector<16x128xf32>
      %74 = vector.extract_strided_slice %63 {offsets = [0, 640], sizes = [16, 128], strides = [1, 1]} : vector<16x1536xf32> to vector<16x128xf32>
      %75 = vector.extract_strided_slice %63 {offsets = [0, 768], sizes = [16, 128], strides = [1, 1]} : vector<16x1536xf32> to vector<16x128xf32>
      %76 = vector.extract_strided_slice %63 {offsets = [0, 896], sizes = [16, 128], strides = [1, 1]} : vector<16x1536xf32> to vector<16x128xf32>
      %77 = vector.shape_cast %73 : vector<16x128xf32> to vector<1x16x128xf32>
      %78 = vector.shape_cast %74 : vector<16x128xf32> to vector<1x16x128xf32>
      %79 = vector.shape_cast %75 : vector<16x128xf32> to vector<1x16x128xf32>
      %80 = vector.shape_cast %76 : vector<16x128xf32> to vector<1x16x128xf32>
      %81 = tpu.concatenate %77, %78, %79, %80 in 0 : vector<1x16x128xf32>, vector<1x16x128xf32>, vector<1x16x128xf32>, vector<1x16x128xf32> -> vector<4x16x128xf32>
      %82 = vector.extract_strided_slice %63 {offsets = [0, 1024], sizes = [16, 128], strides = [1, 1]} : vector<16x1536xf32> to vector<16x128xf32>
      %83 = vector.extract_strided_slice %63 {offsets = [0, 1152], sizes = [16, 128], strides = [1, 1]} : vector<16x1536xf32> to vector<16x128xf32>
      %84 = vector.extract_strided_slice %63 {offsets = [0, 1280], sizes = [16, 128], strides = [1, 1]} : vector<16x1536xf32> to vector<16x128xf32>
      %85 = vector.extract_strided_slice %63 {offsets = [0, 1408], sizes = [16, 128], strides = [1, 1]} : vector<16x1536xf32> to vector<16x128xf32>
      %86 = vector.shape_cast %82 : vector<16x128xf32> to vector<1x16x128xf32>
      %87 = vector.shape_cast %83 : vector<16x128xf32> to vector<1x16x128xf32>
      %88 = vector.shape_cast %84 : vector<16x128xf32> to vector<1x16x128xf32>
      %89 = vector.shape_cast %85 : vector<16x128xf32> to vector<1x16x128xf32>
      %90 = tpu.concatenate %86, %87, %88, %89 in 0 : vector<1x16x128xf32>, vector<1x16x128xf32>, vector<1x16x128xf32>, vector<1x16x128xf32> -> vector<4x16x128xf32>
      %91 = vector.extract_strided_slice %81 {offsets = [0, 0, 0], sizes = [4, 8, 128], strides = [1, 1, 1]} : vector<4x16x128xf32> to vector<4x8x128xf32>
      %92 = vector.extract_strided_slice %90 {offsets = [0, 0, 0], sizes = [4, 8, 128], strides = [1, 1, 1]} : vector<4x16x128xf32> to vector<4x8x128xf32>
      "tpu.trace_start"() <{level = 10 : i32, message = "hqd,hkd->hqk"}> : () -> ()
      %cst_41 = arith.constant dense<0.000000e+00> : vector<4x16x8xf32>
      %93 = tpu.matmul %72, %91, %cst_41 {dimension_numbers = #tpu.dot_dimension_numbers<[2], [2], [1], [1], [0, 0, 0, 1, 1, 1], [0], [0]>} : vector<4x16x128xf32>, vector<4x8x128xf32>, vector<4x16x8xf32> -> vector<4x16x8xf32>
      "tpu.trace_stop"() : () -> ()
      %cst_42 = arith.constant dense<0xFF800000> : vector<4x16xf32>
      %94 = vector.multi_reduction <maximumf>, %93, %cst_42 [2] : vector<4x16x8xf32> to vector<4x16xf32>
      %95 = vector.shape_cast %94 : vector<4x16xf32> to vector<4x16x1xf32>
      %96 = vector.broadcast %95 : vector<4x16x1xf32> to vector<4x16x8xf32>
      %97 = arith.subf %93, %96 : vector<4x16x8xf32>
      %98 = math.exp %97 : vector<4x16x8xf32>
      %cst_43 = arith.constant dense<0.000000e+00> : vector<4x16xf32>
      %99 = vector.multi_reduction <add>, %98, %cst_43 [2] : vector<4x16x8xf32> to vector<4x16xf32>
      %100 = vector.shape_cast %99 : vector<4x16xf32> to vector<4x16x1xf32>
      "tpu.trace_start"() <{level = 10 : i32, message = "hqk,hkd->hqd"}> : () -> ()
      %cst_44 = arith.constant dense<0.000000e+00> : vector<4x16x128xf32>
      %101 = tpu.matmul %98, %92, %cst_44 {dimension_numbers = #tpu.dot_dimension_numbers<[2], [1], [1], [2], [0, 0, 0, 1, 1, 2], [0], [0]>} : vector<4x16x8xf32>, vector<4x8x128xf32>, vector<4x16x128xf32> -> vector<4x16x128xf32>
      "tpu.trace_stop"() : () -> ()
      %102 = vector.extract_strided_slice %81 {offsets = [0, 8, 0], sizes = [4, 8, 128], strides = [1, 1, 1]} : vector<4x16x128xf32> to vector<4x8x128xf32>
      %103 = vector.extract_strided_slice %90 {offsets = [0, 8, 0], sizes = [4, 8, 128], strides = [1, 1, 1]} : vector<4x16x128xf32> to vector<4x8x128xf32>
      "tpu.trace_start"() <{level = 10 : i32, message = "hqd,hkd->hqk"}> : () -> ()
      %cst_45 = arith.constant dense<0.000000e+00> : vector<4x16x8xf32>
      %104 = tpu.matmul %72, %102, %cst_45 {dimension_numbers = #tpu.dot_dimension_numbers<[2], [2], [1], [1], [0, 0, 0, 1, 1, 1], [0], [0]>} : vector<4x16x128xf32>, vector<4x8x128xf32>, vector<4x16x8xf32> -> vector<4x16x8xf32>
      "tpu.trace_stop"() : () -> ()
      %cst_46 = arith.constant dense<0xFF800000> : vector<4x16xf32>
      %105 = vector.multi_reduction <maximumf>, %104, %cst_46 [2] : vector<4x16x8xf32> to vector<4x16xf32>
      %106 = vector.shape_cast %105 : vector<4x16xf32> to vector<4x16x1xf32>
      %107 = arith.maximumf %95, %106 : vector<4x16x1xf32>
      %108 = arith.subf %95, %107 : vector<4x16x1xf32>
      %109 = math.exp %108 : vector<4x16x1xf32>
      %110 = vector.broadcast %107 : vector<4x16x1xf32> to vector<4x16x8xf32>
      %111 = arith.subf %104, %110 : vector<4x16x8xf32>
      %112 = math.exp %111 : vector<4x16x8xf32>
      %113 = arith.mulf %109, %100 : vector<4x16x1xf32>
      %cst_47 = arith.constant dense<0.000000e+00> : vector<4x16xf32>
      %114 = vector.multi_reduction <add>, %112, %cst_47 [2] : vector<4x16x8xf32> to vector<4x16xf32>
      %115 = vector.shape_cast %114 : vector<4x16xf32> to vector<4x16x1xf32>
      %116 = arith.addf %113, %115 : vector<4x16x1xf32>
      %117 = vector.broadcast %109 : vector<4x16x1xf32> to vector<4x16x128xf32>
      %118 = arith.mulf %117, %101 : vector<4x16x128xf32>
      "tpu.trace_start"() <{level = 10 : i32, message = "hqk,hkd->hqd"}> : () -> ()
      %cst_48 = arith.constant dense<0.000000e+00> : vector<4x16x128xf32>
      %119 = tpu.matmul %112, %103, %cst_48 {dimension_numbers = #tpu.dot_dimension_numbers<[2], [1], [1], [2], [0, 0, 0, 1, 1, 2], [0], [0]>} : vector<4x16x8xf32>, vector<4x8x128xf32>, vector<4x16x128xf32> -> vector<4x16x128xf32>
      "tpu.trace_stop"() : () -> ()
      %120 = arith.addf %118, %119 : vector<4x16x128xf32>
      %cst_49 = arith.constant 1.000000e+00 : f32
      %121 = vector.broadcast %cst_49 : f32 to vector<4x16x1xf32>
      %122 = arith.divf %121, %116 : vector<4x16x1xf32>
      %123 = vector.broadcast %122 : vector<4x16x1xf32> to vector<4x16x128xf32>
      %124 = arith.mulf %120, %123 : vector<4x16x128xf32>
      %125 = vector.extract_strided_slice %124 {offsets = [0, 0, 0], sizes = [1, 16, 128], strides = [1, 1, 1]} : vector<4x16x128xf32> to vector<1x16x128xf32>
      %126 = vector.shape_cast %125 : vector<1x16x128xf32> to vector<16x128xf32>
      %127 = vector.extract_strided_slice %124 {offsets = [1, 0, 0], sizes = [1, 16, 128], strides = [1, 1, 1]} : vector<4x16x128xf32> to vector<1x16x128xf32>
      %128 = vector.shape_cast %127 : vector<1x16x128xf32> to vector<16x128xf32>
      %129 = vector.extract_strided_slice %124 {offsets = [2, 0, 0], sizes = [1, 16, 128], strides = [1, 1, 1]} : vector<4x16x128xf32> to vector<1x16x128xf32>
      %130 = vector.shape_cast %129 : vector<1x16x128xf32> to vector<16x128xf32>
      %131 = vector.extract_strided_slice %124 {offsets = [3, 0, 0], sizes = [1, 16, 128], strides = [1, 1, 1]} : vector<4x16x128xf32> to vector<1x16x128xf32>
      %132 = vector.shape_cast %131 : vector<1x16x128xf32> to vector<16x128xf32>
      %133 = tpu.concatenate %126, %128, %130, %132 in 1 : vector<16x128xf32>, vector<16x128xf32>, vector<16x128xf32>, vector<16x128xf32> -> vector<16x512xf32>
      %c0_50 = arith.constant 0 : index
      %c0_51 = arith.constant 0 : index
      %134 = vector.load %arg6[%c0_50, %c0_51] : memref<512x128xf32, #tpu.memory_space<vmem>>, vector<512x128xf32>
      %cst_52 = arith.constant dense<0.000000e+00> : vector<16x128xf32>
      %135 = tpu.matmul %133, %134, %cst_52 {dimension_numbers = #tpu.dot_dimension_numbers<[1], [0], [0], [1], [0, 0, 1, 1], [], []>} : vector<16x512xf32>, vector<512x128xf32>, vector<16x128xf32> -> vector<16x128xf32>
      %c0_53 = arith.constant 0 : index
      %c0_54 = arith.constant 0 : index
      %136 = vector.load %arg7[%c0_53, %c0_54] : memref<1x128xf32, #tpu.memory_space<vmem>>, vector<1x128xf32>
      %137 = vector.broadcast %136 : vector<1x128xf32> to vector<16x128xf32>
      %138 = arith.addf %135, %137 : vector<16x128xf32>
      %139 = vector.broadcast %36 : vector<1x128xf32> to vector<16x128xf32>
      %140 = arith.mulf %139, %138 : vector<16x128xf32>
      %141 = arith.addf %26, %140 : vector<16x128xf32>
      %c0_55 = arith.constant 0 : index
      %c0_56 = arith.constant 0 : index
      %142 = vector.load %arg13[%c0_55, %c0_56] : memref<16x128xf32, #tpu.memory_space<vmem>>, vector<16x128xf32>
      tpu.vector_store %arg13[%c0_55, %c0_56], %141 {strides = array<i32>} : memref<16x128xf32, #tpu.memory_space<vmem>>, vector<16x128xf32>,
      %cst_57 = arith.constant dense<0.000000e+00> : vector<16xf32>
      %143 = vector.multi_reduction <add>, %141, %cst_57 [1] : vector<16x128xf32> to vector<16xf32>
      %144 = vector.shape_cast %143 : vector<16xf32> to vector<16x1xf32>
      %cst_58 = arith.constant 1.280000e+02 : f32
      %145 = vector.broadcast %cst_58 : f32 to vector<16x1xf32>
      %146 = arith.divf %144, %145 : vector<16x1xf32>
      %147 = vector.broadcast %146 : vector<16x1xf32> to vector<16x128xf32>
      %148 = arith.subf %141, %147 : vector<16x128xf32>
      %149 = arith.mulf %148, %148 : vector<16x128xf32>
      %cst_59 = arith.constant dense<0.000000e+00> : vector<16xf32>
      %150 = vector.multi_reduction <add>, %149, %cst_59 [1] : vector<16x128xf32> to vector<16xf32>
      %151 = vector.shape_cast %150 : vector<16xf32> to vector<16x1xf32>
      %cst_60 = arith.constant 1.280000e+02 : f32
      %152 = vector.broadcast %cst_60 : f32 to vector<16x1xf32>
      %153 = arith.divf %151, %152 : vector<16x1xf32>
      %154 = vector.broadcast %146 : vector<16x1xf32> to vector<16x128xf32>
      %155 = arith.subf %141, %154 : vector<16x128xf32>
      %cst_61 = arith.constant 9.99999997E-7 : f32
      %156 = vector.broadcast %cst_61 : f32 to vector<16x1xf32>
      %157 = arith.addf %153, %156 : vector<16x1xf32>
      %158 = math.rsqrt %157 : vector<16x1xf32>
      %159 = vector.broadcast %158 : vector<16x1xf32> to vector<16x128xf32>
      %160 = arith.mulf %155, %159 : vector<16x128xf32>
      %161 = vector.broadcast %32 : vector<1x128xf32> to vector<16x128xf32>
      %162 = arith.mulf %161, %160 : vector<16x128xf32>
      %163 = vector.broadcast %34 : vector<1x128xf32> to vector<16x128xf32>
      %164 = arith.addf %162, %163 : vector<16x128xf32>
      %c0_62 = arith.constant 0 : index
      %c0_63 = arith.constant 0 : index
      %165 = vector.load %arg14[%c0_62, %c0_63] : memref<16x128xf32, #tpu.memory_space<vmem>>, vector<16x128xf32>
      tpu.vector_store %arg14[%c0_62, %c0_63], %164 {strides = array<i32>} : memref<16x128xf32, #tpu.memory_space<vmem>>, vector<16x128xf32>,
      %cst_64 = arith.constant 0.000000e+00 : f32
      %166 = vector.broadcast %cst_64 : f32 to vector<16x128xf32>
      %c0_65 = arith.constant 0 : index
      %c0_66 = arith.constant 0 : index
      %167 = vector.load %arg15[%c0_65, %c0_66] : memref<16x128xf32, #tpu.memory_space<vmem>>, vector<16x128xf32>
      tpu.vector_store %arg15[%c0_65, %c0_66], %166 {strides = array<i32>} : memref<16x128xf32, #tpu.memory_space<vmem>>, vector<16x128xf32>,
    } else {
    }
    %c0 = arith.constant 0 : index
    %c0_1 = arith.constant 0 : index
    %3 = vector.load %arg14[%c0, %c0_1] : memref<16x128xf32, #tpu.memory_space<vmem>>, vector<16x128xf32>
    %c0_2 = arith.constant 0 : index
    %c0_3 = arith.constant 0 : index
    %4 = vector.load %arg8[%c0_2, %c0_3] : memref<128x256xf32, #tpu.memory_space<vmem>>, vector<128x256xf32>
    %cst = arith.constant dense<0.000000e+00> : vector<16x256xf32>
    %5 = tpu.matmul %3, %4, %cst {dimension_numbers = #tpu.dot_dimension_numbers<[1], [0], [0], [1], [0, 0, 1, 1], [], []>} : vector<16x128xf32>, vector<128x256xf32>, vector<16x256xf32> -> vector<16x256xf32>
    %c0_4 = arith.constant 0 : index
    %c0_5 = arith.constant 0 : index
    %6 = vector.load %arg9[%c0_4, %c0_5] : memref<1x256xf32, #tpu.memory_space<vmem>>, vector<1x256xf32>
    %7 = vector.broadcast %6 : vector<1x256xf32> to vector<16x256xf32>
    %8 = arith.addf %5, %7 : vector<16x256xf32>
    %cst_6 = arith.constant 5.000000e-01 : f32
    %9 = vector.broadcast %cst_6 : f32 to vector<16x256xf32>
    %10 = arith.mulf %9, %8 : vector<16x256xf32>
    %cst_7 = arith.constant 0.707106769 : f32
    %11 = vector.broadcast %cst_7 : f32 to vector<16x256xf32>
    %12 = arith.mulf %8, %11 : vector<16x256xf32>
    %13 = math.erf %12 : vector<16x256xf32>
    %cst_8 = arith.constant 1.000000e+00 : f32
    %14 = vector.broadcast %cst_8 : f32 to vector<16x256xf32>
    %15 = arith.addf %14, %13 : vector<16x256xf32>
    %16 = arith.mulf %10, %15 : vector<16x256xf32>
    %c0_9 = arith.constant 0 : index
    %c0_10 = arith.constant 0 : index
    %17 = vector.load %arg15[%c0_9, %c0_10] : memref<16x128xf32, #tpu.memory_space<vmem>>, vector<16x128xf32>
    %c0_11 = arith.constant 0 : index
    %c0_12 = arith.constant 0 : index
    %18 = vector.load %arg10[%c0_11, %c0_12] : memref<256x128xf32, #tpu.memory_space<vmem>>, vector<256x128xf32>
    %cst_13 = arith.constant dense<0.000000e+00> : vector<16x128xf32>
    %19 = tpu.matmul %16, %18, %cst_13 {dimension_numbers = #tpu.dot_dimension_numbers<[1], [0], [0], [1], [0, 0, 1, 1], [], []>} : vector<16x256xf32>, vector<256x128xf32>, vector<16x128xf32> -> vector<16x128xf32>
    %20 = arith.addf %17, %19 : vector<16x128xf32>
    %c0_14 = arith.constant 0 : index
    %c0_15 = arith.constant 0 : index
    %21 = vector.load %arg15[%c0_14, %c0_15] : memref<16x128xf32, #tpu.memory_space<vmem>>, vector<16x128xf32>
    tpu.vector_store %arg15[%c0_14, %c0_15], %20 {strides = array<i32>} : memref<16x128xf32, #tpu.memory_space<vmem>>, vector<16x128xf32>,
    %c1_i32 = arith.constant 1 : i32
    %22 = arith.cmpi eq, %arg1, %c1_i32 : i32
    %23 = arith.extui %22 : i1 to i32
    %c0_i32_16 = arith.constant 0 : i32
    %24 = arith.cmpi ne, %23, %c0_i32_16 : i32
    scf.if %24 {
      %c0_17 = arith.constant 0 : index
      %c5 = arith.constant 5 : index
      %c0_18 = arith.constant 0 : index
      %25 = vector.load %arg3[%c0_17, %c5, %c0_18] : memref<1x6x128xf32, #tpu.memory_space<vmem>>, vector<1x1x128xf32>
      %26 = vector.shape_cast %25 : vector<1x1x128xf32> to vector<1x128xf32>
      %c0_19 = arith.constant 0 : index
      %c0_20 = arith.constant 0 : index
      %27 = vector.load %arg13[%c0_19, %c0_20] : memref<16x128xf32, #tpu.memory_space<vmem>>, vector<16x128xf32>
      %c0_21 = arith.constant 0 : index
      %c0_22 = arith.constant 0 : index
      %28 = vector.load %arg15[%c0_21, %c0_22] : memref<16x128xf32, #tpu.memory_space<vmem>>, vector<16x128xf32>
      %c0_23 = arith.constant 0 : index
      %c0_24 = arith.constant 0 : index
      %29 = vector.load %arg11[%c0_23, %c0_24] : memref<1x128xf32, #tpu.memory_space<vmem>>, vector<1x128xf32>
      %30 = vector.broadcast %29 : vector<1x128xf32> to vector<16x128xf32>
      %31 = arith.addf %28, %30 : vector<16x128xf32>
      %32 = vector.broadcast %26 : vector<1x128xf32> to vector<16x128xf32>
      %33 = arith.mulf %32, %31 : vector<16x128xf32>
      %34 = arith.addf %27, %33 : vector<16x128xf32>
      %c0_25 = arith.constant 0 : index
      %c0_26 = arith.constant 0 : index
      %c0_27 = arith.constant 0 : index
      %35 = vector.load %arg12[%c0_25, %c0_26, %c0_27] : memref<1x16x128xf32, #tpu.memory_space<vmem>>, vector<1x16x128xf32>
      %36 = vector.shape_cast %35 : vector<1x16x128xf32> to vector<16x128xf32>
      %37 = vector.shape_cast %34 : vector<16x128xf32> to vector<1x16x128xf32>
      tpu.vector_store %arg12[%c0_25, %c0_26, %c0_27], %37 {strides = array<i32>} : memref<1x16x128xf32, #tpu.memory_space<vmem>>, vector<1x16x128xf32>,
    } else {
    }
    return
  }
  func.func @transform_0(%arg0: i32, %arg1: i32) -> (i32, i32, i32) {
    %c0_i32 = arith.constant 0 : i32
    %c0_i32_0 = arith.constant 0 : i32
    %c0_i32_1 = arith.constant 0 : i32
    return %arg0, %c0_i32, %c0_i32_0 : i32, i32, i32
  }
  func.func @transform_1(%arg0: i32, %arg1: i32) -> (i32, i32, i32) {
    %c0_i32 = arith.constant 0 : i32
    %c0_i32_0 = arith.constant 0 : i32
    %c0_i32_1 = arith.constant 0 : i32
    return %arg0, %c0_i32, %c0_i32_0 : i32, i32, i32
  }
  func.func @transform_2(%arg0: i32, %arg1: i32) -> (i32, i32) {
    %c0_i32 = arith.constant 0 : i32
    %c0_i32_0 = arith.constant 0 : i32
    %c0_i32_1 = arith.constant 0 : i32
    return %c0_i32, %c0_i32_0 : i32, i32
  }
  func.func @transform_3(%arg0: i32, %arg1: i32) -> (i32, i32) {
    %c0_i32 = arith.constant 0 : i32
    %c0_i32_0 = arith.constant 0 : i32
    %c0_i32_1 = arith.constant 0 : i32
    return %c0_i32, %c0_i32_0 : i32, i32
  }
  func.func @transform_4(%arg0: i32, %arg1: i32) -> (i32, i32) {
    %c0_i32 = arith.constant 0 : i32
    %c0_i32_0 = arith.constant 0 : i32
    %c0_i32_1 = arith.constant 0 : i32
    return %c0_i32, %c0_i32_0 : i32, i32
  }
  func.func @transform_5(%arg0: i32, %arg1: i32) -> (i32, i32) {
    %c0_i32 = arith.constant 0 : i32
    %c0_i32_0 = arith.constant 0 : i32
    %c0_i32_1 = arith.constant 0 : i32
    return %c0_i32, %c0_i32_0 : i32, i32
  }
  func.func @transform_6(%arg0: i32, %arg1: i32) -> (i32, i32) {
    %c0_i32 = arith.constant 0 : i32
    %c0_i32_0 = arith.constant 0 : i32
    return %c0_i32, %arg1 : i32, i32
  }
  func.func @transform_7(%arg0: i32, %arg1: i32) -> (i32, i32) {
    %c0_i32 = arith.constant 0 : i32
    %c0_i32_0 = arith.constant 0 : i32
    return %c0_i32, %arg1 : i32, i32
  }
  func.func @transform_8(%arg0: i32, %arg1: i32) -> (i32, i32) {
    %c0_i32 = arith.constant 0 : i32
    %c0_i32_0 = arith.constant 0 : i32
    return %arg1, %c0_i32 : i32, i32
  }
  func.func @transform_9(%arg0: i32, %arg1: i32) -> (i32, i32) {
    %c0_i32 = arith.constant 0 : i32
    %c0_i32_0 = arith.constant 0 : i32
    %c0_i32_1 = arith.constant 0 : i32
    return %c0_i32, %c0_i32_0 : i32, i32
  }
  func.func @transform_10(%arg0: i32, %arg1: i32) -> (i32, i32, i32) {
    %c0_i32 = arith.constant 0 : i32
    %c0_i32_0 = arith.constant 0 : i32
    %c0_i32_1 = arith.constant 0 : i32
    return %arg0, %c0_i32, %c0_i32_0 : i32, i32, i32
  }
}

</mosaic_0001>

<bundles_post_ra>
// kernel: tpu_custom_call.1
= control target key start
LH: loop header
LB: loop body
LE: loop exit
PB: predicated region body
PF: predicated region fallthrough
CT: control target
= control target key end

     0   :  { %s4187_s0 = inlined_call_operand.hbm [shape: f32[2,16,128], index: 0, kind: input, shape index: {}]   ;;  %s4188_s1 = inlined_call_operand.vmem [shape: f32[2,6,128], index: 1, kind: input, shape index: {}]   ;;  %s4189_s2 = inlined_call_operand.hbm [shape: f32[128,1536], index: 2, kind: input, shape index: {}]   ;;  %s4190_s3 = inlined_call_operand.vmem [shape: f32[1,1536], index: 3, kind: input, shape index: {}]   ;;  %s4191_s4 = inlined_call_operand.hbm [shape: f32[512,128], index: 4, kind: input, shape index: {}]   ;;  %s4192_s5 = inlined_call_operand.vmem [shape: f32[1,128], index: 5, kind: input, shape index: {}]   ;;  %s4193_s6 = inlined_call_operand.hbm [shape: f32[128,512], index: 6, kind: input, shape index: {}]   ;;  %s4194_s7 = inlined_call_operand.vmem [shape: f32[1,512], index: 7, kind: input, shape index: {}]   ;;  %s4195_s8 = inlined_call_operand.hbm [shape: f32[512,128], index: 8, kind: input, shape index: {}]   ;;  %s4196_s9 = inlined_call_operand.vmem [shape: f32[1,128], index: 9, kind: input, shape index: {}]   ;;  %s4197_s10 = inlined_call_operand.hbm [shape: f32[2,16,128], index: 10, kind: output, shape index: {}]  }
   0x1   :  { %4215 = sst [smem:[#allocation30_spill]] %s4188_s1 }
   0x2   :  { %4216 = sst [smem:[#allocation31_spill]] %s4189_s2 }
   0x3   :  { %4217 = sst [smem:[#allocation32_spill]] %s4190_s3 }
   0x4   :  { %4218 = sst [smem:[#allocation33_spill]] %s4191_s4 }
   0x5   :  { %4219 = sst [smem:[#allocation34_spill]] %s4192_s5 }
   0x6   :  { %4220 = sst [smem:[#allocation35_spill]] %s4193_s6 }
   0x7   :  { %4221 = sst [smem:[#allocation36_spill]] %s4194_s7 }
   0x8   :  { %4222 = sst [smem:[#allocation37_spill]] %s4196_s9 }
   0x9   :  { %4223 = sst [smem:[#allocation38_spill]] %s4197_s10 }
   0xa   :  { %15 = vsyncpa [#allocation6], 0 }
   0xb   :  { %17 = vsyncpa [#allocation6 + $0x1], 0 }
   0xc   :  { %18 = vsyncpa [#allocation9], 0 }
   0xd   :  { %19 = vsyncpa [#allocation12], 0 }
   0xe   :  { %21 = vsyncpa [#allocation12 + $0x1], 0 }
   0xf   :  { %22 = vsyncpa [#allocation7], 0 }
  0x10   :  { %24 = vsyncpa [#allocation7 + $0x1], 0  ;;  %s3266_s13 = smov 0   ;;  %s3268_s14 = smov 0  }
  0x11   :  { %s3270_s15 = smov 0   ;;  %s3272_s16 = smov 0  }
  0x12   :  { %s3274_s17 = smov 0   ;;  %s3276_s18 = smov 0  }
  0x13   :  { %s3278_s19 = smov 0   ;;  %s3280_s20 = smov 0  }
  0x14   :  { %s3282_s21 = smov 0   ;;  %s3284_s22 = smov 0  }
  0x15   :  { %s3286_s23 = smov 0  }
  0x16 LB: > { %4224 = sst [smem:[#allocation19_spill]] %s3164_s15  ;;  %s3320_s24 = sadd.s32 4294967295, %s3196_s23   ;;  %s3196_s23 = sphi %s3286_s23, %s30_s23   ;;  %s3192_s22 = sphi %s3284_s22, %s4280_s22   ;;  %s3188_s21 = sphi %s3282_s21, %s4286_s21   ;;  %s3184_s20 = sphi %s3280_s20, %s4278_s20   ;;  %s3180_s19 = sphi %s3278_s19, %s4285_s19   ;;  %s3176_s18 = sphi %s3276_s18, %s4277_s18   ;;  %s3172_s17 = sphi %s3274_s17, %s4284_s17   ;;  %s3168_s16 = sphi %s3272_s16, %s4283_s16   ;;  %s3164_s15 = sphi %s3270_s15, %s4275_s15   ;;  %s3160_s14 = sphi %s3268_s14, %s4282_s14   ;;  %s3156_s13 = sphi %s3266_s13, %s4281_s13  }
  0x17   : > { %4225 = sst [smem:[#allocation20_spill]] %s3176_s18  ;;  %p198_p0 = scmp.ne.s32.totalorder %s3160_s14, %s3156_s13 }
  0x18   : > { %4226 = sst [smem:[#allocation21_spill]] %s3180_s19  ;;  %p63_p1 = scmp.eq.s32.totalorder %s3320_s24, 0 }
  0x19   : > { %4227 = sst [smem:[#allocation22_spill]] %s3184_s20  ;;  %p295_p2 = scmp.eq.s32.totalorder %s3320_s24, 3 }
  0x1a   : > { %4228 = sst [smem:[#allocation23_spill]] %s3192_s22  ;;  %p2627_p3 = scmp.ge.s32.totalorder %s3196_s23, 1 }
  0x1b   : > { %p308_p4 = scmp.lt.s32.totalorder %s3196_s23, 5  ;;  %p3329_p5 = por %p198_p0, %p63_p1 }
  0x1c   : > { %s4232_s2 = sld [smem:[#allocation31_spill]]  ;;  %s3198_s30 = smov [#allocation8]  }
  0x1d   : > { %s4229_s25 = scalar_select %p3329_p5, 1, 0 }
  0x1e   : > { %p3333_p6 = pnand %p2627_p3, %p308_p4  ;;  %s321_s11 = sshll.u32 %s3198_s30, 4  ;;  %s322_s11 = int_to_ptr.vmem [resolvable:$true] %s321_s11 }
  0x1f   : > { %4230 = sst [smem:[#allocation24_spill]] %s4229_s25  ;;  %s3199_s13 = smov 1536  }
  0x20   : > { %p2696_p7 = pneg %p3333_p6  ;;  %s3200_s27 = smov 96  }
  0x21   : > { %s39_s28 = sadd.s32 1, %s3188_s21  ;;  %p57_p9 = scmp.eq.s32.totalorder %s3196_s23, 0 }
  0x22   : > { %s319_s29 = sshll.u32 %s4232_s2, 4  ;;  %p3344_p8 = pnand %p2696_p7, %p63_p1  ;;  %s320_s29 = int_to_ptr.hbm [resolvable:$true] %s319_s29 }
  0x23   : > { %p3352_p10 = scmp.ge.s32.totalorder %s39_s28, 2  ;;  %s185_s30 = sadd.s32 1, %s3164_s15 }
  0x24   : > { %2699 = dma.hbm_to_vmem [thread:$0]  (!%p3344_p8), %s320_s29, 24576, %s322_s11, [#allocation9], %s3199_s13, %s3199_s13, %s3200_s27  }
  0x25   : > { %p192_p11 = scmp.ne.s32.totalorder %s3164_s15, %s3160_s14  ;;  %p4204_p12 = scmp.lt.s32.totalorder %s3196_s23, 4 }
  0x26   : > { %s4288_s28 = smov (%p3352_p10, %s39_s28), 0  ;;  %s387_s29 = sand.u32 1, %s3196_s23  }
  0x27   : > { %4235 = sst [smem:[#allocation25_spill]] %s4288_s28  ;;  %p3366_p13 = por %p192_p11, %p57_p9 }
  0x28   : > { %s182_s11 = ssub.s32 %s3188_s21, %s4288_s28  ;;  %s389_s13 = sand.u32 1, %s3164_s15  }
  0x29   : > { %p183_p0 = scmp.eq.s32.totalorder %s182_s11, 0  ;;  %s3374_s27 = sshll.u32 %s389_s13, 8 }
  0x2a   : > { %s2677_s9 = sshll.u32 %s3188_s21, 4  ;;  %s4238_s6 = sld [smem:[#allocation35_spill]] }
  0x2b   : > { %s3378_s5 = scalar_select %p183_p0, %s3164_s15, %s185_s30  }
  0x2c   : > { %s391_s20 = scalar_lea.vmem [#allocation11], %s3374_s27  ;;  %p3388_p3 = pnand %p4204_p12, %p3366_p13 }
  0x2d   : > { %4237 = sst [smem:[#allocation26_spill]] %s3378_s5  ;;  %s399_s25 = sshll.u32 %s391_s20, 4  ;;  %s400_s25 = int_to_ptr.vmem [resolvable:$true] %s399_s25 }
  0x2e   : > { %s4240_s4 = sld [smem:[#allocation33_spill]]  ;;  %s3395_s3 = scalar_lea.sflag [#allocation12], %s387_s29 }
  0x2f   : > { %s3201_s7 = smov 512   ;;  %s3203_s10 = smov 16  }
  0x30   : > { %s396_s1 = scalar_lea.hbm %s4238_s6, %s2677_s9  ;;  %s3202_s9 = smov 256  }
  0x31   : > { %s397_s19 = sshll.u32 %s396_s1, 4  ;;  %s3204_s20 = smov [#allocation10]   ;;  %s398_s19 = int_to_ptr.hbm [resolvable:$true] %s397_s19 }
  0x32   : > { %2709 = dma.hbm_to_vmem [thread:$0]  (!%p3388_p3), %s398_s19, 4096, %s400_s25, %s3395_s3, %s3201_s7, %s3202_s9, %s3203_s10  }
  0x33   : > { %s338_s30 = sshll.u32 %s3204_s20, 4  ;;  %s4205_s29 = smov 128   ;;  %s339_s30 = int_to_ptr.vmem [resolvable:$true] %s338_s30 }
  0x34   : > { %s336_s1 = sshll.u32 %s4240_s4, 4  ;;  %s4207_s13 = smov 8   ;;  %s337_s1 = int_to_ptr.hbm [resolvable:$true] %s336_s1 }
  0x35   : > { %2702 = dma.hbm_to_vmem [thread:$0]  (!%p3344_p8), %s337_s1, 8192, %s339_s30, [#allocation9], %s4205_s29, %s4205_s29, %s4207_s13  }
  0x36   : > { %s2626_s4 = sadd.s32 4294967294, %s3196_s23   ;;  %s42_s6 = sadd.s32 1, %s3192_s22 }
  0x37   : > { %s4290_s6 = smov (!%p3352_p10, %s42_s6), %s3192_s22  ;;  %s49_s19 = sadd.s32 1, %s3176_s18 }
  0x38   : > { %p56_p4 = scmp.ne.s32.totalorder %s3176_s18, %s3172_s17  ;;  %p44_p7 = scmp.ge.s32.totalorder %s4290_s6, 2 }
  0x39   : > { %p62_p11 = scmp.ne.s32.totalorder %s3172_s17, %s3168_s16  ;;  %s358_s7 = sand.u32 1, %s3176_s18  }
  0x3a   : > { %p3417_p13 = por %p57_p9, %p56_p4  ;;  %p3423_p0 = por %p295_p2, %p56_p4 }
  0x3b   : > { %s4292_s6 = smov (%p44_p7, %s4290_s6), 0  ;;  %p3431_p8 = por %p63_p1, %p62_p11 }
  0x3c   : > { %4243 = sst [smem:[#allocation27_spill]] %s4292_s6  ;;  %p301_p9 = scmp.eq.s32.totalorder %s2626_s4, 3 }
  0x3d   : > { %s46_s1 = ssub.s32 %s3192_s22, %s4292_s6  ;;  %s2631_s10 = sshll.u32 %s358_s7, 4 }
  0x3e   : > { %p47_p10 = scmp.eq.s32.totalorder %s46_s1, 0  ;;  %p3438_p12 = por %p301_p9, %p62_p11 }
  0x3f   : > { %s2676_s30 = sshll.u32 %s3192_s22, 4  ;;  %s362_s5 = scalar_lea.vmem [#allocation5], %s2631_s10 }
  0x40   : > { %s4245_s9 = scalar_select %p3438_p12, 1, 0 }
  0x41   : > { %s3443_s20 = scalar_select %p47_p10, %s3176_s18, %s49_s19  }
  0x42   : > { %4246 = sst [smem:[#allocation28_spill]] %s4245_s9  ;;  %s367_s28 = scalar_lea.hbm %s4187_s0, %s2676_s30 }
  0x43   : > { %4247 = sst [smem:[#allocation29_spill]] %s3443_s20  ;;  %s370_s4 = sshll.u32 %s362_s5, 4  ;;  %s371_s4 = int_to_ptr.vmem [resolvable:$true] %s370_s4 }
  0x44   : > { %s368_s6 = sshll.u32 %s367_s28, 4  ;;  %p4248_p2 = scmp.lt.s32.totalorder %s3196_s23, 4  ;;  %s369_s6 = int_to_ptr.hbm [resolvable:$true] %s368_s6 }
  0x45   : > { %s2678_s1 = sshll.u32 %s3188_s21, 8  ;;  %s359_s22 = scalar_lea.sflag [#allocation6], %s358_s7 }
  0x46   : > { %p2704_p4 = pnand %p4248_p2, %p3417_p13  ;;  %s426_s19 = scalar_lea.hbm %s4195_s8, %s2678_s1 }
  0x47   : > { %s4249_s20 = smov 8   ;;  %s4250_s18 = smov 128  }
  0x48   : > { %2706 = dma.hbm_to_vmem [thread:$0]  (!%p2704_p4), %s369_s6, 256, %s371_s4, %s359_s22, %s4250_s18, %s4250_s18, %s4249_s20  }
  0x49   : > { %s427_s29 = sshll.u32 %s426_s19, 4  ;;  %s421_s13 = scalar_lea.vmem [#allocation13], %s3374_s27  ;;  %s428_s29 = int_to_ptr.hbm [resolvable:$true] %s427_s29 }
  0x4a   : > { %s429_s10 = sshll.u32 %s421_s13, 4  ;;  %441 = sbr.rel (%p3333_p6) target bundleno = 2028 (0x7ec), region = 60  ;;  %s430_s10 = int_to_ptr.vmem [resolvable:$true] %s429_s10 }
  0x4b   : > { %2712 = dma.hbm_to_vmem [thread:$0]  (!%p3388_p3), %s428_s29, 4096, %s430_s10, %s3395_s3, %s4250_s18, %s4250_s18, %s4249_s20  }
  0x4c   : > { %s3470_s5 = sand.u32 (!%p3333_p6), 1, %s3172_s17  }
  0x4d   : > { %s2641_s6 = sshll.u32 (!%p3333_p6), %s3470_s5, 4  ;;  %s444_s15 = scalar_lea.sflag (!%p3333_p6), [#allocation6], %s3470_s5 }
  0x4e   : > { %s3474_s22 = scalar_lea.vmem (!%p3333_p6), [#allocation5], %s2641_s6 }
  0x4f   : > { %3139 = dma.done.wait (%p3431_p8), %s444_s15, 256  }
  0x50   : > { %3141 = vsyncadd (%p3431_p8), %s444_s15, 4294967040 }
  0x51   : > { %3143 = dma.done.wait (%p63_p1), [#allocation9], 32768  }
  0x52   : > { %3145 = vsyncadd (%p63_p1), [#allocation9], 4294934528  ;;  %s463_s26 = sand.u32 1, %s3320_s24   ;;  %s465_s28 = sand.u32 1, %s3160_s14  }
  0x53   : > { %s2644_s27 = sshll.u32 %s465_s28, 8  ;;  %s464_s11 = scalar_lea.sflag [#allocation12], %s463_s26 }
  0x54   : > { %s3486_s3 = scalar_lea.vmem [#allocation11], %s2644_s27 }
  0x55   : > { %3147 = dma.done.wait (%p3329_p5), %s464_s11, 8192  }
  0x56   : > { %3149 = vsyncadd (%p3329_p5), %s464_s11, 4294959104  ;;  %s4252_s25 = sld [smem:[#allocation22_spill]]  ;;  %s3506_s10 = scalar_lea.vmem [#allocation13], %s2644_s27 }
  0x57   : > { %s4253_s2 = sld [smem:[#allocation21_spill]]  ;;  %s3508_s15 = scalar_lea.vmem [#allocation14], %s2641_s6 }
  0x58   : > { %s4254_s30 = sld [smem:[#allocation30_spill]] }
  0x59   : > { %s4255_s29 = sld [smem:[#allocation36_spill]] }
  0x5c   : > { %p533_p6 = scmp.lt.s32.totalorder %s4252_s25, 1 }
  0x5d   : > { %s2648_s7 = sshll.u32 %s4253_s2, 1  ;;  %p2649_p5 = scmp.ne.s32.totalorder %s4253_s2, 0 }
  0x5e   : > { %p539_p1 = scmp.lt.s32.totalorder %s2648_s7, 3  ;;  %s4294_s25 = smov (!%p533_p6, %s4252_s25), 1 }
  0x5f   : > { %s2647_s24 = sshll.u32 %s4294_s25, 3  ;;  %547 = sbr.rel (%p2649_p5) target bundleno = 1633 (0x661), region = 84 }
  0x60   : > { %s4296_s7 = smov (!%p539_p1, %s2648_s7), 3  ;;  %s3500_s4 = scalar_lea.vmem %s4254_s30, %s2647_s24 }
  0x61   : > { %s541_s13 = scalar_lea.vmem %s4255_s29, %s4296_s7  ;;  %s4256_s26 = sld [smem:[#allocation32_spill]] (!%p2649_p5) }
  0x62   : > { %s4267_s2 = sld [smem:[#allocation34_spill]] (!%p2649_p5) }
  0x64   : > { %v3512_v0 = vld [vmem:[%s3474_s22] sm:$0xff]  ;;  %v3516_v1 = vld [vmem:[%s3474_s22 + $0x8] sm:$0xff]  ;;  %v3207_v2 = vmov 128.0   ;;  %vm1196_vm7 = vcmask 64512  }
  0x65   : > { %555 = vadd.xlane.f32.xlu0 %v3512_v0  ;;  %2830 = vrcp.f32 %v3207_v2  ;;  %v788_v5 = vld [vmem:[#allocation8 + $0x5a0] sm:$0xff]  ;;  %v789_v6 = vld [vmem:[#allocation8 + $0x5a8] sm:$0xff]  ;;  %v790_v7 = vld [vmem:[#allocation8 + $0x5b0] sm:$0xff] }
  0x66   : > { %828 = vmatpush.msra.mxu0 %v788_v5  ;;  %851 = vmatpush.msra.mxu1 %v789_v6  ;;  %v791_v8 = vld [vmem:[#allocation8 + $0x5b8] sm:$0xff]  ;;  %v776_v9 = vld [vmem:[#allocation8 + $0x540] sm:$0xff]  ;;  %v777_v10 = vld [vmem:[#allocation8 + $0x548] sm:$0xff] }
  0x67   : > { %874 = vmatpush.msra.mxu2 %v790_v7  ;;  %897 = vmatpush.msra.mxu3 %v791_v8  ;;  %v778_v11 = vld [vmem:[#allocation8 + $0x550] sm:$0xff]  ;;  %v779_v12 = vld [vmem:[#allocation8 + $0x558] sm:$0xff]  ;;  %v764_v13 = vld [vmem:[#allocation8 + $0x4e0] sm:$0xff] }
  0x68   : > { %829 = vmatpush.msra.mxu0 %v776_v9  ;;  %852 = vmatpush.msra.mxu1 %v777_v10  ;;  %v765_v15 = vld [vmem:[#allocation8 + $0x4e8] sm:$0xff]  ;;  %v766_v16 = vld [vmem:[#allocation8 + $0x4f0] sm:$0xff]  ;;  %v767_v17 = vld [vmem:[#allocation8 + $0x4f8] sm:$0xff] }
  0x69   : > { %875 = vmatpush.msra.mxu2 %v778_v11  ;;  %898 = vmatpush.msra.mxu3 %v779_v12  ;;  %v752_v18 = vld [vmem:[#allocation8 + $0x480] sm:$0xff]  ;;  %v753_v19 = vld [vmem:[#allocation8 + $0x488] sm:$0xff]  ;;  %v754_v20 = vld [vmem:[#allocation8 + $0x490] sm:$0xff] }
  0x6a   : > { %830 = vmatpush.msra.mxu0 %v764_v13  ;;  %853 = vmatpush.msra.mxu1 %v765_v15  ;;  %v755_v21 = vld [vmem:[#allocation8 + $0x498] sm:$0xff]  ;;  %v740_v22 = vld [vmem:[#allocation8 + $0x420] sm:$0xff]  ;;  %v741_v23 = vld [vmem:[#allocation8 + $0x428] sm:$0xff] }
  0x6b   : > { %v3519_v3 = vpop.eup %2830  ;;  %876 = vmatpush.msra.mxu2 %v766_v16  ;;  %899 = vmatpush.msra.mxu3 %v767_v17  ;;  %v742_v25 = vld [vmem:[#allocation8 + $0x430] sm:$0xff]  ;;  %v743_v26 = vld [vmem:[#allocation8 + $0x438] sm:$0xff]  ;;  %v728_v27 = vld [vmem:[#allocation8 + $0x3c0] sm:$0xff] }
  0x6c   : > { %v560_v4 = vmul.f32 128.0, %v3519_v3  ;;  %831 = vmatpush.msra.mxu0 %v752_v18  ;;  %854 = vmatpush.msra.mxu1 %v753_v19  ;;  %v729_v28 = vld [vmem:[#allocation8 + $0x3c8] sm:$0xff]  ;;  %v730_v29 = vld [vmem:[#allocation8 + $0x3d0] sm:$0xff]  ;;  %v731_v30 = vld [vmem:[#allocation8 + $0x3d8] sm:$0xff]  ;;  %vm564_vm0 = vweird.f32 %v3519_v3 }
  0x6d   : > { %557 = vadd.xlane.f32.xlu0 %v3516_v1  ;;  %877 = vmatpush.msra.mxu2 %v754_v20  ;;  %v716_v31 = vld [vmem:[#allocation8 + $0x360] sm:$0xff]  ;;  %v717_v32 = vld [vmem:[#allocation8 + $0x368] sm:$0xff]  ;;  %v718_v34 = vld [vmem:[#allocation8 + $0x370] sm:$0xff] }
  0x6e   : > { %v561_v14 = vsub.f32 1.0, %v560_v4  ;;  %900 = vmatpush.msra.mxu3 %v755_v21  ;;  %832 = vmatpush.msra.mxu0 %v740_v22  ;;  %v719_v35 = vld [vmem:[#allocation8 + $0x378] sm:$0xff]  ;;  %v704_v36 = vld [vmem:[#allocation8 + $0x300] sm:$0xff]  ;;  %v705_v37 = vld [vmem:[#allocation8 + $0x308] sm:$0xff] }
  0x6f   : > { %855 = vmatpush.msra.mxu1 %v741_v23  ;;  %878 = vmatpush.msra.mxu2 %v742_v25  ;;  %v706_v38 = vld [vmem:[#allocation8 + $0x310] sm:$0xff]  ;;  %v707_v39 = vld [vmem:[#allocation8 + $0x318] sm:$0xff]  ;;  %v692_v40 = vld [vmem:[#allocation8 + $0x2a0] sm:$0xff] }
  0x70   : > { %v562_v24 = vmul.f32 %v3519_v3, %v561_v14  ;;  %901 = vmatpush.msra.mxu3 %v743_v26  ;;  %833 = vmatpush.msra.mxu0 %v728_v27  ;;  %v693_v41 = vld [vmem:[#allocation8 + $0x2a8] sm:$0xff]  ;;  %v694_v43 = vld [vmem:[#allocation8 + $0x2b0] sm:$0xff]  ;;  %v695_v44 = vld [vmem:[#allocation8 + $0x2b8] sm:$0xff] }
  0x71   : > { %856 = vmatpush.msra.mxu1 %v729_v28  ;;  %879 = vmatpush.msra.mxu2 %v730_v29  ;;  %v680_v45 = vld [vmem:[#allocation8 + $0x240] sm:$0xff]  ;;  %v681_v46 = vld [vmem:[#allocation8 + $0x248] sm:$0xff]  ;;  %v682_v48 = vld [vmem:[#allocation8 + $0x250] sm:$0xff] }
  0x72   : > { %v563_v33 = vadd.f32 %v3519_v3, %v562_v24  ;;  %902 = vmatpush.msra.mxu3 %v731_v30  ;;  %834 = vmatpush.msra.mxu0 %v716_v31  ;;  %v683_v49 = vld [vmem:[#allocation8 + $0x258] sm:$0xff]  ;;  %v668_v51 = vld [vmem:[#allocation8 + $0x1e0] sm:$0xff]  ;;  %v669_v52 = vld [vmem:[#allocation8 + $0x1e8] sm:$0xff] }
  0x73   : > { %857 = vmatpush.msra.mxu1 %v717_v32  ;;  %880 = vmatpush.msra.mxu2 %v718_v34  ;;  %v670_v53 = vld [vmem:[#allocation8 + $0x1f0] sm:$0xff]  ;;  %v671_v54 = vld [vmem:[#allocation8 + $0x1f8] sm:$0xff]  ;;  %v656_v56 = vld [vmem:[#allocation8 + $0x180] sm:$0xff] }
  0x74   : > { %903 = vmatpush.msra.mxu3 %v719_v35  ;;  %v3526_v42 = vsel %vm564_vm0, %v3519_v3, %v563_v33  ;;  %835 = vmatpush.msra.mxu0 %v704_v36  ;;  %v657_v57 = vld [vmem:[#allocation8 + $0x188] sm:$0xff]  ;;  %v658_v58 = vld [vmem:[#allocation8 + $0x190] sm:$0xff]  ;;  %v659_v60 = vld [vmem:[#allocation8 + $0x198] sm:$0xff] }
  0x75   : > { %858 = vmatpush.msra.mxu1 %v705_v37  ;;  %881 = vmatpush.msra.mxu2 %v706_v38  ;;  %v644_v61 = vld [vmem:[#allocation8 + $0x120] sm:$0xff]  ;;  %v645_v62 = vld [vmem:[#allocation8 + $0x128] sm:$0xff]  ;;  %v646_v63 = vld [vmem:[#allocation8 + $0x130] sm:$0xff] }
  0x76   : > { %904 = vmatpush.msra.mxu3 %v707_v39  ;;  %836 = vmatpush.msra.mxu0 %v692_v40  ;;  %v632_v2 = vld [vmem:[#allocation8 + $0xc0] sm:$0xff]  ;;  %v633_v4 = vld [vmem:[#allocation8 + $0xc8] sm:$0xff]  ;;  %v634_v5 = vld [vmem:[#allocation8 + $0xd0] sm:$0xff] }
  0x77   : > { %859 = vmatpush.msra.mxu1 %v693_v41  ;;  %882 = vmatpush.msra.mxu2 %v694_v43  ;;  %v635_v7 = vld [vmem:[#allocation8 + $0xd8] sm:$0xff]  ;;  %v620_v8 = vld [vmem:[#allocation8 + $0x60] sm:$0xff]  ;;  %v621_v9 = vld [vmem:[#allocation8 + $0x68] sm:$0xff] }
  0x78   : > { %905 = vmatpush.msra.mxu3 %v695_v44  ;;  %837 = vmatpush.msra.mxu0 %v680_v45  ;;  %v622_v10 = vld [vmem:[#allocation8 + $0x70] sm:$0xff]  ;;  %v623_v12 = vld [vmem:[#allocation8 + $0x78] sm:$0xff]  ;;  %v608_v13 = vld [vmem:[#allocation8] sm:$0xff] }
  0x79   : > { %860 = vmatpush.msra.mxu1 %v681_v46  ;;  %883 = vmatpush.msra.mxu2 %v682_v48  ;;  %v609_v14 = vld [vmem:[#allocation8 + $0x8] sm:$0xff]  ;;  %v610_v16 = vld [vmem:[#allocation8 + $0x10] sm:$0xff]  ;;  %v611_v17 = vld [vmem:[#allocation8 + $0x18] sm:$0xff] }
  0x7a   : > { %906 = vmatpush.msra.mxu3 %v683_v49  ;;  %838 = vmatpush.msra.mxu0 %v668_v51  ;;  %v792_v18 = vld [vmem:[#allocation8 + $0x5c0] sm:$0xff]  ;;  %v793_v19 = vld [vmem:[#allocation8 + $0x5c8] sm:$0xff]  ;;  %v795_v20 = vld [vmem:[#allocation8 + $0x5d8] sm:$0xff] }
  0x7b   : > { %861 = vmatpush.msra.mxu1 %v669_v52  ;;  %884 = vmatpush.msra.mxu2 %v670_v53  ;;  %v780_v21 = vld [vmem:[#allocation8 + $0x560] sm:$0xff]  ;;  %v781_v22 = vld [vmem:[#allocation8 + $0x568] sm:$0xff]  ;;  %v782_v23 = vld [vmem:[#allocation8 + $0x570] sm:$0xff] }
  0x7c   : > { %907 = vmatpush.msra.mxu3 %v671_v54  ;;  %839 = vmatpush.msra.mxu0 %v656_v56  ;;  %v783_v24 = vld [vmem:[#allocation8 + $0x578] sm:$0xff]  ;;  %v768_v25 = vld [vmem:[#allocation8 + $0x500] sm:$0xff]  ;;  %v769_v26 = vld [vmem:[#allocation8 + $0x508] sm:$0xff] }
  0x7d   : > { %862 = vmatpush.msra.mxu1 %v657_v57  ;;  %885 = vmatpush.msra.mxu2 %v658_v58  ;;  %v770_v27 = vld [vmem:[#allocation8 + $0x510] sm:$0xff]  ;;  %v771_v28 = vld [vmem:[#allocation8 + $0x518] sm:$0xff]  ;;  %v756_v29 = vld [vmem:[#allocation8 + $0x4a0] sm:$0xff] }
  0x7e   : > { %908 = vmatpush.msra.mxu3 %v659_v60  ;;  %840 = vmatpush.msra.mxu0 %v644_v61  ;;  %v757_v30 = vld [vmem:[#allocation8 + $0x4a8] sm:$0xff]  ;;  %v758_v31 = vld [vmem:[#allocation8 + $0x4b0] sm:$0xff]  ;;  %v759_v32 = vld [vmem:[#allocation8 + $0x4b8] sm:$0xff] }
  0x7f   : > { %863 = vmatpush.msra.mxu1 %v645_v62  ;;  %886 = vmatpush.msra.mxu2 %v646_v63  ;;  %v744_v33 = vld [vmem:[#allocation8 + $0x440] sm:$0xff]  ;;  %v745_v34 = vld [vmem:[#allocation8 + $0x448] sm:$0xff]  ;;  %v746_v35 = vld [vmem:[#allocation8 + $0x450] sm:$0xff] }
  0x80   : > { %841 = vmatpush.msra.mxu0 %v632_v2  ;;  %v747_v36 = vld [vmem:[#allocation8 + $0x458] sm:$0xff]  ;;  %v732_v37 = vld [vmem:[#allocation8 + $0x3e0] sm:$0xff]  ;;  %v733_v38 = vld [vmem:[#allocation8 + $0x3e8] sm:$0xff] }
  0x81   : > { %864 = vmatpush.msra.mxu1 %v633_v4  ;;  %887 = vmatpush.msra.mxu2 %v634_v5  ;;  %v734_v39 = vld [vmem:[#allocation8 + $0x3f0] sm:$0xff]  ;;  %v735_v40 = vld [vmem:[#allocation8 + $0x3f8] sm:$0xff]  ;;  %v720_v41 = vld [vmem:[#allocation8 + $0x380] sm:$0xff] }
  0x82   : > { %842 = vmatpush.msra.mxu0 %v620_v8  ;;  %v721_v43 = vld [vmem:[#allocation8 + $0x388] sm:$0xff]  ;;  %v722_v44 = vld [vmem:[#allocation8 + $0x390] sm:$0xff]  ;;  %v723_v45 = vld [vmem:[#allocation8 + $0x398] sm:$0xff] }
  0x83   : > { %865 = vmatpush.msra.mxu1 %v621_v9  ;;  %888 = vmatpush.msra.mxu2 %v622_v10  ;;  %v708_v46 = vld [vmem:[#allocation8 + $0x320] sm:$0xff]  ;;  %v710_v48 = vld [vmem:[#allocation8 + $0x330] sm:$0xff]  ;;  %v711_v49 = vld [vmem:[#allocation8 + $0x338] sm:$0xff] }
  0x84   : > { %843 = vmatpush.msra.mxu0 %v608_v13  ;;  %v697_v51 = vld [vmem:[#allocation8 + $0x2c8] sm:$0xff]  ;;  %v698_v52 = vld [vmem:[#allocation8 + $0x2d0] sm:$0xff]  ;;  %v699_v53 = vld [vmem:[#allocation8 + $0x2d8] sm:$0xff] }
  0x85   : > { %866 = vmatpush.msra.mxu1 %v609_v14  ;;  %889 = vmatpush.msra.mxu2 %v610_v16  ;;  %v684_v54 = vld [vmem:[#allocation8 + $0x260] sm:$0xff]  ;;  %v685_v56 = vld [vmem:[#allocation8 + $0x268] sm:$0xff]  ;;  %v686_v57 = vld [vmem:[#allocation8 + $0x270] sm:$0xff] }
  0x86   : > { %920 = vmatpush.msrb.mxu0 %v792_v18  ;;  %v687_v58 = vld [vmem:[#allocation8 + $0x278] sm:$0xff]  ;;  %v673_v60 = vld [vmem:[#allocation8 + $0x208] sm:$0xff]  ;;  %v674_v61 = vld [vmem:[#allocation8 + $0x210] sm:$0xff] }
  0x87   : > { %943 = vmatpush.msrb.mxu1 %v793_v19  ;;  %v675_v62 = vld [vmem:[#allocation8 + $0x218] sm:$0xff]  ;;  %v660_v63 = vld [vmem:[#allocation8 + $0x1a0] sm:$0xff]  ;;  %v662_v2 = vld [vmem:[#allocation8 + $0x1b0] sm:$0xff] }
  0x88   : > { %921 = vmatpush.msrb.mxu0 %v780_v21  ;;  %v648_v4 = vld [vmem:[#allocation8 + $0x140] sm:$0xff]  ;;  %v649_v5 = vld [vmem:[#allocation8 + $0x148] sm:$0xff]  ;;  %v638_v10 = vld [vmem:[#allocation8 + $0xf0] sm:$0xff] }
  0x89   : > { %944 = vmatpush.msrb.mxu1 %v781_v22  ;;  %v636_v8 = vld [vmem:[#allocation8 + $0xe0] sm:$0xff]  ;;  %v637_v9 = vld [vmem:[#allocation8 + $0xe8] sm:$0xff]  ;;  %v627_v16 = vld [vmem:[#allocation8 + $0x98] sm:$0xff] }
  0x8a   : > { %922 = vmatpush.msrb.mxu0 %v768_v25  ;;  %v624_v13 = vld [vmem:[#allocation8 + $0x80] sm:$0xff]  ;;  %v625_v14 = vld [vmem:[#allocation8 + $0x88] sm:$0xff]  ;;  %v614_v19 = vld [vmem:[#allocation8 + $0x30] sm:$0xff] }
  0x8b   : > { %945 = vmatpush.msrb.mxu1 %v769_v26  ;;  %v613_v18 = vld [vmem:[#allocation8 + $0x28] sm:$0xff] }
  0x8c   : > { %923 = vmatpush.msrb.mxu0 %v756_v29 }
  0x8d   : > { %946 = vmatpush.msrb.mxu1 %v757_v30 }
  0x8e   : > { %924 = vmatpush.msrb.mxu0 %v744_v33 }
  0x8f   : > { %947 = vmatpush.msrb.mxu1 %v745_v34  ;;  %v2824_v34 = vld [vmem:[%s3500_s4] ss:$0 sm:$0xff] }
  0x90   : > { %925 = vmatpush.msrb.mxu0 %v732_v37  ;;  %v2825_v37 = vld [vmem:[%s3500_s4 + $0x1] ss:$0 sm:$0xff] }
  0x91   : > { %948 = vmatpush.msrb.mxu1 %v733_v38 }
  0x92   : > { %926 = vmatpush.msrb.mxu0 %v720_v41 }
  0x93   : > { %949 = vmatpush.msrb.mxu1 %v721_v43 }
  0x94   : > { %927 = vmatpush.msrb.mxu0 %v708_v46  ;;  %v797_v46 = vld [vmem:[#allocation8 + $0x5e8] sm:$0xff] }
  0xd8   : > { %v556_v47 = vpop.xlane.xlu0 %555 }
  0xd9   : > { %v566_v50 = vmul.f32 %v3526_v42, %v556_v47  ;;  %v709_v47 = vld [vmem:[#allocation8 + $0x328] sm:$0xff] }
  0xda   : > { %950 = vmatpush.msrb.mxu1 %v709_v47  ;;  %v798_v47 = vld [vmem:[#allocation8 + $0x5f0] sm:$0xff] }
  0xdb   : > { %v3530_v55 = vsub.f32 %v3512_v0, %v566_v50  ;;  %v647_v0 = vld [vmem:[#allocation8 + $0x138] sm:$0xff]  ;;  %v696_v50 = vld [vmem:[#allocation8 + $0x2c0] sm:$0xff] }
  0xdc   : > { %909 = vmatpush.msra.mxu3 %v647_v0  ;;  %928 = vmatpush.msrb.mxu0 %v696_v50  ;;  %v661_v0 = vld [vmem:[#allocation8 + $0x1a8] sm:$0xff] }
  0xdd   : > { %v570_v59 = vmul.f32 %v3530_v55, %v3530_v55  ;;  %951 = vmatpush.msrb.mxu1 %v697_v51  ;;  %v785_v50 = vld [vmem:[#allocation8 + $0x588] sm:$0xff] }
  0xde   : > { %910 = vmatpush.msra.mxu3 %v635_v7  ;;  %929 = vmatpush.msrb.mxu0 %v684_v54  ;;  %v651_v7 = vld [vmem:[#allocation8 + $0x158] sm:$0xff]  ;;  %v772_v54 = vld [vmem:[#allocation8 + $0x520] sm:$0xff] }
  0xdf   : > { %572 = vadd.xlane.f32.xlu1 %v570_v59  ;;  %952 = vmatpush.msrb.mxu1 %v685_v56  ;;  %v672_v59 = vld [vmem:[#allocation8 + $0x200] sm:$0xff]  ;;  %v773_v56 = vld [vmem:[#allocation8 + $0x528] sm:$0xff] }
  0xe0   : > { %v558_v3 = vpop.xlane.xlu0 %557  ;;  %911 = vmatpush.msra.mxu3 %v623_v12  ;;  %930 = vmatpush.msrb.mxu0 %v672_v59  ;;  %v639_v12 = vld [vmem:[#allocation8 + $0xf8] sm:$0xff] }
  0xe1   : > { %v567_v6 = vmul.f32 %v3526_v42, %v558_v3  ;;  %953 = vmatpush.msrb.mxu1 %v673_v60  ;;  %v663_v3 = vld [vmem:[#allocation8 + $0x1b8] sm:$0xff]  ;;  %v760_v60 = vld [vmem:[#allocation8 + $0x4c0] sm:$0xff] }
  0xe2   : > { %912 = vmatpush.msra.mxu3 %v611_v17  ;;  %931 = vmatpush.msrb.mxu0 %v660_v63  ;;  %v612_v17 = vld [vmem:[#allocation8 + $0x20] sm:$0xff]  ;;  %v775_v59 = vld [vmem:[#allocation8 + $0x538] sm:$0xff] }
  0xe3   : > { %v3536_v11 = vsub.f32 %v3516_v1, %v567_v6  ;;  %v794_v1 = vld [vmem:[#allocation8 + $0x5d0] sm:$0xff]  ;;  %954 = vmatpush.msrb.mxu1 %v661_v0  ;;  %v763_v63 = vld [vmem:[#allocation8 + $0x4d8] sm:$0xff]  ;;  %v748_v0 = vld [vmem:[#allocation8 + $0x460] sm:$0xff] }
  0xe4   : > { %966 = vmatpush.msrb.mxu2 %v794_v1  ;;  %989 = vmatpush.msrb.mxu3 %v795_v20  ;;  %v650_v6 = vld [vmem:[#allocation8 + $0x150] sm:$0xff]  ;;  %v615_v1 = vld [vmem:[#allocation8 + $0x38] sm:$0xff] }
  0xe5   : > { %v571_v15 = vmul.f32 %v3536_v11, %v3536_v11  ;;  %932 = vmatpush.msrb.mxu0 %v648_v4  ;;  %955 = vmatpush.msrb.mxu1 %v649_v5  ;;  %v751_v4 = vld [vmem:[#allocation8 + $0x478] sm:$0xff]  ;;  %v736_v5 = vld [vmem:[#allocation8 + $0x400] sm:$0xff] }
  0xe6   : > { %967 = vmatpush.msrb.mxu2 %v782_v23  ;;  %990 = vmatpush.msrb.mxu3 %v783_v24 }
  0xe7   : > { %574 = vadd.xlane.f32.xlu1 %v571_v15  ;;  %933 = vmatpush.msrb.mxu0 %v636_v8  ;;  %v626_v15 = vld [vmem:[#allocation8 + $0x90] sm:$0xff]  ;;  %v739_v8 = vld [vmem:[#allocation8 + $0x418] sm:$0xff] }
  0xe8   : > { %968 = vmatpush.msrb.mxu2 %v770_v27  ;;  %991 = vmatpush.msrb.mxu3 %v771_v28 }
  0xe9   : > { %956 = vmatpush.msrb.mxu1 %v637_v9  ;;  %934 = vmatpush.msrb.mxu0 %v624_v13  ;;  %v724_v9 = vld [vmem:[#allocation8 + $0x3a0] sm:$0xff]  ;;  %v727_v13 = vld [vmem:[#allocation8 + $0x3b8] sm:$0xff] }
  0xea   : > { %969 = vmatpush.msrb.mxu2 %v758_v31  ;;  %992 = vmatpush.msrb.mxu3 %v759_v32 }
  0xeb   : > { %957 = vmatpush.msrb.mxu1 %v625_v14  ;;  %935 = vmatpush.msrb.mxu0 %v612_v17  ;;  %v712_v14 = vld [vmem:[#allocation8 + $0x340] sm:$0xff]  ;;  %v715_v17 = vld [vmem:[#allocation8 + $0x358] sm:$0xff] }
  0xec   : > { %970 = vmatpush.msrb.mxu2 %v746_v35  ;;  %993 = vmatpush.msrb.mxu3 %v747_v36 }
  0xed   : > { %958 = vmatpush.msrb.mxu1 %v613_v18  ;;  %v700_v18 = vld [vmem:[#allocation8 + $0x2e0] sm:$0xff] }
  0xee   : > { %971 = vmatpush.msrb.mxu2 %v734_v39  ;;  %994 = vmatpush.msrb.mxu3 %v735_v40 }
  0xf0   : > { %972 = vmatpush.msrb.mxu2 %v722_v44  ;;  %995 = vmatpush.msrb.mxu3 %v723_v45  ;;  %v796_v45 = vld [vmem:[#allocation8 + $0x5e0] sm:$0xff] }
  0xf2   : > { %973 = vmatpush.msrb.mxu2 %v710_v48  ;;  %996 = vmatpush.msrb.mxu3 %v711_v49  ;;  %v799_v48 = vld [vmem:[#allocation8 + $0x5f8] sm:$0xff] }
  0xf4   : > { %974 = vmatpush.msrb.mxu2 %v698_v52  ;;  %997 = vmatpush.msrb.mxu3 %v699_v53  ;;  %v786_v52 = vld [vmem:[#allocation8 + $0x590] sm:$0xff]  ;;  %v787_v53 = vld [vmem:[#allocation8 + $0x598] sm:$0xff] }
  0xf6   : > { %975 = vmatpush.msrb.mxu2 %v686_v57  ;;  %998 = vmatpush.msrb.mxu3 %v687_v58  ;;  %v774_v58 = vld [vmem:[#allocation8 + $0x530] sm:$0xff] }
  0xf8   : > { %976 = vmatpush.msrb.mxu2 %v674_v61  ;;  %999 = vmatpush.msrb.mxu3 %v675_v62  ;;  %v761_v61 = vld [vmem:[#allocation8 + $0x4c8] sm:$0xff] }
  0xfa   : > { %977 = vmatpush.msrb.mxu2 %v662_v2  ;;  %1000 = vmatpush.msrb.mxu3 %v663_v3  ;;  %v749_v2 = vld [vmem:[#allocation8 + $0x468] sm:$0xff]  ;;  %v750_v3 = vld [vmem:[#allocation8 + $0x470] sm:$0xff] }
  0xfc   : > { %978 = vmatpush.msrb.mxu2 %v650_v6  ;;  %1001 = vmatpush.msrb.mxu3 %v651_v7  ;;  %v737_v6 = vld [vmem:[#allocation8 + $0x408] sm:$0xff]  ;;  %v738_v7 = vld [vmem:[#allocation8 + $0x410] sm:$0xff] }
  0xfe   : > { %979 = vmatpush.msrb.mxu2 %v638_v10  ;;  %1002 = vmatpush.msrb.mxu3 %v639_v12  ;;  %v725_v10 = vld [vmem:[#allocation8 + $0x3a8] sm:$0xff]  ;;  %v726_v12 = vld [vmem:[#allocation8 + $0x3b0] sm:$0xff] }
 0x100   : > { %980 = vmatpush.msrb.mxu2 %v626_v15  ;;  %1003 = vmatpush.msrb.mxu3 %v627_v16  ;;  %v713_v15 = vld [vmem:[#allocation8 + $0x348] sm:$0xff]  ;;  %v714_v16 = vld [vmem:[#allocation8 + $0x350] sm:$0xff] }
 0x102   : > { %981 = vmatpush.msrb.mxu2 %v614_v19  ;;  %1004 = vmatpush.msrb.mxu3 %v615_v1  ;;  %v701_v19 = vld [vmem:[#allocation8 + $0x2e8] sm:$0xff]  ;;  %v702_v1 = vld [vmem:[#allocation8 + $0x2f0] sm:$0xff] }
 0x152   : > { %v573_v20 = vpop.xlane.xlu1 %572 }
 0x153   : > { %v576_v21 = vmul.f32 %v573_v20, %v3526_v42  ;;  %v703_v20 = vld [vmem:[#allocation8 + $0x2f8] sm:$0xff] }
 0x155   : > { %v578_v22 = vadd.f32 1e-06, %v576_v21  ;;  %v688_v21 = vld [vmem:[#allocation8 + $0x280] sm:$0xff] }
 0x157   : > { %2832 = vrsqrt.f32 %v578_v22  ;;  %vm586_vm2 = vweird.f32 %v578_v22 }
 0x15a   : > { %v575_v23 = vpop.xlane.xlu1 %574 }
 0x15b   : > { %v577_v24 = vmul.f32 %v575_v23, %v3526_v42  ;;  %v690_v23 = vld [vmem:[#allocation8 + $0x290] sm:$0xff] }
 0x15d   : > { %v2833_v25 = vpop.eup %2832  ;;  %v579_v26 = vadd.f32 1e-06, %v577_v24  ;;  %v691_v24 = vld [vmem:[#allocation8 + $0x298] sm:$0xff] }
 0x15e   : > { %v581_v27 = vmul.f32 %v2833_v25, %v578_v22  ;;  %vm587_vm1 = vweird.f32 %v2833_v25  ;;  %v689_v22 = vld [vmem:[#allocation8 + $0x288] sm:$0xff] }
 0x15f   : > { %2834 = vrsqrt.f32 %v579_v26  ;;  %vm588_vm3 = vmor %vm586_vm2, %vm587_vm1  ;;  %vm596_vm5 = vweird.f32 %v579_v26 }
 0x160   : > { %v582_v28 = vmul.f32 %v2833_v25, %v581_v27  ;;  %v678_v27 = vld [vmem:[#allocation8 + $0x230] sm:$0xff] }
 0x162   : > { %v583_v29 = vmul.f32 0.5, %v582_v28  ;;  %v679_v28 = vld [vmem:[#allocation8 + $0x238] sm:$0xff] }
 0x164   : > { %v584_v30 = vsub.f32 1.5, %v583_v29  ;;  %v664_v29 = vld [vmem:[#allocation8 + $0x1c0] sm:$0xff] }
 0x165   : > { %v2835_v31 = vpop.eup %2834 }
 0x166   : > { %v585_v32 = vmul.f32 %v2833_v25, %v584_v30  ;;  %v591_v33 = vmul.f32 %v2835_v31, %v579_v26  ;;  %vm597_vm4 = vweird.f32 %v2835_v31  ;;  %v677_v26 = vld [vmem:[#allocation8 + $0x228] sm:$0xff] }
 0x167   : > { %vm598_vm6 = vmor %vm596_vm5, %vm597_vm4  ;;  %v665_v30 = vld [vmem:[#allocation8 + $0x1c8] sm:$0xff] }
 0x168   : > { %v589_v35 = vsel %vm588_vm3, %v2833_v25, %v585_v32  ;;  %v592_v36 = vmul.f32 %v2835_v31, %v591_v33  ;;  %v676_v25 = vld [vmem:[#allocation8 + $0x220] sm:$0xff]  ;;  %v667_v32 = vld [vmem:[#allocation8 + $0x1d8] sm:$0xff] }
 0x169   : > { %v600_v38 = vmul.f32 %v589_v35, %v3530_v55  ;;  %v784_v55 = vld [vmem:[#allocation8 + $0x580] sm:$0xff]  ;;  %v654_v35 = vld [vmem:[#allocation8 + $0x170] sm:$0xff] }
 0x16a   : > { %v593_v39 = vmul.f32 0.5, %v592_v36  ;;  %v652_v33 = vld [vmem:[#allocation8 + $0x160] sm:$0xff]  ;;  %v655_v36 = vld [vmem:[#allocation8 + $0x178] sm:$0xff] }
 0x16b   : > { %v603_v40 = vmul.f32 %v2824_v34, %v600_v38  ;;  %v641_v38 = vld [vmem:[#allocation8 + $0x108] sm:$0xff] }
 0x16c   : > { %v594_v41 = vsub.f32 1.5, %v593_v39  ;;  %v642_v39 = vld [vmem:[#allocation8 + $0x110] sm:$0xff] }
 0x16d   : > { %v3545_v43 = vadd.f32 %v2825_v37, %v603_v40  ;;  %v643_v40 = vld [vmem:[#allocation8 + $0x118] sm:$0xff] }
 0x16e   : > { %v595_v44 = vmul.f32 %v2835_v31, %v594_v41  ;;  %v628_v41 = vld [vmem:[#allocation8 + $0xa0] sm:$0xff] }
 0x16f   : > { %844 = vmatmul.f32.vlgmr.msra.gmra.mxu0 %v3545_v43  ;;  %867 = vmatmul.f32.vlgmr.msra.gmra.mxu1 %v3545_v43 }
 0x170   : > { %v599_v49 = vsel %vm598_vm6, %v2835_v31, %v595_v44  ;;  %890 = vmatmul.f32.vlgmr.msra.gmra.mxu2 %v3545_v43  ;;  %913 = vmatmul.f32.vlgmr.msra.gmra.mxu3 %v3545_v43  ;;  %v666_v31 = vld [vmem:[#allocation8 + $0x1d0] sm:$0xff]  ;;  %v629_v44 = vld [vmem:[#allocation8 + $0xa8] sm:$0xff] }
 0x171   : > { %v601_v51 = vmul.f32 %v599_v49, %v3536_v11  ;;  %1012 = vmatpush.msra.mxu0 %v796_v45  ;;  %1035 = vmatpush.msra.mxu1 %v797_v46  ;;  %v762_v11 = vld [vmem:[#allocation8 + $0x4d0] sm:$0xff]  ;;  %v631_v46 = vld [vmem:[#allocation8 + $0xb8] sm:$0xff] }
 0x172   : > { %1058 = vmatpush.msra.mxu2 %v798_v47  ;;  %1081 = vmatpush.msra.mxu3 %v799_v48  ;;  %v630_v45 = vld [vmem:[#allocation8 + $0xb0] sm:$0xff]  ;;  %v616_v47 = vld [vmem:[#allocation8 + $0x40] sm:$0xff]  ;;  %v617_v48 = vld [vmem:[#allocation8 + $0x48] sm:$0xff] }
 0x173   : > { %v604_v57 = vmul.f32 %v2824_v34, %v601_v51  ;;  %1013 = vmatpush.msra.mxu0 %v784_v55  ;;  %1036 = vmatpush.msra.mxu1 %v785_v50  ;;  %v653_v34 = vld [vmem:[#allocation8 + $0x168] sm:$0xff]  ;;  %v618_v49 = vld [vmem:[#allocation8 + $0x50] sm:$0xff]  ;;  %v619_v55 = vld [vmem:[#allocation8 + $0x58] sm:$0xff] }
 0x174   : > { %1059 = vmatpush.msra.mxu2 %v786_v52  ;;  %1082 = vmatpush.msra.mxu3 %v787_v53 }
 0x175   : > { %v3552_v62 = vadd.f32 %v2825_v37, %v604_v57  ;;  %1014 = vmatpush.msra.mxu0 %v772_v54  ;;  %1037 = vmatpush.msra.mxu1 %v773_v56  ;;  %v640_v37 = vld [vmem:[#allocation8 + $0x100] sm:$0xff]  ;;  %v3577_v57 = vld [vmem:[%s4256_s26] sm:$0xff] }
 0x176   : > { %1060 = vmatpush.msra.mxu2 %v774_v58  ;;  %1083 = vmatpush.msra.mxu3 %v775_v59  ;;  %v808_v59 = vperm.slane %v3577_v57, 4 }
 0x177   : > { %1015 = vmatpush.msra.mxu0 %v760_v60  ;;  %1038 = vmatpush.msra.mxu1 %v761_v61  ;;  %v809_v60 = vperm.slane %v3577_v57, 5  ;;  %v804_v61 = vperm.slane %v3577_v57, 0 }
 0x178   : > { %1061 = vmatpush.msra.mxu2 %v762_v11  ;;  %1084 = vmatpush.msra.mxu3 %v763_v63 }
 0x179   : > { %847 = vmatmul.f32.gmra.mxu0 %v3552_v62  ;;  %870 = vmatmul.f32.gmra.mxu1 %v3552_v62 }
 0x17a   : > { %893 = vmatmul.f32.gmra.mxu2 %v3552_v62  ;;  %916 = vmatmul.f32.gmra.mxu3 %v3552_v62 }
 0x17b   : > { %1016 = vmatpush.msra.mxu0 %v748_v0  ;;  %1039 = vmatpush.msra.mxu1 %v749_v2 }
 0x17c   : > { %1062 = vmatpush.msra.mxu2 %v750_v3  ;;  %1085 = vmatpush.msra.mxu3 %v751_v4 }
 0x17d   : > { %1017 = vmatpush.msra.mxu0 %v736_v5  ;;  %1040 = vmatpush.msra.mxu1 %v737_v6  ;;  %v810_v5 = vperm.slane %v3577_v57, 6  ;;  %v811_v6 = vperm.slane %v3577_v57, 7 }
 0x17e   : > { %1063 = vmatpush.msra.mxu2 %v738_v7  ;;  %1086 = vmatpush.msra.mxu3 %v739_v8  ;;  %v806_v7 = vperm.slane %v3577_v57, 2  ;;  %v807_v8 = vperm.slane %v3577_v57, 3 }
 0x17f   : > { %1018 = vmatpush.msra.mxu0 %v724_v9  ;;  %1041 = vmatpush.msra.mxu1 %v725_v10 }
 0x180   : > { %1064 = vmatpush.msra.mxu2 %v726_v12  ;;  %1087 = vmatpush.msra.mxu3 %v727_v13 }
 0x181   : > { %1019 = vmatpush.msra.mxu0 %v712_v14  ;;  %1042 = vmatpush.msra.mxu1 %v713_v15 }
 0x182   : > { %1065 = vmatpush.msra.mxu2 %v714_v16  ;;  %1088 = vmatpush.msra.mxu3 %v715_v17 }
 0x183   : > { %936 = vmatmul.f32.vlgmr.msrb.gmra.mxu0 %v3545_v43  ;;  %959 = vmatmul.f32.vlgmr.msrb.gmra.mxu1 %v3545_v43 }
 0x184   : > { %982 = vmatmul.f32.vlgmr.msrb.gmra.mxu2 %v3545_v43  ;;  %1005 = vmatmul.f32.vlgmr.msrb.gmra.mxu3 %v3545_v43 }
 0x185   : > { %1020 = vmatpush.msra.mxu0 %v700_v18  ;;  %1043 = vmatpush.msra.mxu1 %v701_v19 }
 0x186   : > { %1066 = vmatpush.msra.mxu2 %v702_v1  ;;  %1089 = vmatpush.msra.mxu3 %v703_v20  ;;  %v3608_v1 = vld [vmem:[%s4256_s26 + $0x8] sm:$0xf] }
 0x187   : > { %1021 = vmatpush.msra.mxu0 %v688_v21  ;;  %1044 = vmatpush.msra.mxu1 %v689_v22  ;;  %v812_v22 = vperm.slane %v3608_v1, 0 }
 0x188   : > { %1067 = vmatpush.msra.mxu2 %v690_v23  ;;  %1090 = vmatpush.msra.mxu3 %v691_v24  ;;  %v813_v23 = vperm.slane %v3608_v1, 1 }
 0x189   : > { %1022 = vmatpush.msra.mxu0 %v676_v25  ;;  %1045 = vmatpush.msra.mxu1 %v677_v26 }
 0x18a   : > { %1068 = vmatpush.msra.mxu2 %v678_v27  ;;  %1091 = vmatpush.msra.mxu3 %v679_v28 }
 0x18b   : > { %1023 = vmatpush.msra.mxu0 %v664_v29  ;;  %1046 = vmatpush.msra.mxu1 %v665_v30 }
 0x18c   : > { %1069 = vmatpush.msra.mxu2 %v666_v31  ;;  %1092 = vmatpush.msra.mxu3 %v667_v32  ;;  %v814_v32 = vperm.slane %v3608_v1, 2 }
 0x18d   : > { %939 = vmatmul.f32.gmra.mxu0 %v3552_v62  ;;  %962 = vmatmul.f32.gmra.mxu1 %v3552_v62 }
 0x18e   : > { %985 = vmatmul.f32.gmra.mxu2 %v3552_v62  ;;  %1008 = vmatmul.f32.gmra.mxu3 %v3552_v62 }
 0x18f   : > { %1024 = vmatpush.msra.mxu0 %v652_v33  ;;  %1047 = vmatpush.msra.mxu1 %v653_v34  ;;  %v815_v33 = vperm.slane %v3608_v1, 3 }
 0x190   : > { %1070 = vmatpush.msra.mxu2 %v654_v35  ;;  %1093 = vmatpush.msra.mxu3 %v655_v36 }
 0x191   : > { %1025 = vmatpush.msra.mxu0 %v640_v37  ;;  %1048 = vmatpush.msra.mxu1 %v641_v38 }
 0x192   : > { %1071 = vmatpush.msra.mxu2 %v642_v39  ;;  %1094 = vmatpush.msra.mxu3 %v643_v40 }
 0x193   : > { %1026 = vmatpush.msra.mxu0 %v628_v41  ;;  %1049 = vmatpush.msra.mxu1 %v629_v44 }
 0x194   : > { %1072 = vmatpush.msra.mxu2 %v630_v45  ;;  %1095 = vmatpush.msra.mxu3 %v631_v46 }
 0x195   : > { %1027 = vmatpush.msra.mxu0 %v616_v47  ;;  %1050 = vmatpush.msra.mxu1 %v617_v48 }
 0x196   : > { %1073 = vmatpush.msra.mxu2 %v618_v49  ;;  %1096 = vmatpush.msra.mxu3 %v619_v55 }
 0x197   : > { %1028 = vmatmul.f32.vlgmr.msra.gmra.mxu0 %v3545_v43  ;;  %1051 = vmatmul.f32.vlgmr.msra.gmra.mxu1 %v3545_v43 }
 0x198   : > { %1074 = vmatmul.f32.vlgmr.msra.gmra.mxu2 %v3545_v43  ;;  %1097 = vmatmul.f32.vlgmr.msra.gmra.mxu3 %v3545_v43 }
 0x19f   : > { %1031 = vmatmul.f32.gmra.mxu0 %v3552_v62  ;;  %1054 = vmatmul.f32.gmra.mxu1 %v3552_v62 }
 0x1a0   : > { %1077 = vmatmul.f32.gmra.mxu2 %v3552_v62  ;;  %1100 = vmatmul.f32.gmra.mxu3 %v3552_v62  ;;  %v805_v62 = vperm.slane %v3577_v57, 1 }
 0x1ec   : > { %v845_v50 = vpop.f32.mrf.mxu0  ;;  %v868_v51 = vpop.f32.mrf.mxu1 }
 0x1ed   : > { %v3583_v3 = vadd.f32 %v845_v50, %v804_v61  ;;  %v3585_v4 = vadd.f32 %v868_v51, %v805_v62 }
 0x1f3   : > { %v891_v52 = vpop.f32.mrf.mxu2  ;;  %v914_v53 = vpop.f32.mrf.mxu3 }
 0x1f4   : > { %v3593_v16 = vadd.f32 %v891_v52, %v806_v7  ;;  %v3595_v17 = vadd.f32 %v914_v53, %v807_v8 }
 0x1f6   : > { %v848_v54 = vpop.f32.mrf.mxu0  ;;  %v871_v56 = vpop.f32.mrf.mxu1 }
 0x1f7   : > { %v3597_v18 = vadd.f32 %v848_v54, %v804_v61  ;;  %v3599_v19 = vadd.f32 %v871_v56, %v805_v62 }
 0x1fd   : > { %v894_v43 = vpop.f32.mrf.mxu2  ;;  %v917_v58 = vpop.f32.mrf.mxu3 }
 0x1fe   : > { %v3612_v24 = vadd.f32 %v894_v43, %v806_v7  ;;  %v3614_v25 = vadd.f32 %v917_v58, %v807_v8 }
 0x200   : > { %v937_v11 = vpop.f32.mrf.mxu0  ;;  %v960_v63 = vpop.f32.mrf.mxu1 }
 0x201   : > { %v938_v0 = vadd.f32 %v937_v11, %v808_v59  ;;  %v961_v2 = vadd.f32 %v960_v63, %v809_v60 }
 0x203   : > { %1119 = vmatpush.xpose.msrb.mxu0 %v938_v0  ;;  %1142 = vmatpush.xpose.msrb.mxu1 %v961_v2 }
 0x206   : > { %1120 = vmatmul.f32.vlgmr.msrb.gmra.mxu0 %v3583_v3  ;;  %1143 = vmatmul.f32.vlgmr.msrb.gmra.mxu1 %v3585_v4 }
 0x207   : > { %v983_v9 = vpop.f32.mrf.mxu2  ;;  %v1006_v10 = vpop.f32.mrf.mxu3 }
 0x208   : > { %v984_v12 = vadd.f32 %v983_v9, %v810_v5  ;;  %v1007_v13 = vadd.f32 %v1006_v10, %v811_v6 }
 0x20a   : > { %v940_v14 = vpop.f32.mrf.mxu0  ;;  %v963_v15 = vpop.f32.mrf.mxu1  ;;  %1165 = vmatpush.xpose.msrb.mxu2 %v984_v12  ;;  %1188 = vmatpush.xpose.msrb.mxu3 %v1007_v13 }
 0x20b   : > { %v941_v30 = vadd.f32 %v940_v14, %v808_v59  ;;  %v964_v31 = vadd.f32 %v963_v15, %v809_v60 }
 0x20d   : > { %1166 = vmatmul.f32.vlgmr.msrb.gmra.mxu2 %v3593_v16  ;;  %1189 = vmatmul.f32.vlgmr.msrb.gmra.mxu3 %v3595_v17 }
 0x20e   : > { %1123 = vmatmul.f32.gmra.mxu0 %v3597_v18  ;;  %1146 = vmatmul.f32.gmra.mxu1 %v3599_v19 }
 0x211   : > { %v986_v20 = vpop.f32.mrf.mxu2  ;;  %v1009_v21 = vpop.f32.mrf.mxu3 }
 0x212   : > { %v987_v38 = vadd.f32 %v986_v20, %v810_v5  ;;  %v1010_v39 = vadd.f32 %v1009_v21, %v811_v6 }
 0x214   : > { %v1029_v26 = vpop.f32.mrf.mxu0  ;;  %v1052_v27 = vpop.f32.mrf.mxu1 }
 0x215   : > { %v1030_v28 = vadd.f32 %v1029_v26, %v812_v22  ;;  %v1053_v29 = vadd.f32 %v1052_v27, %v813_v23  ;;  %1169 = vmatmul.f32.gmra.mxu2 %v3612_v24  ;;  %1192 = vmatmul.f32.gmra.mxu3 %v3614_v25 }
 0x217   : > { %1290 = vmatpush.msra.mxu0 %v1030_v28  ;;  %1319 = vmatpush.msra.mxu1 %v1053_v29 }
 0x219   : > { %1400 = vmatpush.xpose.msrb.mxu0 %v941_v30  ;;  %1423 = vmatpush.xpose.msrb.mxu1 %v964_v31 }
 0x21b   : > { %v1075_v34 = vpop.f32.mrf.mxu2  ;;  %v1098_v35 = vpop.f32.mrf.mxu3 }
 0x21c   : > { %v1076_v36 = vadd.f32 %v1075_v34, %v814_v32  ;;  %v1099_v37 = vadd.f32 %v1098_v35, %v815_v33  ;;  %v3626_v44 = vpop.f32.mrf.mxu0  ;;  %v3629_v48 = vpop.f32.mrf.mxu1 }
 0x21e   : > { %1348 = vmatpush.msra.mxu2 %v1076_v36  ;;  %1377 = vmatpush.msra.mxu3 %v1099_v37 }
 0x220   : > { %1446 = vmatpush.xpose.msrb.mxu2 %v987_v38  ;;  %1469 = vmatpush.xpose.msrb.mxu3 %v1010_v39 }
 0x223   : > { %v1078_v40 = vpop.f32.mrf.mxu2  ;;  %v1101_v41 = vpop.f32.mrf.mxu3 }
 0x224   : > { %v1079_v8 = vadd.f32 %v1078_v40, %v814_v32  ;;  %v1102_v29 = vadd.f32 %v1101_v41, %v815_v33  ;;  %v1033_v40 = vadd.f32 %v3626_v44, %v812_v22  ;;  %v1056_v41 = vadd.f32 %v3629_v48, %v813_v23 }
 0x283   : > { %v1121_v49 = vpop.f32.mrf.mxu0  ;;  %v1144_v54 = vpop.f32.mrf.mxu1 }
 0x284   : > { %v1197_v57 = vsel %vm1196_vm7, %v1121_v49, -inf  ;;  %v1203_v58 = vsel %vm1196_vm7, %v1144_v54, -inf }
 0x28b   : > { %v1124_v56 = vpop.f32.mrf.mxu0  ;;  %v1147_v59 = vpop.f32.mrf.mxu1 }
 0x28c   : > { %v1200_v43 = vsel %vm1196_vm7, %v1124_v56, -inf  ;;  %v1206_v60 = vsel %vm1196_vm7, %v1147_v59, -inf }
 0x290   : > { %v1167_v45 = vpop.f32.mrf.mxu2  ;;  %v1190_v46 = vpop.f32.mrf.mxu3 }
 0x291   : > { %v1209_v47 = vsel %vm1196_vm7, %v1167_v45, -inf  ;;  %v1215_v52 = vsel %vm1196_vm7, %v1190_v46, -inf }
 0x292   : > { %1210 = vmax.xlane.f32.xlu2 %v1209_v47 }
 0x298   : > { %v1170_v55 = vpop.f32.mrf.mxu2  ;;  %v1193_v50 = vpop.f32.mrf.mxu3 }
 0x299   : > { %v1218_v51 = vsel %vm1196_vm7, %v1193_v50, -inf  ;;  %v1212_v53 = vsel %vm1196_vm7, %v1170_v55, -inf }
 0x29a   : > { %1219 = vmax.xlane.f32.xlu1 %v1218_v51  ;;  %1216 = vmax.xlane.f32.xlu2 %v1215_v52 }
 0x29b   : > { %1213 = vmax.xlane.f32.xlu0 %v1212_v53 }
 0x2a2   : > { %1198 = vmax.xlane.f32.xlu2 %v1197_v57  ;;  %1201 = vmax.xlane.f32.xlu1 %v1200_v43 }
 0x2a3   : > { %1204 = vmax.xlane.f32.xlu0 %v1203_v58 }
 0x2aa   : > { %1207 = vmax.xlane.f32.xlu2 %v1206_v60 }
 0x305   : > { %v3638_v61 = vpop.xlane.xlu2 %1210 }
 0x306   : > { %v1225_v62 = vsub.f32 %v1167_v45, %v3638_v61 }
 0x308   : > { %v1237_v11 = vmul.f32 1.442695, %v1225_v62 }
 0x30a   : > { %2836 = vpow2.f32 %v1237_v11 }
 0x30d   : > { %v3641_v63 = vpop.xlane.xlu1 %1219  ;;  %v3643_v0 = vpop.xlane.xlu2 %1216 }
 0x30e   : > { %v1227_v2 = vsub.f32 %v1190_v46, %v3643_v0  ;;  %v3646_v5 = vpop.xlane.xlu0 %1213  ;;  %v1228_v10 = vsub.f32 %v1193_v50, %v3641_v63 }
 0x30f   : > { %v1226_v6 = vsub.f32 %v1170_v55, %v3646_v5 }
 0x310   : > { %v3649_v7 = vpop.eup %2836  ;;  %v1241_v9 = vmul.f32 1.442695, %v1227_v2  ;;  %v1243_v13 = vmul.f32 1.442695, %v1228_v10 }
 0x311   : > { %v1239_v12 = vmul.f32 1.442695, %v1226_v6  ;;  %2654 = vmatmul.msk.f32.vlgmr.msra.gmra.mxu2 %vm1196_vm7, %v3649_v7  ;;  %v1257_v58 = vsel %vm1196_vm7, %v3649_v7, 0.0 }
 0x312   : > { %1684 = vmatpush.msra.mxu2 %v1079_v8  ;;  %2838 = vpow2.f32 %v1241_v9 }
 0x313   : > { %2840 = vpow2.f32 %v1239_v12 }
 0x314   : > { %2842 = vpow2.f32 %v1243_v13 }
 0x315   : > { %v3654_v14 = vpop.xlane.xlu2 %1198  ;;  %v3659_v21 = vpop.xlane.xlu1 %1201 }
 0x316   : > { %v3656_v15 = vpop.xlane.xlu0 %1204  ;;  %v1221_v20 = vsub.f32 %v1121_v49, %v3654_v14  ;;  %v1222_v31 = vsub.f32 %v1124_v56, %v3659_v21 }
 0x317   : > { %v1223_v26 = vsub.f32 %v1144_v54, %v3656_v15 }
 0x318   : > { %v1229_v27 = vmul.f32 1.442695, %v1221_v20  ;;  %v3662_v28 = vpop.eup %2838  ;;  %v1231_v34 = vmul.f32 1.442695, %v1222_v31 }
 0x319   : > { %v1233_v30 = vmul.f32 1.442695, %v1223_v26  ;;  %v3667_v32 = vpop.eup %2840  ;;  %2656 = vmatmul.msk.f32.vlgmr.msra.gmra.mxu3 %vm1196_vm7, %v3662_v28  ;;  %v1263_v60 = vsel %vm1196_vm7, %v3662_v28, 0.0 }
 0x31a   : > { %2844 = vpow2.f32 %v1229_v27  ;;  %2655 = vmatmul.msk.f32.gmra.mxu2 %vm1196_vm7, %v3667_v32  ;;  %1713 = vmatpush.msra.mxu3 %v1102_v29  ;;  %v3676_v36 = vpop.eup %2842  ;;  %v1260_v2 = vsel %vm1196_vm7, %v3667_v32, 0.0  ;;  %v1904_v32 = vld [vmem:[#allocation10 + $0x178] sm:$0xff] }
 0x31b   : > { %2846 = vpow2.f32 %v1233_v30  ;;  %v1266_v6 = vsel %vm1196_vm7, %v3676_v36, 0.0 }
 0x31c   : > { %2848 = vpow2.f32 %v1231_v34  ;;  %v1903_v34 = vld [vmem:[#allocation10 + $0x170] sm:$0xff] }
 0x31d   : > { %v3673_v35 = vpop.xlane.xlu2 %1207 }
 0x31e   : > { %v1224_v33 = vsub.f32 %v1147_v59, %v3673_v35 }
 0x320   : > { %v2845_v37 = vpop.eup %2844  ;;  %v1235_v38 = vmul.f32 1.442695, %v1224_v33 }
 0x321   : > { %v2847_v39 = vpop.eup %2846  ;;  %2650 = vmatmul.msk.f32.vlgmr.msra.gmra.mxu0 %vm1196_vm7, %v2845_v37  ;;  %2657 = vmatmul.msk.f32.gmra.mxu3 %vm1196_vm7, %v3676_v36  ;;  %v1245_v59 = vsel %vm1196_vm7, %v2845_v37, 0.0  ;;  %v1902_v37 = vld [vmem:[#allocation10 + $0x168] sm:$0xff] }
 0x322   : > { %2850 = vpow2.f32 %v1235_v38  ;;  %2652 = vmatmul.msk.f32.vlgmr.msra.gmra.mxu1 %vm1196_vm7, %v2847_v39  ;;  %1447 = vmatmul.f32.vlgmr.msrb.gmra.mxu2 %v3593_v16  ;;  %v2849_v45 = vpop.eup %2848  ;;  %v1251_v62 = vsel %vm1196_vm7, %v2847_v39, 0.0  ;;  %v1920_v39 = vld [vmem:[#allocation10 + $0x1f8] sm:$0xff] }
 0x323   : > { %1626 = vmatpush.msra.mxu0 %v1033_v40  ;;  %1655 = vmatpush.msra.mxu1 %v1056_v41  ;;  %v1248_v11 = vsel %vm1196_vm7, %v2849_v45, 0.0 }
 0x324   : > { %1971 = vmatpush.msrb.mxu2 %v1904_v32  ;;  %v1899_v32 = vld [vmem:[#allocation10 + $0x150] sm:$0xff] }
 0x326   : > { %1972 = vmatpush.msrb.mxu2 %v1903_v34  ;;  %v1919_v34 = vld [vmem:[#allocation10 + $0x1f0] sm:$0xff] }
 0x328   : > { %v3689_v46 = vpop.eup %2850  ;;  %1973 = vmatpush.msrb.mxu2 %v1902_v37  ;;  %v1918_v37 = vld [vmem:[#allocation10 + $0x1e8] sm:$0xff] }
 0x329   : > { %2651 = vmatmul.msk.f32.gmra.mxu0 %vm1196_vm7, %v2849_v45  ;;  %1470 = vmatmul.f32.vlgmr.msrb.gmra.mxu3 %v3595_v17 }
 0x32a   : > { %2653 = vmatmul.msk.f32.gmra.mxu1 %vm1196_vm7, %v3689_v46  ;;  %1450 = vmatmul.f32.gmra.mxu2 %v3612_v24 }
 0x32b   : > { %1994 = vmatpush.msrb.mxu3 %v1920_v39  ;;  %v1897_v39 = vld [vmem:[#allocation10 + $0x140] sm:$0xff] }
 0x32d   : > { %1995 = vmatpush.msrb.mxu3 %v1919_v34  ;;  %v1889_v34 = vld [vmem:[#allocation10 + $0x100] sm:$0xff] }
 0x32f   : > { %1996 = vmatpush.msrb.mxu3 %v1918_v37  ;;  %v1861_v37 = vld [vmem:[#allocation10 + $0x20] sm:$0xff] }
 0x331   : > { %1401 = vmatmul.f32.vlgmr.msrb.gmra.mxu0 %v3583_v3  ;;  %1473 = vmatmul.f32.gmra.mxu3 %v3614_v25 }
 0x332   : > { %1424 = vmatmul.f32.vlgmr.msrb.gmra.mxu1 %v3585_v4 }
 0x339   : > { %1404 = vmatmul.f32.gmra.mxu0 %v3597_v18 }
 0x33a   : > { %1427 = vmatmul.f32.gmra.mxu1 %v3599_v19 }
 0x394   : > { %v3701_v16 = vpop.f32.mrf.mxu2 }
 0x39c   : > { %v3703_v1 = vpop.f32.mrf.mxu3 }
 0x39d   : > { %v3705_v22 = vpop.f32.mrf.mxu2 }
 0x39e   : > { %v3707_v23 = vpop.f32.mrf.mxu0 }
 0x39f   : > { %v3709_v17 = vpop.f32.mrf.mxu1 }
 0x3a4   : > { %v3711_v24 = vpop.f32.mrf.mxu3 }
 0x3a5   : > { %v1448_v3 = vpop.f32.mrf.mxu2 }
 0x3a6   : > { %v3713_v4 = vpop.f32.mrf.mxu0  ;;  %v1489_v25 = vsel %vm1196_vm7, %v1448_v3, -inf }
 0x3a7   : > { %v3716_v18 = vpop.f32.mrf.mxu1  ;;  %1490 = vmax.xlane.f32.xlu0 %v1489_v25 }
 0x3ac   : > { %v1471_v19 = vpop.f32.mrf.mxu3 }
 0x3ad   : > { %v1451_v44 = vpop.f32.mrf.mxu2  ;;  %v1495_v47 = vsel %vm1196_vm7, %v1471_v19, -inf }
 0x3ae   : > { %v1402_v48 = vpop.f32.mrf.mxu0  ;;  %v1492_v49 = vsel %vm1196_vm7, %v1451_v44, -inf  ;;  %1496 = vmax.xlane.f32.xlu1 %v1495_v47 }
 0x3af   : > { %v1477_v55 = vsel %vm1196_vm7, %v1402_v48, -inf  ;;  %1493 = vmax.xlane.f32.xlu0 %v1492_v49  ;;  %v3721_v50 = vpop.f32.mrf.mxu1  ;;  %v1900_v49 = vld [vmem:[#allocation10 + $0x158] sm:$0xff] }
 0x3b0   : > { %1478 = vmax.xlane.f32.xlu2 %v1477_v55  ;;  %v1483_v52 = vsel %vm1196_vm7, %v3721_v50, -inf }
 0x3b4   : > { %v3723_v51 = vpop.f32.mrf.mxu3 }
 0x3b5   : > { %v1498_v54 = vsel %vm1196_vm7, %v3723_v51, -inf }
 0x3b6   : > { %v3727_v53 = vpop.f32.mrf.mxu0  ;;  %1484 = vmax.xlane.f32.xlu1 %v1483_v52 }
 0x3b7   : > { %v1480_v56 = vsel %vm1196_vm7, %v3727_v53, -inf  ;;  %v3733_v57 = vpop.f32.mrf.mxu1 }
 0x3b8   : > { %1499 = vmax.xlane.f32.xlu2 %v1498_v54  ;;  %1481 = vmax.xlane.f32.xlu0 %v1480_v56  ;;  %v1486_v43 = vsel %vm1196_vm7, %v3733_v57, -inf }
 0x3be   : > { %1487 = vmax.xlane.f32.xlu1 %v1486_v43 }
 0x3c0   : > { %1258 = vadd.xlane.f32.xlu2 %v1257_v58  ;;  %1246 = vadd.xlane.f32.xlu0 %v1245_v59 }
 0x3c6   : > { %1264 = vadd.xlane.f32.xlu1 %v1263_v60 }
 0x3c8   : > { %1252 = vadd.xlane.f32.xlu0 %v1251_v62  ;;  %1249 = vadd.xlane.f32.xlu2 %v1248_v11 }
 0x3ce   : > { %1261 = vadd.xlane.f32.xlu1 %v1260_v2 }
 0x3d0   : > { %1267 = vadd.xlane.f32.xlu0 %v1266_v6 }
 0x41a   : > { %v1491_v7 = vpop.xlane.xlu0 %1490 }
 0x41b   : > { %v3749_v8 = vmax.f32 %v3638_v61, %v1491_v7 }
 0x41d   : > { %v1537_v9 = vsub.f32 %v1448_v3, %v3749_v8  ;;  %v1901_v3 = vld [vmem:[#allocation10 + $0x160] sm:$0xff] }
 0x41e   : > { %1974 = vmatpush.msrb.mxu2 %v1901_v3  ;;  %v1896_v3 = vld [vmem:[#allocation10 + $0x138] sm:$0xff] }
 0x41f   : > { %v1549_v10 = vmul.f32 1.442695, %v1537_v9 }
 0x420   : > { %1975 = vmatpush.msrb.mxu2 %v1900_v49  ;;  %v1887_v49 = vld [vmem:[#allocation10 + $0xf0] sm:$0xff] }
 0x421   : > { %v1497_v12 = vpop.xlane.xlu1 %1496  ;;  %2852 = vpow2.f32 %v1549_v10 }
 0x422   : > { %v1494_v13 = vpop.xlane.xlu0 %1493  ;;  %v3753_v20 = vmax.f32 %v3643_v0, %v1497_v12  ;;  %v1254_v12 = vsel %vm1196_vm7, %v3689_v46, 0.0  ;;  %1976 = vmatpush.msrb.mxu2 %v1899_v32  ;;  %v1881_v32 = vld [vmem:[#allocation10 + $0xc0] sm:$0xff] }
 0x423   : > { %v1479_v26 = vpop.xlane.xlu2 %1478  ;;  %v3756_v27 = vmax.f32 %v3646_v5, %v1494_v13 }
 0x424   : > { %v3759_v28 = vmax.f32 %v3654_v14, %v1479_v26  ;;  %v1539_v29 = vsub.f32 %v1471_v19, %v3753_v20 }
 0x425   : > { %v1538_v30 = vsub.f32 %v1451_v44, %v3756_v27 }
 0x426   : > { %v1533_v31 = vsub.f32 %v1402_v48, %v3759_v28  ;;  %v1553_v36 = vmul.f32 1.442695, %v1539_v29 }
 0x427   : > { %v1551_v33 = vmul.f32 1.442695, %v1538_v30  ;;  %v2853_v38 = vpop.eup %2852 }
 0x428   : > { %v1541_v40 = vmul.f32 1.442695, %v1533_v31  ;;  %2662 = vmatmul.msk.f32.vlgmr.msra.gmra.mxu2 %vm1196_vm7, %v2853_v38  ;;  %v1577_v41 = vsel %vm1196_vm7, %v2853_v38, 0.0  ;;  %v1872_v31 = vld [vmem:[#allocation10 + $0x78] sm:$0xff]  ;;  %v1870_v38 = vld [vmem:[#allocation10 + $0x68] sm:$0xff] }
 0x429   : > { %v1485_v45 = vpop.xlane.xlu1 %1484  ;;  %2854 = vpow2.f32 %v1551_v33  ;;  %1578 = vadd.xlane.f32.xlu2 %v1577_v41  ;;  %1925 = vmatpush.msrb.mxu0 %v1872_v31  ;;  %v1871_v33 = vld [vmem:[#allocation10 + $0x70] sm:$0xff]  ;;  %v1869_v41 = vld [vmem:[#allocation10 + $0x60] sm:$0xff]  ;;  %v1890_v31 = vld [vmem:[#allocation10 + $0x108] sm:$0xff] }
 0x42a   : > { %v3767_v25 = vmax.f32 %v3656_v15, %v1485_v45  ;;  %2856 = vpow2.f32 %v1553_v36  ;;  %v1898_v36 = vld [vmem:[#allocation10 + $0x148] sm:$0xff]  ;;  %v1888_v45 = vld [vmem:[#allocation10 + $0xf8] sm:$0xff] }
 0x42b   : > { %v1500_v19 = vpop.xlane.xlu2 %1499  ;;  %v1482_v44 = vpop.xlane.xlu0 %1481  ;;  %2858 = vpow2.f32 %v1541_v40  ;;  %1926 = vmatpush.msrb.mxu0 %v1871_v33  ;;  %1977 = vmatpush.msrb.mxu2 %v1898_v36  ;;  %v1917_v40 = vld [vmem:[#allocation10 + $0x1e0] sm:$0xff] }
 0x42c   : > { %v3770_v47 = vmax.f32 %v3641_v63, %v1500_v19  ;;  %v3773_v48 = vmax.f32 %v3659_v21, %v1482_v44  ;;  %v1535_v55 = vsub.f32 %v3721_v50, %v3767_v25  ;;  %1997 = vmatpush.msrb.mxu3 %v1917_v40  ;;  %1948 = vmatpush.msrb.mxu1 %v1888_v45  ;;  %v1916_v19 = vld [vmem:[#allocation10 + $0x1d8] sm:$0xff]  ;;  %v1909_v33 = vld [vmem:[#allocation10 + $0x1a0] sm:$0xff] }
 0x42d   : > { %1927 = vmatpush.msrb.mxu0 %v1870_v38  ;;  %1978 = vmatpush.msrb.mxu2 %v1897_v39  ;;  %v1868_v44 = vld [vmem:[#allocation10 + $0x58] sm:$0xff]  ;;  %v1515_v40 = vsub.f32 %v3643_v0, %v3753_v20  ;;  %v1509_v45 = vsub.f32 %v3654_v14, %v3759_v28  ;;  %v1511_v20 = vsub.f32 %v3656_v15, %v3767_v25 }
 0x42e   : > { %v1540_v52 = vsub.f32 %v3723_v51, %v3770_v47  ;;  %v1545_v54 = vmul.f32 1.442695, %v1535_v55  ;;  %v1534_v56 = vsub.f32 %v3727_v53, %v3773_v48  ;;  %1998 = vmatpush.msrb.mxu3 %v1916_v19  ;;  %v1895_v55 = vld [vmem:[#allocation10 + $0x130] sm:$0xff]  ;;  %1949 = vmatpush.msrb.mxu1 %v1887_v49  ;;  %v1880_v38 = vld [vmem:[#allocation10 + $0xb8] sm:$0xff]  ;;  %v1514_v49 = vsub.f32 %v3646_v5, %v3756_v27  ;;  %v1877_v5 = vld [vmem:[#allocation10 + $0xa0] sm:$0xff] }
 0x42f   : > { %v2855_v58 = vpop.eup %2854  ;;  %1928 = vmatpush.msrb.mxu0 %v1869_v41  ;;  %1979 = vmatpush.msrb.mxu2 %v1896_v3  ;;  %v1908_v39 = vld [vmem:[#allocation10 + $0x198] sm:$0xff]  ;;  %v1879_v19 = vld [vmem:[#allocation10 + $0xb0] sm:$0xff]  ;;  %v1529_v0 = vmul.f32 1.442695, %v1515_v40  ;;  %v1517_v28 = vmul.f32 1.442695, %v1509_v45  ;;  %v1510_v15 = vsub.f32 %v3659_v21, %v3773_v48 }
 0x430   : > { %v1555_v43 = vmul.f32 1.442695, %v1540_v52  ;;  %v2857_v59 = vpop.eup %2856  ;;  %2860 = vpow2.f32 %v1545_v54  ;;  %v1543_v60 = vmul.f32 1.442695, %v1534_v56  ;;  %2663 = vmatmul.msk.f32.gmra.mxu2 %vm1196_vm7, %v2855_v58  ;;  %v1915_v52 = vld [vmem:[#allocation10 + $0x1d0] sm:$0xff]  ;;  %v1886_v56 = vld [vmem:[#allocation10 + $0xe8] sm:$0xff] }
 0x431   : > { %v1488_v62 = vpop.xlane.xlu1 %1487  ;;  %2664 = vmatmul.msk.f32.vlgmr.msra.gmra.mxu3 %vm1196_vm7, %v2857_v59  ;;  %v1583_v50 = vsel %vm1196_vm7, %v2857_v59, 0.0  ;;  %v2859_v51 = vpop.eup %2858  ;;  %1929 = vmatpush.msrb.mxu0 %v1868_v44  ;;  %v1867_v54 = vld [vmem:[#allocation10 + $0x50] sm:$0xff]  ;;  %v1866_v59 = vld [vmem:[#allocation10 + $0x48] sm:$0xff]  ;;  %v1860_v3 = vld [vmem:[#allocation10 + $0x18] sm:$0xff]  ;;  %v1519_v21 = vmul.f32 1.442695, %v1510_v15 }
 0x432   : > { %v3785_v11 = vmax.f32 %v3673_v35, %v1488_v62  ;;  %2862 = vpow2.f32 %v1555_v43  ;;  %1584 = vadd.xlane.f32.xlu2 %v1583_v50  ;;  %2658 = vmatmul.msk.f32.vlgmr.msra.gmra.mxu0 %vm1196_vm7, %v2859_v51  ;;  %v1565_v2 = vsel %vm1196_vm7, %v2859_v51, 0.0  ;;  %v1894_v43 = vld [vmem:[#allocation10 + $0x128] sm:$0xff]  ;;  %v1893_v62 = vld [vmem:[#allocation10 + $0x120] sm:$0xff]  ;;  %v1907_v44 = vld [vmem:[#allocation10 + $0x190] sm:$0xff] }
 0x433   : > { %2864 = vpow2.f32 %v1543_v60  ;;  %1566 = vadd.xlane.f32.xlu1 %v1565_v2  ;;  %1980 = vmatpush.msrb.mxu2 %v1895_v55  ;;  %v1885_v60 = vld [vmem:[#allocation10 + $0xe0] sm:$0xff]  ;;  %v3802_v50 = vpop.xlane.xlu2 %1258  ;;  %v1884_v2 = vld [vmem:[#allocation10 + $0xd8] sm:$0xff]  ;;  %v1859_v55 = vld [vmem:[#allocation10 + $0x10] sm:$0xff] }
 0x434   : > { %v1536_v53 = vsub.f32 %v3733_v57, %v3785_v11  ;;  %v1580_v57 = vsel %vm1196_vm7, %v2855_v58, 0.0  ;;  %1999 = vmatpush.msrb.mxu3 %v1915_v52  ;;  %1930 = vmatpush.msrb.mxu0 %v1867_v54  ;;  %v1914_v58 = vld [vmem:[#allocation10 + $0x1c8] sm:$0xff]  ;;  %v1913_v51 = vld [vmem:[#allocation10 + $0x1c0] sm:$0xff] }
 0x435   : > { %1950 = vmatpush.msrb.mxu1 %v1886_v56  ;;  %1981 = vmatpush.msrb.mxu2 %v1894_v43  ;;  %v1878_v52 = vld [vmem:[#allocation10 + $0xa8] sm:$0xff]  ;;  %v1516_v43 = vsub.f32 %v3641_v63, %v3770_v47  ;;  %v1905_v27 = vld [vmem:[#allocation10 + $0x180] sm:$0xff]  ;;  %v1512_v47 = vsub.f32 %v3673_v35, %v3785_v11 }
 0x436   : > { %v1547_v6 = vmul.f32 1.442695, %v1536_v53  ;;  %v2861_v7 = vpop.eup %2860  ;;  %2000 = vmatpush.msrb.mxu3 %v1914_v58  ;;  %1931 = vmatpush.msrb.mxu0 %v1866_v59  ;;  %v1865_v53 = vld [vmem:[#allocation10 + $0x40] sm:$0xff]  ;;  %v1906_v54 = vld [vmem:[#allocation10 + $0x188] sm:$0xff] }
 0x437   : > { %2660 = vmatmul.msk.f32.vlgmr.msra.gmra.mxu1 %vm1196_vm7, %v2861_v7  ;;  %v1571_v9 = vsel %vm1196_vm7, %v2861_v7, 0.0  ;;  %1982 = vmatpush.msrb.mxu2 %v1893_v62  ;;  %v1513_v7 = vsub.f32 %v3638_v61, %v3749_v8  ;;  %v1910_v61 = vld [vmem:[#allocation10 + $0x1a8] sm:$0xff]  ;;  %v1857_v62 = vld [vmem:[#allocation10] sm:$0xff]  ;;  %v1531_v63 = vmul.f32 1.442695, %v1516_v43 }
 0x438   : > { %v2863_v10 = vpop.eup %2862  ;;  %2866 = vpow2.f32 %v1547_v6  ;;  %1572 = vadd.xlane.f32.xlu0 %v1571_v9  ;;  %1951 = vmatpush.msrb.mxu1 %v1885_v60  ;;  %v1892_v6 = vld [vmem:[#allocation10 + $0x118] sm:$0xff]  ;;  %v1862_v8 = vld [vmem:[#allocation10 + $0x28] sm:$0xff]  ;;  %v1527_v60 = vmul.f32 1.442695, %v1514_v49 }
 0x439   : > { %2665 = vmatmul.msk.f32.gmra.mxu3 %vm1196_vm7, %v2863_v10  ;;  %v2865_v13 = vpop.eup %2864  ;;  %v1586_v46 = vsel %vm1196_vm7, %v2863_v10, 0.0  ;;  %1932 = vmatpush.msrb.mxu0 %v1865_v53  ;;  %v1912_v9 = vld [vmem:[#allocation10 + $0x1b8] sm:$0xff]  ;;  %v1265_v41 = vpop.xlane.xlu1 %1264  ;;  %v1858_v58 = vld [vmem:[#allocation10 + $0x8] sm:$0xff]  ;;  %v1521_v53 = vmul.f32 1.442695, %v1511_v20 }
 0x43a   : > { %1255 = vadd.xlane.f32.xlu2 %v1254_v12  ;;  %2659 = vmatmul.msk.f32.gmra.mxu0 %vm1196_vm7, %v2865_v13  ;;  %v1568_v29 = vsel %vm1196_vm7, %v2865_v13, 0.0  ;;  %v1864_v10 = vld [vmem:[#allocation10 + $0x38] sm:$0xff]  ;;  %v1883_v12 = vld [vmem:[#allocation10 + $0xd0] sm:$0xff]  ;;  %v1874_v48 = vld [vmem:[#allocation10 + $0x88] sm:$0xff] }
 0x43b   : > { %1581 = vadd.xlane.f32.xlu1 %v1580_v57  ;;  %2001 = vmatpush.msrb.mxu3 %v1913_v51  ;;  %v1891_v13 = vld [vmem:[#allocation10 + $0x110] sm:$0xff]  ;;  %v3808_v36 = vpop.xlane.xlu2 %1249  ;;  %v1876_v51 = vld [vmem:[#allocation10 + $0x98] sm:$0xff] }
 0x43c   : > { %1952 = vmatpush.msrb.mxu1 %v1884_v2  ;;  %1983 = vmatpush.msrb.mxu2 %v1892_v6  ;;  %v1911_v57 = vld [vmem:[#allocation10 + $0x1b0] sm:$0xff] }
 0x43d   : > { %2002 = vmatpush.msrb.mxu3 %v1912_v9  ;;  %1933 = vmatpush.msrb.mxu0 %v1864_v10  ;;  %v1523_v9 = vmul.f32 1.442695, %v1512_v47 }
 0x43e   : > { %v2867_v26 = vpop.eup %2866  ;;  %1953 = vmatpush.msrb.mxu1 %v1883_v12  ;;  %1984 = vmatpush.msrb.mxu2 %v1891_v13 }
 0x43f   : > { %2661 = vmatmul.msk.f32.gmra.mxu1 %vm1196_vm7, %v2867_v26  ;;  %v1574_v30 = vsel %vm1196_vm7, %v2867_v26, 0.0  ;;  %v3806_v26 = vpop.xlane.xlu0 %1246  ;;  %2003 = vmatpush.msrb.mxu3 %v1911_v57 }
 0x440   : > { %1569 = vadd.xlane.f32.xlu0 %v1568_v29  ;;  %v1525_v29 = vmul.f32 1.442695, %v1513_v7  ;;  %1985 = vmatpush.msrb.mxu2 %v1890_v31  ;;  %v1873_v7 = vld [vmem:[#allocation10 + $0x80] sm:$0xff] }
 0x441   : > { %2004 = vmatpush.msrb.mxu3 %v1910_v61  ;;  %v1262_v6 = vpop.xlane.xlu1 %1261 }
 0x442   : > { %1575 = vadd.xlane.f32.xlu2 %v1574_v30  ;;  %v1863_v30 = vld [vmem:[#allocation10 + $0x30] sm:$0xff]  ;;  %2868 = vpow2.f32 %v1525_v29  ;;  %1986 = vmatpush.msrb.mxu2 %v1889_v34 }
 0x443   : > { %1587 = vadd.xlane.f32.xlu1 %v1586_v46  ;;  %v1882_v46 = vld [vmem:[#allocation10 + $0xc8] sm:$0xff]  ;;  %1934 = vmatpush.msrb.mxu0 %v1863_v30  ;;  %2870 = vpow2.f32 %v1529_v0 }
 0x444   : > { %1954 = vmatpush.msrb.mxu1 %v1882_v46  ;;  %2005 = vmatpush.msrb.mxu3 %v1909_v33  ;;  %2872 = vpow2.f32 %v1517_v28 }
 0x445   : > { %1935 = vmatpush.msrb.mxu0 %v1862_v8 }
 0x446   : > { %1955 = vmatpush.msrb.mxu1 %v1881_v32  ;;  %2006 = vmatpush.msrb.mxu3 %v1908_v39 }
 0x447   : > { %1936 = vmatpush.msrb.mxu0 %v1861_v37  ;;  %v3818_v56 = vpop.xlane.xlu0 %1252 }
 0x448   : > { %1956 = vmatpush.msrb.mxu1 %v1880_v38  ;;  %2007 = vmatpush.msrb.mxu3 %v1907_v44  ;;  %v2869_v14 = vpop.eup %2868 }
 0x449   : > { %1937 = vmatpush.msrb.mxu0 %v1860_v3  ;;  %v1561_v59 = vmul.f32 %v2869_v14, %v3802_v50  ;;  %v1875_v50 = vld [vmem:[#allocation10 + $0x90] sm:$0xff]  ;;  %v2871_v10 = vpop.eup %2870  ;;  %v1601_v32 = vmul.f32 %v2869_v14, %v3701_v16 }
 0x44a   : > { %1957 = vmatpush.msrb.mxu1 %v1879_v19  ;;  %2008 = vmatpush.msrb.mxu3 %v1906_v54  ;;  %v2873_v13 = vpop.eup %2872  ;;  %v1563_v57 = vmul.f32 %v2871_v10, %v1265_v41 }
 0x44b   : > { %1938 = vmatpush.msrb.mxu0 %v1859_v55  ;;  %v1557_v30 = vmul.f32 %v2873_v13, %v3806_v26  ;;  %v1597_v40 = vmul.f32 %v2873_v13, %v3707_v23  ;;  %v3839_v26 = vmul.f32 %v2871_v10, %v3703_v1 }
 0x44c   : > { %1958 = vmatpush.msrb.mxu1 %v1878_v52  ;;  %2009 = vmatpush.msrb.mxu3 %v1905_v27 }
 0x44d   : > { %1939 = vmatpush.msrb.mxu0 %v1858_v58 }
 0x44e   : > { %1959 = vmatpush.msrb.mxu1 %v1877_v5 }
 0x44f   : > { %1940 = vmatpush.msrb.mxu0 %v1857_v62  ;;  %v1268_v12 = vpop.xlane.xlu0 %1267 }
 0x450   : > { %1960 = vmatpush.msrb.mxu1 %v1876_v51 }
 0x452   : > { %1961 = vmatpush.msrb.mxu1 %v1875_v50 }
 0x454   : > { %1962 = vmatpush.msrb.mxu1 %v1874_v48 }
 0x456   : > { %1963 = vmatpush.msrb.mxu1 %v1873_v7 }
 0x49c   : > { %v1579_v25 = vpop.xlane.xlu2 %1578 }
 0x49d   : > { %v1593_v2 = vadd.f32 %v1579_v25, %v1561_v59 }
 0x49f   : > { %2874 = vrcp.f32 %v1593_v2  ;;  %v1798_v38 = vand.u32 2147483647, %v1593_v2  ;;  %v1800_v39 = vand.u32 2147483648, %v1593_v2  ;;  %vm1794_vm9 = vweird.f32 %v1593_v2 }
 0x4a0   : > { %2876 = vpow2.f32 %v1527_v60 }
 0x4a1   : > { %2878 = vpow2.f32 %v1521_v53  ;;  %vm1799_vm10 = vcmp.eq.f32.partialorder %v1798_v38, 8.507059e+37  ;;  %v1801_v0 = vor.u32 1.1754944e-38, %v1800_v39 }
 0x4a2   : > { %2880 = vpow2.f32 %v1531_v63 }
 0x4a3   : > { %2882 = vpow2.f32 %v1519_v21 }
 0x4a4   : > { %2884 = vpow2.f32 %v1523_v9 }
 0x4a5   : > { %v2875_v29 = vpop.eup %2874  ;;  %v1585_v35 = vpop.xlane.xlu2 %1584 }
 0x4a6   : > { %v2877_v11 = vpop.eup %2876  ;;  %v1790_v46 = vmul.f32 %v2875_v29, %v1593_v2  ;;  %v3828_v31 = vadd.f32 %v1585_v35, %v1563_v57  ;;  %v1567_v8 = vpop.xlane.xlu1 %1566  ;;  %vm1795_vm8 = vweird.f32 %v2875_v29 }
 0x4a7   : > { %v2879_v61 = vpop.eup %2878  ;;  %v3832_v37 = vadd.f32 %v1567_v8, %v1557_v30  ;;  %v3836_v41 = vmul.f32 %v2877_v11, %v3705_v22  ;;  %v1562_v44 = vmul.f32 %v2877_v11, %v1262_v6  ;;  %vm1796_vm11 = vmor %vm1794_vm9, %vm1795_vm8 }
 0x4a8   : > { %v2881_v34 = vpop.eup %2880  ;;  %v1791_v33 = vsub.f32 1.0, %v1790_v46  ;;  %2886 = vrcp.f32 %v3828_v31  ;;  %v1559_v3 = vmul.f32 %v2879_v61, %v3818_v56  ;;  %v3845_v23 = vmul.f32 %v2879_v61, %v3709_v17 }
 0x4a9   : > { %v2883_v45 = vpop.eup %2882  ;;  %2888 = vrcp.f32 %v3832_v37  ;;  %v3848_v22 = vmul.f32 %v2881_v34, %v3711_v24  ;;  %v1828_v56 = vand.u32 2147483647, %v3828_v31  ;;  %v1830_v14 = vand.u32 2147483648, %v3828_v31 }
 0x4aa   : > { %v1792_v16 = vmul.f32 %v2875_v29, %v1791_v33  ;;  %v1558_v19 = vmul.f32 %v2883_v45, %v3808_v36  ;;  %v2885_v1 = vpop.eup %2884  ;;  %v1738_v36 = vand.u32 2147483647, %v3832_v37  ;;  %v1740_v24 = vand.u32 2147483648, %v3832_v37 }
 0x4ab   : > { %v1686_v49 = vpop.f32.mrf.mxu2  ;;  %v1573_v55 = vpop.xlane.xlu0 %1572  ;;  %v3859_v59 = vmul.f32 %v2883_v45, %v3713_v4  ;;  %v3862_v60 = vmul.f32 %v2885_v1, %v3716_v18  ;;  %v1564_v25 = vmul.f32 %v2881_v34, %v1268_v12  ;;  %vm1824_vm12 = vweird.f32 %v3828_v31 }
 0x4ac   : > { %v1793_v52 = vadd.f32 %v2875_v29, %v1792_v16  ;;  %v3850_v54 = vadd.f32 %v1573_v55, %v1559_v3  ;;  %v1725_v28 = vadd.f32 %v1686_v49, %v1601_v32  ;;  %vm1734_vm13 = vweird.f32 %v3832_v37 }
 0x4ad   : > { %v1256_v20 = vpop.xlane.xlu2 %1255  ;;  %vm3869_vm14 = vcmp.eq.f32.partialorder %v1828_v56, 8.507059e+37  ;;  %vm3874_vm15 = vcmp.eq.f32.partialorder %v1738_v36, 8.507059e+37  ;;  %v1741_v18 = vor.u32 1.1754944e-38, %v1740_v24  ;;  %v1831_v50 = vor.u32 1.1754944e-38, %v1830_v14 }
 0x4ae   : > { %v2887_v17 = vpop.eup %2886  ;;  %v1797_v43 = vsel %vm1796_vm11, %v2875_v29, %v1793_v52  ;;  %2890 = vrcp.f32 %v3850_v54  ;;  %v1582_v27 = vpop.xlane.xlu1 %1581  ;;  %v1560_v21 = vmul.f32 %v2885_v1, %v1256_v20  ;;  %v1768_v57 = vand.u32 2147483647, %v3850_v54 }
 0x4af   : > { %v1820_v58 = vmul.f32 %v2887_v17, %v3828_v31  ;;  %v1802_v5 = vsel %vm1799_vm10, %v1801_v0, %v1797_v43  ;;  %v2889_v15 = vpop.eup %2888  ;;  %v3864_v51 = vadd.f32 %v1582_v27, %v1562_v44  ;;  %v1628_v53 = vpop.f32.mrf.mxu0  ;;  %vm1825_vm0 = vweird.f32 %v2887_v17 }
 0x4b0   : > { %v1853_v62 = vmul.f32 %v1802_v5, %v1725_v28  ;;  %v1730_v63 = vmul.f32 %v2889_v15, %v3832_v37  ;;  %v1721_v10 = vadd.f32 %v1628_v53, %v1597_v40  ;;  %v1770_v29 = vand.u32 2147483648, %v3850_v54  ;;  %vm1826_vm2 = vmor %vm1824_vm12, %vm1825_vm0 }
 0x4b1   : > { %v1821_v2 = vsub.f32 1.0, %v1820_v58  ;;  %2892 = vrcp.f32 %v3864_v51  ;;  %vm1735_vm1 = vweird.f32 %v2889_v15  ;;  %v1813_v8 = vand.u32 2147483647, %v3864_v51 }
 0x4b2   : > { %1987 = vmatmul.f32.vlgmr.msrb.gmra.mxu2 %v1853_v62  ;;  %v1731_v6 = vsub.f32 1.0, %v1730_v63  ;;  %v1815_v32 = vand.u32 2147483648, %v3864_v51  ;;  %vm1736_vm3 = vmor %vm1734_vm13, %vm1735_vm1  ;;  %vm1764_vm5 = vweird.f32 %v3850_v54  ;;  %vm3902_vm6 = vcmp.eq.f32.partialorder %v1768_v57, 8.507059e+37 }
 0x4b3   : > { %v1822_v48 = vmul.f32 %v2887_v17, %v1821_v2  ;;  %v1570_v7 = vpop.xlane.xlu0 %1569  ;;  %v1689_v44 = vpop.f32.mrf.mxu2  ;;  %v1771_v36 = vor.u32 1.1754944e-38, %v1770_v29  ;;  %vm1809_vm8 = vweird.f32 %v3864_v51  ;;  %vm3911_vm9 = vcmp.eq.f32.partialorder %v1813_v8, 8.507059e+37 }
 0x4b4   : > { %v2891_v9 = vpop.eup %2890  ;;  %v1715_v12 = vpop.f32.mrf.mxu3  ;;  %v3878_v13 = vadd.f32 %v1570_v7, %v1558_v19  ;;  %v1732_v11 = vmul.f32 %v2889_v15, %v1731_v6  ;;  %v1816_v5 = vor.u32 1.1754944e-38, %v1815_v32 }
 0x4b5   : > { %v1760_v35 = vmul.f32 %v2891_v9, %v3850_v54  ;;  %v1823_v30 = vadd.f32 %v2887_v17, %v1822_v48  ;;  %v1576_v46 = vpop.xlane.xlu2 %1575  ;;  %v1727_v38 = vadd.f32 %v1715_v12, %v3839_v26  ;;  %vm1765_vm4 = vweird.f32 %v2891_v9  ;;  %v1657_v26 = vpop.f32.mrf.mxu1 }
 0x4b6   : > { %2894 = vrcp.f32 %v3878_v13  ;;  %v3886_v61 = vadd.f32 %v1576_v46, %v1560_v21  ;;  %v1733_v33 = vadd.f32 %v2889_v15, %v1732_v11  ;;  %v1588_v40 = vpop.xlane.xlu1 %1587  ;;  %v1723_v28 = vadd.f32 %v1657_v26, %v3845_v23  ;;  %vm1766_vm7 = vmor %vm1764_vm5, %vm1765_vm4 }
 0x4b7   : > { %v1761_v34 = vsub.f32 1.0, %v1760_v35  ;;  %v1827_v39 = vsel %vm1826_vm2, %v2887_v17, %v1823_v30  ;;  %v2893_v45 = vpop.eup %2892  ;;  %v3896_v3 = vadd.f32 %v1588_v40, %v1564_v25  ;;  %v1631_v52 = vpop.f32.mrf.mxu0  ;;  %v1726_v17 = vadd.f32 %v1689_v44, %v3836_v41 }
 0x4b8   : > { %v1832_v31 = vsel %vm3869_vm14, %v1831_v50, %v1827_v39  ;;  %2896 = vrcp.f32 %v3886_v61  ;;  %v1805_v16 = vmul.f32 %v2893_v45, %v3864_v51  ;;  %v1737_v19 = vsel %vm1736_vm3, %v2889_v15, %v1733_v33 }
 0x4b9   : > { %v1855_v49 = vmul.f32 %v1832_v31, %v1727_v38  ;;  %v1762_v55 = vmul.f32 %v2891_v9, %v1761_v34  ;;  %v1742_v1 = vsel %vm3874_vm15, %v1741_v18, %v1737_v19  ;;  %2898 = vrcp.f32 %v3896_v3 }
 0x4ba   : > { %v1849_v0 = vmul.f32 %v1742_v1, %v1721_v10  ;;  %v1806_v56 = vsub.f32 1.0, %v1805_v16  ;;  %v1722_v58 = vadd.f32 %v1631_v52, %v3859_v59  ;;  %vm1810_vm10 = vweird.f32 %v2893_v45  ;;  %v2827_v52 = vld [vmem:[%s3500_s4 + $0x4] ss:$0 sm:$0xff] }
 0x4bb   : > { %v1763_v20 = vadd.f32 %v2891_v9, %v1762_v55  ;;  %2010 = vmatmul.f32.vlgmr.msrb.gmra.mxu3 %v1855_v49  ;;  %v1753_v15 = vand.u32 2147483647, %v3878_v13  ;;  %vm1749_vm11 = vweird.f32 %v3878_v13  ;;  %v1755_v59 = vand.u32 2147483648, %v3878_v13  ;;  %vm1811_vm13 = vmor %vm1809_vm8, %vm1810_vm10 }
 0x4bc   : > { %v2895_v14 = vpop.eup %2894  ;;  %1941 = vmatmul.f32.vlgmr.msrb.gmra.mxu0 %v1849_v0  ;;  %v1807_v23 = vmul.f32 %v2893_v45, %v1806_v56  ;;  %vm1779_vm12 = vweird.f32 %v3886_v61  ;;  %v1783_v47 = vand.u32 2147483647, %v3886_v61  ;;  %v1785_v48 = vand.u32 2147483648, %v3886_v61  ;;  %v1718_v34 = vpop.f32.mrf.mxu3 }
 0x4bd   : > { %v1745_v43 = vmul.f32 %v2895_v14, %v3878_v13  ;;  %v1767_v24 = vsel %vm1766_vm7, %v2891_v9, %v1763_v20  ;;  %vm1750_vm14 = vweird.f32 %v2895_v14  ;;  %vm3928_vm15 = vcmp.eq.f32.partialorder %v1753_v15, 8.507059e+37  ;;  %v1660_v7 = vpop.f32.mrf.mxu1 }
 0x4be   : > { %v2897_v27 = vpop.eup %2896  ;;  %v1772_v41 = vsel %vm3902_vm6, %v1771_v36, %v1767_v24  ;;  %v1808_v63 = vadd.f32 %v2893_v45, %v1807_v23  ;;  %vm1751_vm1 = vmor %vm1749_vm11, %vm1750_vm14  ;;  %v1756_v29 = vor.u32 1.1754944e-38, %v1755_v59  ;;  %v1845_v35 = vand.u32 2147483648, %v3896_v3  ;;  %v2905_v23 = vld [vmem:[%s3474_s22 + $0x8] sm:$0xff] }
 0x4bf   : > { %v1775_v25 = vmul.f32 %v2897_v27, %v3886_v61  ;;  %v1851_v62 = vmul.f32 %v1772_v41, %v1723_v28  ;;  %v1746_v53 = vsub.f32 1.0, %v1745_v43  ;;  %v2899_v2 = vpop.eup %2898  ;;  %vm1780_vm0 = vweird.f32 %v2897_v27 }
 0x4c0   : > { %v1835_v4 = vmul.f32 %v2899_v2, %v3896_v3  ;;  %v1812_v6 = vsel %vm1811_vm13, %v2893_v45, %v1808_v63  ;;  %vm1840_vm2 = vweird.f32 %v2899_v2  ;;  %v1843_v8 = vand.u32 2147483647, %v3896_v3  ;;  %vm1781_vm3 = vmor %vm1779_vm12, %vm1780_vm0 }
 0x4c1   : > { %1964 = vmatmul.f32.vlgmr.msrb.gmra.mxu1 %v1851_v62  ;;  %v1747_v18 = vmul.f32 %v2895_v14, %v1746_v53  ;;  %v1776_v50 = vsub.f32 1.0, %v1775_v25  ;;  %v1817_v9 = vsel %vm3911_vm9, %v1816_v5, %v1812_v6  ;;  %v1724_v32 = vadd.f32 %v1660_v7, %v3862_v60 }
 0x4c2   : > { %v1836_v57 = vsub.f32 1.0, %v1835_v4  ;;  %v1854_v51 = vmul.f32 %v1817_v9, %v1726_v17  ;;  %vm1784_vm4 = vcmp.eq.f32.partialorder %v1783_v47, 8.507059e+37  ;;  %v1786_v13 = vor.u32 1.1754944e-38, %v1785_v48  ;;  %v2904_v17 = vld [vmem:[%s3474_s22] sm:$0xff] }
 0x4c3   : > { %v1748_v10 = vadd.f32 %v2895_v14, %v1747_v18  ;;  %v1777_v12 = vmul.f32 %v2897_v27, %v1776_v50  ;;  %vm1839_vm5 = vweird.f32 %v3896_v3  ;;  %v1846_v60 = vor.u32 1.1754944e-38, %v1845_v35  ;;  %v2826_v3 = vld [vmem:[%s4267_s2] ss:$0 sm:$0xff] }
 0x4c4   : > { %v1837_v46 = vmul.f32 %v2899_v2, %v1836_v57  ;;  %1990 = vmatmul.f32.gmra.mxu2 %v1854_v51  ;;  %vm1841_vm6 = vmor %vm1839_vm5, %vm1840_vm2  ;;  %v1728_v31 = vadd.f32 %v1718_v34, %v3848_v22  ;;  %vm1844_vm7 = vcmp.eq.f32.partialorder %v1843_v8, 8.507059e+37  ;;  %v3208_v7 = vmov 0.0  }
 0x4c5   : > { %v1752_v11 = vsel %vm1751_vm1, %v2895_v14, %v1748_v10  ;;  %v1778_v30 = vadd.f32 %v2897_v27, %v1777_v12  ;;  %2072 = vst [vmem:[#allocation4 + $0x8] sm:$0xff] %v3208_v7 }
 0x4c6   : > { %v1757_v33 = vsel %vm3928_vm15, %v1756_v29, %v1752_v11  ;;  %v1838_v40 = vadd.f32 %v2899_v2, %v1837_v46  ;;  %2073 = vst [vmem:[#allocation4] sm:$0xff] %v3208_v7  ;;  %v2828_v11 = vld [vmem:[%s3500_s4 + $0x2] ss:$0 sm:$0xff]  ;;  %v2829_v46 = vld [vmem:[%s3500_s4 + $0x3] ss:$0 sm:$0xff] }
 0x4c7   : > { %v1850_v38 = vmul.f32 %v1757_v33, %v1722_v58  ;;  %v1782_v39 = vsel %vm1781_vm3, %v2897_v27, %v1778_v30 }
 0x4c8   : > { %v1787_v45 = vsel %vm1784_vm4, %v1786_v13, %v1782_v39  ;;  %v1842_v19 = vsel %vm1841_vm6, %v2899_v2, %v1838_v40 }
 0x4c9   : > { %1944 = vmatmul.f32.gmra.mxu0 %v1850_v38  ;;  %v1852_v16 = vmul.f32 %v1787_v45, %v1724_v32  ;;  %v1847_v61 = vsel %vm1844_vm7, %v1846_v60, %v1842_v19 }
 0x4ca   : > { %v1856_v44 = vmul.f32 %v1847_v61, %v1728_v31 }
 0x4cb   : > { %1967 = vmatmul.f32.gmra.mxu1 %v1852_v16 }
 0x4cc   : > { %2013 = vmatmul.f32.gmra.mxu3 %v1856_v44 }
 0x535   : > { %v1988_v37 = vpop.f32.mrf.mxu2 }
 0x539   : > { %v1942_v49 = vpop.f32.mrf.mxu0 }
 0x53a   : > { %v1943_v26 = vadd.f32 %v2826_v3, %v1942_v49 }
 0x53e   : > { %v1965_v55 = vpop.f32.mrf.mxu1  ;;  %v2011_v0 = vpop.f32.mrf.mxu3 }
 0x53f   : > { %v1966_v1 = vadd.f32 %v1965_v55, %v1943_v26 }
 0x541   : > { %v1989_v22 = vadd.f32 %v1988_v37, %v1966_v1 }
 0x543   : > { %v2012_v20 = vadd.f32 %v2011_v0, %v1989_v22 }
 0x545   : > { %v2018_v36 = vmul.f32 %v2827_v52, %v2012_v20 }
 0x546   : > { %v1945_v56 = vpop.f32.mrf.mxu0 }
 0x547   : > { %v1946_v14 = vadd.f32 %v2826_v3, %v1945_v56  ;;  %v2020_v28 = vadd.f32 %v2904_v17, %v2018_v36  ;;  %v1991_v24 = vpop.f32.mrf.mxu2 }
 0x548   : > { %v1968_v54 = vpop.f32.mrf.mxu1 }
 0x549   : > { %2024 = vadd.xlane.f32.xlu0 %v2020_v28  ;;  %2022 = vst [vmem:[#allocation2] sm:$0xff] %v2020_v28  ;;  %v1969_v43 = vadd.f32 %v1968_v54, %v1946_v14 }
 0x54b   : > { %v1992_v58 = vadd.f32 %v1991_v24, %v1969_v43 }
 0x54f   : > { %v2014_v5 = vpop.f32.mrf.mxu3 }
 0x550   : > { %v2015_v27 = vadd.f32 %v2014_v5, %v1992_v58 }
 0x552   : > { %v2019_v41 = vmul.f32 %v2827_v52, %v2015_v27 }
 0x554   : > { %v2021_v15 = vadd.f32 %v2905_v23, %v2019_v41 }
 0x556   : > { %2026 = vadd.xlane.f32.xlu1 %v2021_v15  ;;  %2023 = vst [vmem:[#allocation2 + $0x8] sm:$0xff] %v2021_v15 }
 0x5bc   : > { %v2025_v25 = vpop.xlane.xlu0 %2024 }
 0x5bd   : > { %v2028_v62 = vmul.f32 %v2025_v25, %v3526_v42 }
 0x5bf   : > { %v2030_v53 = vsub.f32 %v2020_v28, %v2028_v62 }
 0x5c1   : > { %v2032_v2 = vmul.f32 %v2030_v53, %v2030_v53 }
 0x5c3   : > { %2034 = vadd.xlane.f32.xlu2 %v2032_v2 }
 0x5c9   : > { %v2027_v63 = vpop.xlane.xlu1 %2026 }
 0x5ca   : > { %v2029_v59 = vmul.f32 %v2027_v63, %v3526_v42 }
 0x5cc   : > { %v2031_v47 = vsub.f32 %v2021_v15, %v2029_v59 }
 0x5ce   : > { %v2033_v4 = vmul.f32 %v2031_v47, %v2031_v47 }
 0x5d0   : > { %2036 = vadd.xlane.f32.xlu0 %v2033_v4 }
 0x636   : > { %v2035_v18 = vpop.xlane.xlu2 %2034 }
 0x637   : > { %v2038_v50 = vmul.f32 %v2035_v18, %v3526_v42 }
 0x639   : > { %v2040_v6 = vadd.f32 1e-06, %v2038_v50 }
 0x63b   : > { %2900 = vrsqrt.f32 %v2040_v6  ;;  %vm2048_vm9 = vweird.f32 %v2040_v6 }
 0x641   : > { %v2901_v21 = vpop.eup %2900 }
 0x642   : > { %v2043_v48 = vmul.f32 %v2901_v21, %v2040_v6  ;;  %vm2049_vm8 = vweird.f32 %v2901_v21 }
 0x643   : > { %v2037_v10 = vpop.xlane.xlu0 %2036  ;;  %vm2050_vm10 = vmor %vm2048_vm9, %vm2049_vm8 }
 0x644   : > { %v2044_v9 = vmul.f32 %v2901_v21, %v2043_v48  ;;  %v2039_v12 = vmul.f32 %v2037_v10, %v3526_v42 }
 0x646   : > { %v2045_v57 = vmul.f32 0.5, %v2044_v9  ;;  %v2041_v51 = vadd.f32 1e-06, %v2039_v12 }
 0x648   : > { %v2046_v29 = vsub.f32 1.5, %v2045_v57  ;;  %2902 = vrsqrt.f32 %v2041_v51  ;;  %vm2058_vm12 = vweird.f32 %v2041_v51 }
 0x64a   : > { %v2047_v35 = vmul.f32 %v2901_v21, %v2046_v29 }
 0x64c   : > { %v2051_v30 = vsel %vm2050_vm10, %v2901_v21, %v2047_v35 }
 0x64d   : > { %v2062_v8 = vmul.f32 %v2051_v30, %v2030_v53 }
 0x64e   : > { %v2903_v32 = vpop.eup %2902 }
 0x64f   : > { %v2065_v34 = vmul.f32 %v2828_v11, %v2062_v8  ;;  %v2053_v33 = vmul.f32 %v2903_v32, %v2041_v51  ;;  %vm2059_vm11 = vweird.f32 %v2903_v32 }
 0x650   : > { %vm2060_vm13 = vmor %vm2058_vm12, %vm2059_vm11 }
 0x651   : > { %v2068_v13 = vadd.f32 %v2829_v46, %v2065_v34  ;;  %v2054_v38 = vmul.f32 %v2903_v32, %v2053_v33 }
 0x653   : > { %2070 = vst [vmem:[#allocation3 + $0x8] sm:$0xff] %v2068_v13  ;;  %v2055_v39 = vmul.f32 0.5, %v2054_v38 }
 0x655   : > { %v2056_v42 = vsub.f32 1.5, %v2055_v39 }
 0x657   : > { %v2057_v40 = vmul.f32 %v2903_v32, %v2056_v42 }
 0x659   : > { %v2061_v45 = vsel %vm2060_vm13, %v2903_v32, %v2057_v40 }
 0x65a   : > { %v2063_v60 = vmul.f32 %v2061_v45, %v2031_v47 }
 0x65c   : > { %v2066_v31 = vmul.f32 %v2828_v11, %v2063_v60 }
 0x65e   : > { %v2069_v16 = vadd.f32 %v2829_v46, %v2066_v31 }
 0x660   : > { %2071 = vst [vmem:[#allocation3] sm:$0xff] %v2069_v16 }
 0x661 PF: > { %v2106_v19 = vld [vmem:[%s3486_s3 + $0xf0] sm:$0xff]  ;;  %v2107_v61 = vld [vmem:[%s3486_s3 + $0xf8] sm:$0xff]  ;;  %v2104_v44 = vld [vmem:[%s3486_s3 + $0xe0] sm:$0xff]  ;;  %s4269_s7 = sld [smem:[#allocation21_spill]] }
 0x662   : > { %2114 = vmatpush.msra.mxu0 %v2106_v19  ;;  %2137 = vmatpush.msra.mxu1 %v2107_v61  ;;  %v2105_v3 = vld [vmem:[%s3486_s3 + $0xe8] sm:$0xff]  ;;  %v2102_v49 = vld [vmem:[%s3486_s3 + $0xd0] sm:$0xff]  ;;  %v2103_v26 = vld [vmem:[%s3486_s3 + $0xd8] sm:$0xff] }
 0x663   : > { %v2100_v55 = vld [vmem:[%s3486_s3 + $0xc0] sm:$0xff]  ;;  %v2101_v1 = vld [vmem:[%s3486_s3 + $0xc8] sm:$0xff]  ;;  %v2098_v37 = vld [vmem:[%s3486_s3 + $0xb0] sm:$0xff] }
 0x664   : > { %2115 = vmatpush.msra.mxu0 %v2104_v44  ;;  %2138 = vmatpush.msra.mxu1 %v2105_v3  ;;  %v2099_v22 = vld [vmem:[%s3486_s3 + $0xb8] sm:$0xff]  ;;  %v2096_v52 = vld [vmem:[%s3486_s3 + $0xa0] sm:$0xff]  ;;  %v2097_v0 = vld [vmem:[%s3486_s3 + $0xa8] sm:$0xff] }
 0x665   : > { %v2094_v20 = vld [vmem:[%s3486_s3 + $0x90] sm:$0xff]  ;;  %v2095_v36 = vld [vmem:[%s3486_s3 + $0x98] sm:$0xff]  ;;  %v2092_v56 = vld [vmem:[%s3486_s3 + $0x80] sm:$0xff] }
 0x666   : > { %2116 = vmatpush.msra.mxu0 %v2102_v49  ;;  %2139 = vmatpush.msra.mxu1 %v2103_v26  ;;  %v2093_v14 = vld [vmem:[%s3486_s3 + $0x88] sm:$0xff]  ;;  %v2090_v17 = vld [vmem:[%s3486_s3 + $0x70] sm:$0xff]  ;;  %v2091_v28 = vld [vmem:[%s3486_s3 + $0x78] sm:$0xff] }
 0x667   : > { %v2088_v54 = vld [vmem:[%s3486_s3 + $0x60] sm:$0xff]  ;;  %v2089_v43 = vld [vmem:[%s3486_s3 + $0x68] sm:$0xff]  ;;  %v2086_v24 = vld [vmem:[%s3486_s3 + $0x50] sm:$0xff]  ;;  %p2670_p3 = scmp.ne.s32.totalorder %s4269_s7, 1 }
 0x668   : > { %2117 = vmatpush.msra.mxu0 %v2100_v55  ;;  %2140 = vmatpush.msra.mxu1 %v2101_v1  ;;  %v2087_v58 = vld [vmem:[%s3486_s3 + $0x58] sm:$0xff]  ;;  %v2084_v5 = vld [vmem:[%s3486_s3 + $0x40] sm:$0xff]  ;;  %v2085_v27 = vld [vmem:[%s3486_s3 + $0x48] sm:$0xff]  ;;  %s4270_s30 = sld [smem:[#allocation37_spill]] (!%p2670_p3) }
 0x669   : > { %v2082_v41 = vld [vmem:[%s3486_s3 + $0x30] sm:$0xff]  ;;  %v2083_v23 = vld [vmem:[%s3486_s3 + $0x38] sm:$0xff]  ;;  %v2080_v15 = vld [vmem:[%s3486_s3 + $0x20] sm:$0xff] }
 0x66a   : > { %2118 = vmatpush.msra.mxu0 %v2098_v37  ;;  %2141 = vmatpush.msra.mxu1 %v2099_v22  ;;  %v2081_v25 = vld [vmem:[%s3486_s3 + $0x28] sm:$0xff]  ;;  %v2078_v62 = vld [vmem:[%s3486_s3 + $0x10] sm:$0xff]  ;;  %v2079_v53 = vld [vmem:[%s3486_s3 + $0x18] sm:$0xff] }
 0x66b   : > { %v2076_v2 = vld [vmem:[%s3486_s3] sm:$0xff]  ;;  %v2077_v63 = vld [vmem:[%s3486_s3 + $0x8] sm:$0xff]  ;;  %v2353_v4 = vld [vmem:[%s3506_s10 + $0x78] sm:$0xff] }
 0x66c   : > { %2119 = vmatpush.msra.mxu0 %v2096_v52  ;;  %2142 = vmatpush.msra.mxu1 %v2097_v0  ;;  %v2074_v59 = vld [vmem:[#allocation3 + $0x8] sm:$0xff]  ;;  %v2075_v47 = vld [vmem:[#allocation3] sm:$0xff]  ;;  %v2369_v18 = vld [vmem:[%s3506_s10 + $0xf8] sm:$0xff] }
 0x66d   : > { %2370 = vmatpush.msra.mxu2 %v2353_v4  ;;  %2393 = vmatpush.msra.mxu3 %v2369_v18  ;;  %v2352_v50 = vld [vmem:[%s3506_s10 + $0x70] sm:$0xff]  ;;  %v2351_v48 = vld [vmem:[%s3506_s10 + $0x68] sm:$0xff]  ;;  %v2350_v12 = vld [vmem:[%s3506_s10 + $0x60] sm:$0xff] }
 0x66e   : > { %2120 = vmatpush.msra.mxu0 %v2094_v20  ;;  %2143 = vmatpush.msra.mxu1 %v2095_v36  ;;  %v2368_v6 = vld [vmem:[%s3506_s10 + $0xf0] sm:$0xff]  ;;  %v2367_v7 = vld [vmem:[%s3506_s10 + $0xe8] sm:$0xff]  ;;  %v2366_v57 = vld [vmem:[%s3506_s10 + $0xe0] sm:$0xff] }
 0x66f   : > { %v2108_v21 = vld [vmem:[%s541_s13] sm:$0x3]  ;;  %2371 = vmatpush.msra.mxu2 %v2352_v50  ;;  %2394 = vmatpush.msra.mxu3 %v2368_v6  ;;  %v2349_v51 = vld [vmem:[%s3506_s10 + $0x58] sm:$0xff]  ;;  %v2347_v13 = vld [vmem:[%s3506_s10 + $0x48] sm:$0xff] }
 0x670   : > { %2121 = vmatpush.msra.mxu0 %v2092_v56  ;;  %2144 = vmatpush.msra.mxu1 %v2093_v14  ;;  %v2110_v9 = vperm.slane %v2108_v21, 0  ;;  %v2111_v10 = vperm.slane %v2108_v21, 1  ;;  %v2365_v29 = vld [vmem:[%s3506_s10 + $0xd8] sm:$0xff]  ;;  %v2348_v8 = vld [vmem:[%s3506_s10 + $0x50] sm:$0xff]  ;;  %v2363_v38 = vld [vmem:[%s3506_s10 + $0xc8] sm:$0xff] }
 0x671   : > { %2372 = vmatpush.msra.mxu2 %v2351_v48  ;;  %2395 = vmatpush.msra.mxu3 %v2367_v7  ;;  %v2364_v32 = vld [vmem:[%s3506_s10 + $0xd0] sm:$0xff]  ;;  %v2346_v40 = vld [vmem:[%s3506_s10 + $0x40] sm:$0xff]  ;;  %v2345_v60 = vld [vmem:[%s3506_s10 + $0x38] sm:$0xff] }
 0x672   : > { %2122 = vmatpush.msra.mxu0 %v2090_v17  ;;  %2145 = vmatpush.msra.mxu1 %v2091_v28  ;;  %v2362_v45 = vld [vmem:[%s3506_s10 + $0xc0] sm:$0xff]  ;;  %v2361_v31 = vld [vmem:[%s3506_s10 + $0xb8] sm:$0xff]  ;;  %v2344_v3 = vld [vmem:[%s3506_s10 + $0x30] sm:$0xff] }
 0x673   : > { %2373 = vmatpush.msra.mxu2 %v2350_v12  ;;  %2396 = vmatpush.msra.mxu3 %v2366_v57  ;;  %v2360_v49 = vld [vmem:[%s3506_s10 + $0xb0] sm:$0xff]  ;;  %v2343_v22 = vld [vmem:[%s3506_s10 + $0x28] sm:$0xff]  ;;  %v2342_v17 = vld [vmem:[%s3506_s10 + $0x20] sm:$0xff] }
 0x674   : > { %2123 = vmatpush.msra.mxu0 %v2088_v54  ;;  %2146 = vmatpush.msra.mxu1 %v2089_v43  ;;  %v2359_v52 = vld [vmem:[%s3506_s10 + $0xa8] sm:$0xff]  ;;  %v2358_v28 = vld [vmem:[%s3506_s10 + $0xa0] sm:$0xff] }
 0x675   : > { %2374 = vmatpush.msra.mxu2 %v2349_v51  ;;  %2397 = vmatpush.msra.mxu3 %v2365_v29  ;;  %v2339_v21 = vld [vmem:[%s3506_s10 + $0x8] sm:$0xff]  ;;  %v2338_v29 = vld [vmem:[%s3506_s10] sm:$0xff] }
 0x676   : > { %2124 = vmatpush.msra.mxu0 %v2086_v24  ;;  %2147 = vmatpush.msra.mxu1 %v2087_v58  ;;  %v2355_v48 = vld [vmem:[%s3506_s10 + $0x88] sm:$0xff] }
 0x677   : > { %2375 = vmatpush.msra.mxu2 %v2348_v8  ;;  %2398 = vmatpush.msra.mxu3 %v2364_v32 }
 0x678   : > { %2125 = vmatpush.msra.mxu0 %v2084_v5  ;;  %2148 = vmatpush.msra.mxu1 %v2085_v27 }
 0x679   : > { %2376 = vmatpush.msra.mxu2 %v2347_v13  ;;  %2399 = vmatpush.msra.mxu3 %v2363_v38 }
 0x67a   : > { %2126 = vmatpush.msra.mxu0 %v2082_v41  ;;  %2149 = vmatpush.msra.mxu1 %v2083_v23  ;;  %v2341_v41 = vld [vmem:[%s3506_s10 + $0x18] sm:$0xff] }
 0x67b   : > { %2377 = vmatpush.msra.mxu2 %v2346_v40  ;;  %2400 = vmatpush.msra.mxu3 %v2362_v45  ;;  %v2357_v23 = vld [vmem:[%s3506_s10 + $0x98] sm:$0xff] }
 0x67c   : > { %2127 = vmatpush.msra.mxu0 %v2080_v15  ;;  %2150 = vmatpush.msra.mxu1 %v2081_v25 }
 0x67d   : > { %2378 = vmatpush.msra.mxu2 %v2345_v60  ;;  %2401 = vmatpush.msra.mxu3 %v2361_v31 }
 0x67e   : > { %2128 = vmatpush.msra.mxu0 %v2078_v62  ;;  %2151 = vmatpush.msra.mxu1 %v2079_v53 }
 0x67f   : > { %2379 = vmatpush.msra.mxu2 %v2344_v3  ;;  %2402 = vmatpush.msra.mxu3 %v2360_v49 }
 0x680   : > { %2129 = vmatpush.msra.mxu0 %v2076_v2  ;;  %2152 = vmatpush.msra.mxu1 %v2077_v63 }
 0x681   : > { %2130 = vmatmul.f32.vlgmr.msra.gmra.mxu0 %v2074_v59  ;;  %2153 = vmatmul.f32.vlgmr.msra.gmra.mxu1 %v2074_v59  ;;  %v2340_v59 = vld [vmem:[%s3506_s10 + $0x10] sm:$0xff] }
 0x682   : > { %2380 = vmatpush.msra.mxu2 %v2343_v22  ;;  %2403 = vmatpush.msra.mxu3 %v2359_v52 }
 0x684   : > { %2381 = vmatpush.msra.mxu2 %v2342_v17  ;;  %2404 = vmatpush.msra.mxu3 %v2358_v28 }
 0x686   : > { %2382 = vmatpush.msra.mxu2 %v2341_v41  ;;  %2405 = vmatpush.msra.mxu3 %v2357_v23 }
 0x688   : > { %2383 = vmatpush.msra.mxu2 %v2340_v59 }
 0x689   : > { %2133 = vmatmul.f32.gmra.mxu0 %v2075_v47  ;;  %2156 = vmatmul.f32.gmra.mxu1 %v2075_v47  ;;  %v2356_v47 = vld [vmem:[%s3506_s10 + $0x90] sm:$0xff] }
 0x68a   : > { %2406 = vmatpush.msra.mxu3 %v2356_v47  ;;  %2384 = vmatpush.msra.mxu2 %v2339_v21 }
 0x68c   : > { %2407 = vmatpush.msra.mxu3 %v2355_v48  ;;  %2385 = vmatpush.msra.mxu2 %v2338_v29 }
 0x6fe   : > { %v2131_v35 = vpop.f32.mrf.mxu0  ;;  %v2154_v11 = vpop.f32.mrf.mxu1 }
 0x6ff   : > { %v4007_v30 = vadd.f32 %v2131_v35, %v2110_v9  ;;  %v4009_v46 = vadd.f32 %v2154_v11, %v2111_v10  ;;  %v2354_v35 = vld [vmem:[%s3506_s10 + $0x80] sm:$0xff] }
 0x700   : > { %2408 = vmatpush.msra.mxu3 %v2354_v35 }
 0x701   : > { %v4014_v34 = vmul.f32 0.70710677, %v4007_v30  ;;  %v4017_v33 = vmul.f32 0.70710677, %v4009_v46 }
 0x703   : > { %v2168_v39 = vmul.f32 %v4014_v34, %v4014_v34  ;;  %v2208_v42 = vmul.f32 %v4017_v33, %v4017_v33 }
 0x705   : > { %v4029_v16 = vmin.f32 %v2168_v39, 16.0  ;;  %v4031_v19 = vmin.f32 %v2208_v42, 16.0 }
 0x706   : > { %v2134_v61 = vpop.f32.mrf.mxu0  ;;  %v2157_v44 = vpop.f32.mrf.mxu1 }
 0x707   : > { %v2170_v26 = vmul.f32 2.1237322e-06, %v4029_v16  ;;  %v2210_v55 = vmul.f32 2.1237322e-06, %v4031_v19  ;;  %v4037_v1 = vadd.f32 %v2134_v61, %v2110_v9  ;;  %v4039_v37 = vadd.f32 %v2157_v44, %v2111_v10 }
 0x708   : > { %v2181_v0 = vmul.f32 3.8918573e-05, %v4029_v16  ;;  %v2221_v58 = vmul.f32 3.8918573e-05, %v4031_v19 }
 0x709   : > { %v2171_v20 = vadd.f32 0.00028619796, %v2170_v26  ;;  %v2211_v36 = vadd.f32 0.00028619796, %v2210_v55  ;;  %v4045_v56 = vmul.f32 0.70710677, %v4037_v1 }
 0x70a   : > { %v4048_v14 = vmul.f32 0.70710677, %v4039_v37  ;;  %v2182_v24 = vadd.f32 0.001143296, %v2181_v0  ;;  %v2222_v53 = vadd.f32 0.001143296, %v2221_v58 }
 0x70b   : > { %v2172_v54 = vmul.f32 %v2171_v20, %v4029_v16  ;;  %v2212_v43 = vmul.f32 %v2211_v36, %v4031_v19  ;;  %v2248_v5 = vmul.f32 %v4045_v56, %v4045_v56 }
 0x70c   : > { %v2288_v27 = vmul.f32 %v4048_v14, %v4048_v14  ;;  %v2183_v62 = vmul.f32 %v2182_v24, %v4029_v16  ;;  %v2223_v50 = vmul.f32 %v2222_v53, %v4031_v19 }
 0x70d   : > { %v2173_v15 = vadd.f32 0.0036580483, %v2172_v54  ;;  %v2213_v25 = vadd.f32 0.0036580483, %v2212_v43  ;;  %v4062_v2 = vmin.f32 %v2248_v5, 16.0 }
 0x70e   : > { %v4064_v63 = vmin.f32 %v2288_v27, 16.0  ;;  %v2184_v18 = vadd.f32 0.014752088, %v2183_v62  ;;  %v2224_v57 = vadd.f32 0.014752088, %v2223_v50 }
 0x70f   : > { %v2174_v4 = vmul.f32 %v2173_v15, %v4029_v16  ;;  %v2250_v6 = vmul.f32 2.1237322e-06, %v4062_v2  ;;  %v2261_v7 = vmul.f32 3.8918573e-05, %v4062_v2  ;;  %v2214_v9 = vmul.f32 %v2213_v25, %v4031_v19 }
 0x710   : > { %v2290_v10 = vmul.f32 2.1237322e-06, %v4064_v63  ;;  %v2185_v12 = vmul.f32 %v2184_v18, %v4029_v16  ;;  %v2225_v13 = vmul.f32 %v2224_v57, %v4031_v19  ;;  %v2301_v42 = vmul.f32 3.8918573e-05, %v4064_v63 }
 0x711   : > { %v2251_v51 = vadd.f32 0.00028619796, %v2250_v6  ;;  %v2262_v11 = vadd.f32 0.001143296, %v2261_v7  ;;  %v2175_v8 = vadd.f32 0.05243302, %v2174_v4 }
 0x712   : > { %v2186_v32 = vadd.f32 0.112945676, %v2185_v12  ;;  %v2215_v40 = vadd.f32 0.05243302, %v2214_v9  ;;  %v2291_v45 = vadd.f32 0.00028619796, %v2290_v10 }
 0x713   : > { %v2252_v38 = vmul.f32 %v2251_v51, %v4062_v2  ;;  %v2263_v39 = vmul.f32 %v2262_v11, %v4062_v2  ;;  %v2226_v31 = vadd.f32 0.112945676, %v2225_v13  ;;  %v2176_v3 = vmul.f32 %v2175_v8, %v4029_v16 }
 0x714   : > { %v2187_v60 = vmul.f32 %v2186_v32, %v4029_v16  ;;  %v2302_v22 = vadd.f32 0.001143296, %v2301_v42  ;;  %v2216_v52 = vmul.f32 %v2215_v40, %v4031_v19  ;;  %v2292_v0 = vmul.f32 %v2291_v45, %v4064_v63 }
 0x715   : > { %v2253_v61 = vadd.f32 0.0036580483, %v2252_v38  ;;  %v2264_v44 = vadd.f32 0.014752088, %v2263_v39  ;;  %v2227_v26 = vmul.f32 %v2226_v31, %v4031_v19  ;;  %v2177_v43 = vadd.f32 0.18741608, %v2176_v3 }
 0x716   : > { %v2188_v49 = vadd.f32 0.4994258, %v2187_v60  ;;  %v2303_v54 = vmul.f32 %v2302_v22, %v4064_v63  ;;  %v2217_v41 = vadd.f32 0.18741608, %v2216_v52  ;;  %v2293_v23 = vadd.f32 0.0036580483, %v2292_v0 }
 0x717   : > { %v2265_v55 = vmul.f32 %v2264_v44, %v4062_v2  ;;  %v2228_v36 = vadd.f32 0.4994258, %v2227_v26  ;;  %v2254_v17 = vmul.f32 %v2253_v61, %v4062_v2  ;;  %v2178_v53 = vmul.f32 %v2177_v43, %v4029_v16 }
 0x718   : > { %v2189_v20 = vmul.f32 %v2188_v49, %v4029_v16  ;;  %v2304_v27 = vadd.f32 0.014752088, %v2303_v54  ;;  %v2218_v47 = vmul.f32 %v2217_v41, %v4031_v19  ;;  %v2294_v4 = vmul.f32 %v2293_v23, %v4064_v63 }
 0x719   : > { %v2266_v28 = vadd.f32 0.112945676, %v2265_v55  ;;  %v2229_v58 = vmul.f32 %v2228_v36, %v4031_v19  ;;  %v2255_v15 = vadd.f32 0.05243302, %v2254_v17  ;;  %v2179_v48 = vadd.f32 1.1283791, %v2178_v53 }
 0x71a   : > { %v2190_v24 = vadd.f32 1.0, %v2189_v20  ;;  %v2305_v62 = vmul.f32 %v2304_v27, %v4064_v63  ;;  %v2219_v12 = vadd.f32 1.1283791, %v2218_v47  ;;  %v2295_v16 = vadd.f32 0.05243302, %v2294_v4 }
 0x71b   : > { %v2267_v5 = vmul.f32 %v2266_v28, %v4062_v2  ;;  %v2230_v25 = vadd.f32 1.0, %v2229_v58  ;;  %v2256_v6 = vmul.f32 %v2255_v15, %v4062_v2  ;;  %v2180_v35 = vmul.f32 %v2179_v48, %v4014_v34 }
 0x71c   : > { %2906 = vrcp.f32 %v2190_v24  ;;  %v2306_v50 = vadd.f32 0.112945676, %v2305_v62  ;;  %v2202_v11 = vand.u32 2147483648, %v2190_v24  ;;  %v2200_v13 = vand.u32 2147483647, %v2190_v24 }
 0x71d   : > { %v2268_v59 = vadd.f32 0.4994258, %v2267_v5  ;;  %2908 = vrcp.f32 %v2230_v25  ;;  %v2257_v19 = vadd.f32 0.18741608, %v2256_v6  ;;  %v2220_v39 = vmul.f32 %v2219_v12, %v4017_v33 }
 0x71e   : > { %v2307_v9 = vmul.f32 %v2306_v50, %v4064_v63  ;;  %v2296_v42 = vmul.f32 %v2295_v16, %v4064_v63  ;;  %vm2196_vm15 = vweird.f32 %v2190_v24  ;;  %v2242_v31 = vand.u32 2147483648, %v2230_v25 }
 0x71f   : > { %v2269_v18 = vmul.f32 %v2268_v59, %v4062_v2  ;;  %v2258_v45 = vmul.f32 %v2257_v19, %v4062_v2  ;;  %v2203_v44 = vor.u32 1.1754944e-38, %v2202_v11  ;;  %v2240_v49 = vand.u32 2147483647, %v2230_v25 }
 0x720   : > { %v2308_v29 = vadd.f32 0.4994258, %v2307_v9  ;;  %vm2201_vm2 = vcmp.eq.f32.partialorder %v2200_v13, 8.507059e+37  ;;  %v2297_v55 = vadd.f32 0.18741608, %v2296_v42  ;;  %vm2236_vm3 = vweird.f32 %v2230_v25 }
 0x721   : > { %v4100_v7 = vadd.f32 1.0, %v2269_v18  ;;  %v2259_v2 = vadd.f32 1.1283791, %v2258_v45  ;;  %v2243_v20 = vor.u32 1.1754944e-38, %v2242_v31  ;;  %vm2241_vm5 = vcmp.eq.f32.partialorder %v2240_v49, 8.507059e+37 }
 0x722   : > { %v2907_v21 = vpop.eup %2906  ;;  %v2309_v38 = vmul.f32 %v2308_v29, %v4064_v63  ;;  %v2160_v5 = vmul.f32 0.5, %v4007_v30  ;;  %v2298_v23 = vmul.f32 %v2297_v55, %v4064_v63  ;;  %v2161_v30 = vmul.f32 0.5, %v4009_v46 }
 0x723   : > { %v2192_v10 = vmul.f32 %v2907_v21, %v2190_v24  ;;  %2910 = vrcp.f32 %v4100_v7  ;;  %v2909_v57 = vpop.eup %2908  ;;  %vm2197_vm14 = vweird.f32 %v2907_v21  ;;  %v2280_v28 = vand.u32 2147483647, %v4100_v7 }
 0x724   : > { %v2232_v8 = vmul.f32 %v2909_v57, %v2230_v25  ;;  %v4109_v61 = vadd.f32 1.0, %v2309_v38  ;;  %vm2198_vm0 = vmor %vm2196_vm15, %vm2197_vm14  ;;  %vm2237_vm1 = vweird.f32 %v2909_v57  ;;  %v2282_v54 = vand.u32 2147483648, %v4100_v7 }
 0x725   : > { %v2193_v51 = vsub.f32 1.0, %v2192_v10  ;;  %vm2238_vm4 = vmor %vm2236_vm3, %vm2237_vm1  ;;  %vm2276_vm7 = vweird.f32 %v4100_v7  ;;  %v2260_v47 = vmul.f32 %v2259_v2, %v4045_v56  ;;  %vm2281_vm9 = vcmp.eq.f32.partialorder %v2280_v28, 8.507059e+37 }
 0x726   : > { %v2233_v40 = vsub.f32 1.0, %v2232_v8  ;;  %2912 = vrcp.f32 %v4109_v61  ;;  %v2283_v53 = vor.u32 1.1754944e-38, %v2282_v54  ;;  %v2299_v63 = vadd.f32 1.1283791, %v2298_v23 }
 0x727   : > { %v2194_v32 = vmul.f32 %v2907_v21, %v2193_v51  ;;  %v2320_v12 = vand.u32 2147483647, %v4109_v61  ;;  %vm2316_vm11 = vweird.f32 %v4109_v61  ;;  %v2162_v46 = vmul.f32 0.5, %v4037_v1 }
 0x728   : > { %v2234_v3 = vmul.f32 %v2909_v57, %v2233_v40  ;;  %v2300_v51 = vmul.f32 %v2299_v63, %v4048_v14  ;;  %v2163_v13 = vmul.f32 0.5, %v4039_v37  ;;  %v2336_v40 = vld [vmem:[#allocation4 + $0x8] sm:$0xff]  ;;  %v2337_v14 = vld [vmem:[#allocation4] sm:$0xff] }
 0x729   : > { %v2195_v60 = vadd.f32 %v2907_v21, %v2194_v32  ;;  %v2911_v34 = vpop.eup %2910  ;;  %vm2321_vm13 = vcmp.eq.f32.partialorder %v2320_v12, 8.507059e+37 }
 0x72a   : > { %v2272_v33 = vmul.f32 %v2911_v34, %v4100_v7  ;;  %v2235_v52 = vadd.f32 %v2909_v57, %v2234_v3  ;;  %vm2277_vm6 = vweird.f32 %v2911_v34  ;;  %v2322_v7 = vand.u32 2147483648, %v4109_v61 }
 0x72b   : > { %v2199_v26 = vsel %vm2198_vm0, %v2907_v21, %v2195_v60  ;;  %vm2278_vm8 = vmor %vm2276_vm7, %vm2277_vm6 }
 0x72c   : > { %v2204_v22 = vsel %vm2201_vm2, %v2203_v44, %v2199_v26  ;;  %v2273_v36 = vsub.f32 1.0, %v2272_v33  ;;  %v2239_v17 = vsel %vm2238_vm4, %v2909_v57, %v2235_v52  ;;  %v2913_v41 = vpop.eup %2912  ;;  %v2323_v19 = vor.u32 1.1754944e-38, %v2322_v7 }
 0x72d   : > { %v2205_v0 = vmul.f32 %v2204_v22, %v2180_v35  ;;  %v2244_v24 = vsel %vm2241_vm5, %v2243_v20, %v2239_v17  ;;  %v2312_v59 = vmul.f32 %v2913_v41, %v4109_v61  ;;  %vm2317_vm10 = vweird.f32 %v2913_v41 }
 0x72e   : > { %v2274_v58 = vmul.f32 %v2911_v34, %v2273_v36  ;;  %v2245_v27 = vmul.f32 %v2244_v24, %v2220_v39  ;;  %vm2318_vm12 = vmor %vm2316_vm11, %vm2317_vm10 }
 0x72f   : > { %v2666_v43 = vclamps-f32 %v2205_v0, 1.0  ;;  %v2313_v21 = vsub.f32 1.0, %v2312_v59 }
 0x730   : > { %v2275_v25 = vadd.f32 %v2911_v34, %v2274_v58  ;;  %v2667_v62 = vclamps-f32 %v2245_v27, 1.0 }
 0x731   : > { %v2328_v15 = vadd.f32 1.0, %v2666_v43  ;;  %v2314_v10 = vmul.f32 %v2913_v41, %v2313_v21 }
 0x732   : > { %v2279_v18 = vsel %vm2278_vm8, %v2911_v34, %v2275_v25  ;;  %v2329_v50 = vadd.f32 1.0, %v2667_v62 }
 0x733   : > { %v2332_v4 = vmul.f32 %v2328_v15, %v2160_v5  ;;  %v2284_v6 = vsel %vm2281_vm9, %v2283_v53, %v2279_v18  ;;  %v2315_v56 = vadd.f32 %v2913_v41, %v2314_v10 }
 0x734   : > { %v2285_v48 = vmul.f32 %v2284_v6, %v2260_v47  ;;  %v2333_v9 = vmul.f32 %v2329_v50, %v2161_v30 }
 0x735   : > { %2386 = vmatmul.f32.vlgmr.msra.gmra.mxu2 %v2332_v4  ;;  %v2319_v29 = vsel %vm2318_vm12, %v2913_v41, %v2315_v56 }
 0x736   : > { %v2668_v16 = vclamps-f32 %v2285_v48, 1.0  ;;  %2409 = vmatmul.f32.vlgmr.msra.gmra.mxu3 %v2333_v9  ;;  %v2324_v11 = vsel %vm2321_vm13, %v2323_v19, %v2319_v29 }
 0x737   : > { %v2325_v8 = vmul.f32 %v2324_v11, %v2300_v51 }
 0x738   : > { %v2330_v57 = vadd.f32 1.0, %v2668_v16 }
 0x739   : > { %v2669_v32 = vclamps-f32 %v2325_v8, 1.0 }
 0x73a   : > { %v2334_v35 = vmul.f32 %v2330_v57, %v2162_v46 }
 0x73b   : > { %v2331_v38 = vadd.f32 1.0, %v2669_v32 }
 0x73d   : > { %2389 = vmatmul.f32.gmra.mxu2 %v2334_v35  ;;  %v2335_v39 = vmul.f32 %v2331_v38, %v2163_v13 }
 0x73f   : > { %2412 = vmatmul.f32.gmra.mxu3 %v2335_v39 }
 0x7b8   : > { %v2387_v42 = vpop.f32.mrf.mxu2 }
 0x7b9   : > { %v2410_v1 = vpop.f32.mrf.mxu3 }
 0x7ba   : > { %v2411_v45 = vadd.f32 %v2410_v1, %v2387_v42 }
 0x7bc   : > { %v2416_v60 = vadd.f32 %v2411_v45, %v2336_v40 }
 0x7be   : > { %2418 = vst [vmem:[#allocation4 + $0x8] sm:$0xff] %v2416_v60 }
 0x7c0   : > { %v2390_v31 = vpop.f32.mrf.mxu2 }
 0x7c2   : > { %v2413_v61 = vpop.f32.mrf.mxu3 }
 0x7c3   : > { %v2414_v34 = vadd.f32 %v2413_v61, %v2390_v31  ;;  %2423 = sbr.rel (%p2670_p3) target bundleno = 2006 (0x7d6), region = 88 }
 0x7c5   : > { %v2417_v44 = vadd.f32 %v2414_v34, %v2337_v14 }
 0x7c7   : > { %2419 = vst [vmem:[#allocation4] sm:$0xff] %v2417_v44 }
 0x7c8   : > { %v2427_v3 = vld [vmem:[#allocation4 + $0x8] sm:$0xff]  ;;  %v2914_v37 = vld [vmem:[%s4270_s30] ss:$0 sm:$0xff]  ;;  %v2915_v49 = vld [vmem:[%s3500_s4 + $0x5] ss:$0 sm:$0xff] }
 0x7c9   : > { %v2433_v33 = vadd.f32 %v2914_v37, %v2427_v3  ;;  %v2425_v22 = vld [vmem:[#allocation2] sm:$0xff]  ;;  %v2426_v52 = vld [vmem:[#allocation2 + $0x8] sm:$0xff] }
 0x7cb   : > { %v2436_v2 = vmul.f32 %v2915_v49, %v2433_v33 }
 0x7cd   : > { %v2438_v20 = vadd.f32 %v2436_v2, %v2425_v22 }
 0x7ce   : > { %v2428_v26 = vld [vmem:[#allocation4] sm:$0xff] }
 0x7cf   : > { %v2434_v55 = vadd.f32 %v2914_v37, %v2428_v26  ;;  %2440 = vst [vmem:[%s3508_s15] sm:$0xff] %v2438_v20 }
 0x7d1   : > { %v2437_v0 = vmul.f32 %v2915_v49, %v2434_v55 }
 0x7d3   : > { %v2439_v36 = vadd.f32 %v2437_v0, %v2426_v52 }
 0x7d5   : > { %2441 = vst [vmem:[%s3508_s15 + $0x8] sm:$0xff] %v2439_v36 }
 0x7d6 PF: > { %s4271_s1 = sld [smem:[#allocation22_spill]]  ;;  %s2455_s6 = sshll.u32 %s3508_s15, 4  ;;  %s2456_s6 = int_to_ptr.vmem [resolvable:$true] %s2455_s6 }
 0x7d7   : > { %s4272_s4 = sld [smem:[#allocation38_spill]]  ;;  %s2443_s28 = scalar_lea.sflag [#allocation7], %s3470_s5 }
 0x7dc   : > { %s2679_s19 = sshll.u32 %s4271_s1, 4 }
 0x7dd   : > { %s2454_s10 = scalar_lea.hbm %s4272_s4, %s2679_s19  ;;  %s3086_s22 = scalar_lea.hbm %s4272_s4, 32 }
 0x7de   : > { %s2457_s18 = sshll.u32 %s2454_s10, 4  ;;  %s2458_s18 = int_to_ptr.hbm [resolvable:$true] %s2457_s18 }
 0x7df   : > { %s3080_s27 = sshra.s32 %s2458_s18, 4  ;;  %s3081_s27 = int_to_ptr.hbm [resolvable:$true] %s3080_s27 }
 0x7e0   : > { %s3082_s11 = scalar_lea.hbm %s3081_s27, 16  ;;  %p3087_p8 = scmp.lt.s32.totalorder %s3081_s27, %s4272_s4 }
 0x7e1   : > { %p3083_p7 = scmp.ne.s32.totalorder %s3081_s27, %s3082_s11  ;;  %p3088_p9 = scmp.lt.s32.totalorder %s3086_s22, %s3082_s11 }
 0x7e3   : > { %p3084_p11 = pnand %p3083_p7, %p3423_p0  ;;  %p3089_p10 = por %p3088_p9, %p3087_p8 }
 0x7e5   : > { %p3085_p13 = pneg %p3084_p11 }
 0x7e7   : > { %p3090_p2 = pnand %p3089_p10, %p3085_p13 }
 0x7e9   : > { %3093 = shalt.err (!%p3090_p2)
}
 0x7ea   : > { %s3209_s5 = smov 128   ;;  %s3210_s15 = smov 8  }
 0x7eb   : > { %2694 = dma.vmem_to_hbm [thread:$0]  (%p3423_p0), %s2456_s6, 256, %s2458_s18, %s2443_s28, %s3209_s5, %s3209_s5, %s3210_s15  }
 0x7ec PF: > { %p2722_p4 = scmp.ge.s32.totalorder %s3196_s23, 2  ;;  %s2472_s9 = sand.u32 1, %s3168_s16  }
 0x7ed   : > { %s2473_s20 = scalar_lea.sflag [#allocation7], %s2472_s9 }
 0x7ee   : > { %p2714_p6 = pnand %p2722_p4, %p3438_p12 }
 0x7f0   : > { %p2715_p1 = pneg %p2714_p6 }
 0x7f2   : > { %3151 = dma.done.wait (%p2715_p1), %s2473_s20, 256  }
 0x7f3   : > { %3153 = vsyncadd (%p2715_p1), %s2473_s20, 4294967040  ;;  %s30_s23 = sadd.s32 1, %s3196_s23   ;;  %s4274_s30 = sld [smem:[#allocation19_spill]] }
 0x7f4   : > { %p27_p5 = scmp.ge.s32.totalorder %s30_s23, 6   ;;  %s4275_s15 = sld [smem:[#allocation26_spill]] }
 0x7f5   : > { %s4276_s12 = sld [smem:[#allocation20_spill]]  ;;  %s4281_s13 = smov %s3160_s14 }
 0x7f6   : > { %s4277_s18 = sld [smem:[#allocation29_spill]]  ;;  %s4283_s16 = smov %s3172_s17 }
 0x7f7   : > { %s4278_s20 = sld [smem:[#allocation23_spill]]  ;;  %s4285_s19 = smov %s3188_s21 }
 0x7f8   : > { %s4279_s1 = sld [smem:[#allocation25_spill]] }
 0x7f9   : > { %s4280_s22 = sld [smem:[#allocation27_spill]]  ;;  %s4282_s14 = smov %s4274_s30 }
 0x7fa   :  { %29 = sbr.rel (!%p27_p5) target bundleno = 22 (0x16), region = 151 }
 0x7fb   : > { %s4284_s17 = smov %s4276_s12 }
 0x7fe   : > { %s4286_s21 = smov %s4279_s1 }
 0x7ff   :  { %2479 = vsyncpa [#allocation6], 1 }
 0x800   :  { %2481 = vsyncpa [#allocation6 + $0x1], 1 }
 0x801   :  { %2482 = vsyncpa [#allocation9], 1 }
 0x802   :  { %2483 = vsyncpa [#allocation12], 1 }
 0x803   :  { %2485 = vsyncpa [#allocation12 + $0x1], 1 }
 0x804   :  { %2486 = vsyncpa [#allocation7], 1 }
 0x805   :  { %2488 = vsyncpa [#allocation7 + $0x1], 1 }

</bundles_post_ra>
